<compile_context>
chip_gen: v7x
topology: tpu7x:2x2x1
jax: 0.10.0
libtpu: 0.0.40
codegen_flags: <defaults>
</compile_context>

<pallas_src>
import functools

import jax
import jax.numpy as jnp
from jax.experimental import pallas as pl
from jax.experimental.pallas import tpu as pltpu

ALPHA = 0.75
GAMMA = 2.0
IOU_EPS = 1e-9
LOG_EPS = 1e-12
LOSS_WEIGHT = {"class": 1.0, "box": 2.5}

# rows of the packed "side" array (per-anchor box-side quantities)
_R_AX, _R_AY = 0, 1                      # anchor_point / stride
_R_L, _R_T, _R_R, _R_B = 2, 3, 4, 5      # predicted ltrb distances
_R_TX1, _R_TY1, _R_TX2, _R_TY2 = 6, 7, 8, 9   # target box / stride
_R_MASK, _R_LBL = 10, 11
_SIDE_ROWS = 12


def _loss_kernel(p_ref, q_ref, side_ref, vfl_ref, box_ref, ssum_ref):
    # Zero the resident accumulator blocks at the start of each inner sweep.
    @pl.when(pl.program_id(1) == 0)
    def _():
        vfl_ref[...] = jnp.zeros_like(vfl_ref)
        box_ref[...] = jnp.zeros_like(box_ref)
        ssum_ref[...] = jnp.zeros_like(ssum_ref)

    p = p_ref[...]                       # (C, TN) predicted class probabilities
    q = q_ref[...]                       # (C, TN) target scores
    num_classes = p.shape[0]

    # label = one_hot(target_label, C+1)[..., :-1]   (labels stored as exact ints in f32)
    lbl = side_ref[_R_LBL:_R_LBL + 1, :].astype(jnp.int32)          # (1, TN)
    cls_iota = jax.lax.broadcasted_iota(jnp.int32, p.shape, 0)      # (C, TN)
    label = jnp.logical_and(cls_iota == lbl, lbl < num_classes).astype(jnp.float32)

    # ---- Varifocal loss (elementwise, lane-dense) ----
    p_pow = p * p if GAMMA == 2.0 else p ** GAMMA        # static python branch
    weight = ALPHA * p_pow * (1.0 - label) + q * label
    bce = -(q * jnp.log(jnp.maximum(p, LOG_EPS))
            + (1.0 - q) * jnp.log(jnp.maximum(1.0 - p, LOG_EPS)))
    vfl_ref[...] += (bce * weight)[None]                 # (1, C, TN)

    # per-anchor target-score sum (box weight) + global score sum
    q_rowsum = jnp.sum(q, axis=0, keepdims=True)         # (1, TN)
    ssum_ref[...] += q_rowsum[None]

    # ---- Box decode (anchor/stride -/+ ltrb) + GIoU loss on lane-dense rows ----
    a_xy = side_ref[_R_AX:_R_AY + 1, :]                  # (2, TN)
    p_lt = side_ref[_R_L:_R_T + 1, :]
    p_rb = side_ref[_R_R:_R_B + 1, :]
    t_xy1 = side_ref[_R_TX1:_R_TY1 + 1, :]
    t_xy2 = side_ref[_R_TX2:_R_TY2 + 1, :]
    mask = side_ref[_R_MASK:_R_MASK + 1, :]              # (1, TN)

    p_xy1 = a_xy - p_lt
    p_xy2 = p_rb + a_xy

    inter_wh = jnp.maximum(jnp.minimum(p_xy2, t_xy2) - jnp.maximum(p_xy1, t_xy1), 0.0)
    inter = inter_wh[0:1, :] * inter_wh[1:2, :]
    p_wh = p_xy2 - p_xy1
    t_wh = t_xy2 - t_xy1
    union = p_wh[0:1, :] * p_wh[1:2, :] + t_wh[0:1, :] * t_wh[1:2, :] - inter + IOU_EPS
    iou = inter / union
    c_wh = jnp.maximum(p_xy2, t_xy2) - jnp.minimum(p_xy1, t_xy1)
    c_area = c_wh[0:1, :] * c_wh[1:2, :] + IOU_EPS
    giou = iou - (c_area - union) / c_area
    loss_iou = 1.0 - giou                                # (1, TN)

    box_ref[...] += (loss_iou * q_rowsum * mask)[None]


def _round_up(x, m):
    return (x + m - 1) // m * m


@functools.partial(jax.jit, static_argnames=("tile_n",))
def compute_loss(cls_pred, box_pred, anchor_points, stride_tensor,
                 target_labels, target_boxes, target_scores, candidate_mask,
                 *, tile_n=2048):
    """cls_pred: (B,A,C) probs; box_pred: (B,A,4) ltrb; anchor_points: (A,2);
    stride_tensor: (A,1); target_labels: (B,A) int; target_boxes: (B,A,4);
    target_scores: (B,A,C); candidate_mask: (B,A) {0,1}."""
    B, A, C = cls_pred.shape
    N = B * A
    f32 = jnp.float32

    tile_n = max(128, (min(int(tile_n), _round_up(N, 128)) // 128) * 128)
    n_pad = _round_up(N, tile_n)
    pad = n_pad - N
    total_tiles = n_pad // tile_n
    nsplit = 2 if (total_tiles % 2 == 0 and total_tiles >= 2) else 1
    tps = total_tiles // nsplit   # tiles per split

    # class tensors, transposed to (C, N) so anchors sit on the lane axis.
    p_t = cls_pred.astype(f32).reshape(N, C).T
    q_t = target_scores.astype(f32).reshape(N, C).T
    if pad:
        p_t = jnp.pad(p_t, ((0, 0), (0, pad)))   # p=0, q=0 -> exactly zero contribution
        q_t = jnp.pad(q_t, ((0, 0), (0, pad)))

    # packed per-anchor side array (12, N); /stride pre-folded (no divide in kernel,
    # zero-padded rows stay finite and masked out).
    inv_s = 1.0 / stride_tensor.reshape(A).astype(f32)                  # (A,)
    ax = anchor_points[:, 0].astype(f32) * inv_s
    ay = anchor_points[:, 1].astype(f32) * inv_s
    inv_s_n = jnp.broadcast_to(inv_s[None, :], (B, A)).reshape(N)
    bp = box_pred.astype(f32).reshape(N, 4)
    tb = target_boxes.astype(f32).reshape(N, 4) * inv_s_n[:, None]
    side = jnp.stack(
        [jnp.broadcast_to(ax[None, :], (B, A)).reshape(N),
         jnp.broadcast_to(ay[None, :], (B, A)).reshape(N),
         bp[:, 0], bp[:, 1], bp[:, 2], bp[:, 3],
         tb[:, 0], tb[:, 1], tb[:, 2], tb[:, 3],
         candidate_mask.reshape(N).astype(f32),
         target_labels.reshape(N).astype(f32)], axis=0)                 # (12, N)
    if pad:
        side = jnp.pad(side, ((0, 0), (0, pad)))

    lane_map = lambda c, i: (0, c * tps + i)
    out_map = lambda c, i: (c, 0, 0)

    vfl_part, box_part, ssum_part = pl.pallas_call(
        _loss_kernel,
        out_shape=(jax.ShapeDtypeStruct((nsplit, C, tile_n), f32),
                   jax.ShapeDtypeStruct((nsplit, 1, tile_n), f32),
                   jax.ShapeDtypeStruct((nsplit, 1, tile_n), f32)),
        grid_spec=pltpu.PrefetchScalarGridSpec(
            num_scalar_prefetch=0,
            grid=(nsplit, tps),
            in_specs=[pl.BlockSpec((C, tile_n), lane_map),
                      pl.BlockSpec((C, tile_n), lane_map),
                      pl.BlockSpec((_SIDE_ROWS, tile_n), lane_map)],
            out_specs=[pl.BlockSpec((1, C, tile_n), out_map),
                       pl.BlockSpec((1, 1, tile_n), out_map),
                       pl.BlockSpec((1, 1, tile_n), out_map)],
        ),
        compiler_params=pltpu.CompilerParams(
            dimension_semantics=("parallel", "arbitrary")),
    )(p_t, q_t, side)

    # tiny final reductions on lane-dense partials
    vfl_sum = jnp.sum(vfl_part)
    box_sum = jnp.sum(box_part)
    scores_sum = jnp.sum(ssum_part)

    loss_cls = jnp.where(scores_sum > 0, vfl_sum, 0.0)
    loss_cls = jnp.where(scores_sum > 1, loss_cls / scores_sum, loss_cls)
    loss_box = jnp.where(scores_sum > 1, box_sum / scores_sum, box_sum)
    # num_pos == 0 case: masked sum is already 0, matching torch.tensor(0.0)

    w_cls = LOSS_WEIGHT["class"]
    w_box = LOSS_WEIGHT["box"]
    total = w_cls * loss_cls + w_box * loss_box
    return total, w_cls * loss_cls, w_box * loss_box


# ---------------- pure-JAX reference (for verification) ----------------
def _ref_loss(cls_pred, box_pred, anchor_points, stride_tensor,
              target_labels, target_boxes, target_scores, candidate_mask):
    B, A, C = cls_pred.shape
    aps = anchor_points / stride_tensor                           # (A,2)
    pred_xy1 = aps[None] - box_pred[..., :2]
    pred_xy2 = box_pred[..., 2:] + aps[None]
    pred_boxes = jnp.concatenate([pred_xy1, pred_xy2], -1)        # (B,A,4)
    tgt_boxes = target_boxes / stride_tensor[None]

    label = jax.nn.one_hot(target_labels, C + 1)[..., :-1]
    p, q = cls_pred, target_scores
    weight = ALPHA * (p ** 2) * (1 - label) + q * label
    bce = -(q * jnp.log(jnp.maximum(p, LOG_EPS)) + (1 - q) * jnp.log(jnp.maximum(1 - p, LOG_EPS)))
    vfl = jnp.sum(bce * weight)
    scores_sum = jnp.sum(q)
    loss_cls = jnp.where(scores_sum > 0, vfl, 0.0)
    loss_cls = jnp.where(scores_sum > 1, loss_cls / scores_sum, loss_cls)

    pb, tb = pred_boxes.reshape(-1, 4), tgt_boxes.reshape(-1, 4)
    iw = jnp.maximum(jnp.minimum(pb[:, 2], tb[:, 2]) - jnp.maximum(pb[:, 0], tb[:, 0]), 0)
    ih = jnp.maximum(jnp.minimum(pb[:, 3], tb[:, 3]) - jnp.maximum(pb[:, 1], tb[:, 1]), 0)
    inter = iw * ih
    union = ((pb[:, 2] - pb[:, 0]) * (pb[:, 3] - pb[:, 1]) +
             (tb[:, 2] - tb[:, 0]) * (tb[:, 3] - tb[:, 1]) - inter + IOU_EPS)
    iou = inter / union
    cw = jnp.maximum(pb[:, 2], tb[:, 2]) - jnp.minimum(pb[:, 0], tb[:, 0])
    ch = jnp.maximum(pb[:, 3], tb[:, 3]) - jnp.minimum(pb[:, 1], tb[:, 1])
    c_area = cw * ch + IOU_EPS
    loss_iou = 1.0 - (iou - (c_area - union) / c_area)
    bw = jnp.sum(q, -1).reshape(-1)
    m = candidate_mask.reshape(-1).astype(jnp.float32)
    loss_box = jnp.sum(loss_iou * bw * m)
    loss_box = jnp.where(scores_sum > 1, loss_box / scores_sum, loss_box)
    w_cls, w_box = LOSS_WEIGHT["class"], LOSS_WEIGHT["box"]
    return w_cls * loss_cls + w_box * loss_box, w_cls * loss_cls, w_box * loss_box


if __name__ == "__main__":
    def run_case(seed, B, A, C):
        key = jax.random.fold_in(jax.random.PRNGKey(0), seed)
        ks = jax.random.split(key, 8)
        cls_pred = jax.nn.sigmoid(jax.random.normal(ks[0], (B, A, C), jnp.float32))
        box_pred = jax.random.uniform(ks[1], (B, A, 4), jnp.float32, 0.1, 4.0)   # ltrb dists
        # two "FPN levels": strides 8 and 16
        stride_tensor = jnp.concatenate([jnp.full((A // 2, 1), 8.0),
                                         jnp.full((A - A // 2, 1), 16.0)]).astype(jnp.float32)
        anchor_points = jax.random.uniform(ks[2], (A, 2), jnp.float32, 4.0, 60.0)
        target_labels = jax.random.randint(ks[3], (B, A), 0, C + 1)              # C == background
        x1y1 = jax.random.uniform(ks[4], (B, A, 2), jnp.float32, 0.0, 40.0)
        wh = jax.random.uniform(ks[5], (B, A, 2), jnp.float32, 2.0, 20.0)
        target_boxes = jnp.concatenate([x1y1, x1y1 + wh], axis=-1)
        target_scores = (jax.random.uniform(ks[6], (B, A, C), jnp.float32, 0.0, 1.0)
                         * (jax.random.uniform(ks[7], (B, A, 1)) < 0.1).astype(jnp.float32))
        candidate_mask = (jnp.sum(target_scores, -1) > 0).astype(jnp.float32)

        out = compute_loss(cls_pred, box_pred, anchor_points, stride_tensor,
                           target_labels, target_boxes, target_scores, candidate_mask)
        out = jax.block_until_ready(out)

        ref = _ref_loss(cls_pred, box_pred, anchor_points, stride_tensor,
                        target_labels, target_boxes, target_scores, candidate_mask)
        for got, want in zip(out, ref):
            assert jnp.allclose(got, want, rtol=1e-4, atol=1e-4), (got, want)

    # case 1: N=2100 -> padded to 4096, 2 tiles, 2-way core split exercised
    run_case(0, B=2, A=1050, C=16)
    # case 2: COCO-like class count, N=4200 -> padded to 6144, 3-step accumulation
    run_case(1, B=2, A=2100, C=80)
    print("KERNEL_OK")
</pallas_src>

<mosaic_0001>
module attributes {stable_mosaic.version = 11 : i64} {
  func.func @_loss_kernel(%arg0: i32, %arg1: i32, %arg2: memref<16x2048xf32, #tpu.memory_space<vmem>>, %arg3: memref<16x2048xf32, #tpu.memory_space<vmem>>, %arg4: memref<12x2048xf32, #tpu.memory_space<vmem>>, %arg5: memref<1x16x2048xf32, #tpu.memory_space<vmem>>, %arg6: memref<1x1x2048xf32, #tpu.memory_space<vmem>>, %arg7: memref<1x1x2048xf32, #tpu.memory_space<vmem>>) attributes {dimension_semantics = [#tpu.dimension_semantics<parallel>, #tpu.dimension_semantics<arbitrary>], iteration_bounds = array<i64: 2, 1>, scalar_prefetch = 0 : i64, scratch_operands = 0 : i64, tpu.core_type = #tpu.core_type<tc>, window_params = [{transform_indices = @transform_0, window_bounds = array<i64: 16, 2048>}, {transform_indices = @transform_1, window_bounds = array<i64: 16, 2048>}, {transform_indices = @transform_2, window_bounds = array<i64: 12, 2048>}, {transform_indices = @transform_3, window_bounds = array<i64: 1, 16, 2048>}, {transform_indices = @transform_4, window_bounds = array<i64: 1, 1, 2048>}, {transform_indices = @transform_5, window_bounds = array<i64: 1, 1, 2048>}]} {
    %c0_i32 = arith.constant 0 : i32
    %0 = arith.cmpi eq, %arg1, %c0_i32 : i32
    %1 = arith.extui %0 : i1 to i32
    %c0_i32_0 = arith.constant 0 : i32
    %2 = arith.cmpi ne, %1, %c0_i32_0 : i32
    scf.if %2 {
      %cst_41 = arith.constant 0.000000e+00 : f32
      %98 = vector.broadcast %cst_41 : f32 to vector<1x16x2048xf32>
      %c0_42 = arith.constant 0 : index
      %c0_43 = arith.constant 0 : index
      %c0_44 = arith.constant 0 : index
      %99 = vector.load %arg5[%c0_42, %c0_43, %c0_44] : memref<1x16x2048xf32, #tpu.memory_space<vmem>>, vector<1x16x2048xf32>
      tpu.vector_store %arg5[%c0_42, %c0_43, %c0_44], %98 {strides = array<i32>} : memref<1x16x2048xf32, #tpu.memory_space<vmem>>, vector<1x16x2048xf32>,
      %cst_45 = arith.constant 0.000000e+00 : f32
      %100 = vector.broadcast %cst_45 : f32 to vector<1x1x2048xf32>
      %c0_46 = arith.constant 0 : index
      %c0_47 = arith.constant 0 : index
      %c0_48 = arith.constant 0 : index
      %101 = vector.load %arg6[%c0_46, %c0_47, %c0_48] : memref<1x1x2048xf32, #tpu.memory_space<vmem>>, vector<1x1x2048xf32>
      tpu.vector_store %arg6[%c0_46, %c0_47, %c0_48], %100 {strides = array<i32>} : memref<1x1x2048xf32, #tpu.memory_space<vmem>>, vector<1x1x2048xf32>,
      %cst_49 = arith.constant 0.000000e+00 : f32
      %102 = vector.broadcast %cst_49 : f32 to vector<1x1x2048xf32>
      %c0_50 = arith.constant 0 : index
      %c0_51 = arith.constant 0 : index
      %c0_52 = arith.constant 0 : index
      %103 = vector.load %arg7[%c0_50, %c0_51, %c0_52] : memref<1x1x2048xf32, #tpu.memory_space<vmem>>, vector<1x1x2048xf32>
      tpu.vector_store %arg7[%c0_50, %c0_51, %c0_52], %102 {strides = array<i32>} : memref<1x1x2048xf32, #tpu.memory_space<vmem>>, vector<1x1x2048xf32>,
    } else {
    }
    %c0 = arith.constant 0 : index
    %c0_1 = arith.constant 0 : index
    %3 = vector.load %arg2[%c0, %c0_1] : memref<16x2048xf32, #tpu.memory_space<vmem>>, vector<16x2048xf32>
    %c0_2 = arith.constant 0 : index
    %c0_3 = arith.constant 0 : index
    %4 = vector.load %arg3[%c0_2, %c0_3] : memref<16x2048xf32, #tpu.memory_space<vmem>>, vector<16x2048xf32>
    %c11 = arith.constant 11 : index
    %c0_4 = arith.constant 0 : index
    %5 = vector.load %arg4[%c11, %c0_4] : memref<12x2048xf32, #tpu.memory_space<vmem>>, vector<1x2048xf32>
    %6 = arith.fptosi %5 : vector<1x2048xf32> to vector<1x2048xi32>
    %7 = tpu.iota {dimensions = array<i32: 0>} : vector<16x2048xi32>
    %8 = vector.broadcast %6 : vector<1x2048xi32> to vector<16x2048xi32>
    %9 = arith.cmpi eq, %7, %8 : vector<16x2048xi32>
    %c16_i32 = arith.constant 16 : i32
    %10 = vector.broadcast %c16_i32 : i32 to vector<1x2048xi32>
    %11 = arith.cmpi slt, %6, %10 : vector<1x2048xi32>
    %12 = vector.broadcast %11 : vector<1x2048xi1> to vector<16x2048xi1>
    %13 = arith.andi %9, %12 : vector<16x2048xi1>
    %14 = arith.extui %13 : vector<16x2048xi1> to vector<16x2048xi32>
    %15 = arith.sitofp %14 : vector<16x2048xi32> to vector<16x2048xf32>
    %16 = arith.mulf %3, %3 : vector<16x2048xf32>
    %cst = arith.constant 7.500000e-01 : f32
    %17 = vector.broadcast %cst : f32 to vector<16x2048xf32>
    %18 = arith.mulf %17, %16 : vector<16x2048xf32>
    %cst_5 = arith.constant 1.000000e+00 : f32
    %19 = vector.broadcast %cst_5 : f32 to vector<16x2048xf32>
    %20 = arith.subf %19, %15 : vector<16x2048xf32>
    %21 = arith.mulf %18, %20 : vector<16x2048xf32>
    %22 = arith.mulf %4, %15 : vector<16x2048xf32>
    %23 = arith.addf %21, %22 : vector<16x2048xf32>
    %cst_6 = arith.constant 9.99999996E-13 : f32
    %24 = vector.broadcast %cst_6 : f32 to vector<16x2048xf32>
    %25 = arith.maximumf %3, %24 : vector<16x2048xf32>
    %26 = math.log %25 : vector<16x2048xf32>
    %27 = arith.mulf %4, %26 : vector<16x2048xf32>
    %cst_7 = arith.constant 1.000000e+00 : f32
    %28 = vector.broadcast %cst_7 : f32 to vector<16x2048xf32>
    %29 = arith.subf %28, %4 : vector<16x2048xf32>
    %cst_8 = arith.constant 1.000000e+00 : f32
    %30 = vector.broadcast %cst_8 : f32 to vector<16x2048xf32>
    %31 = arith.subf %30, %3 : vector<16x2048xf32>
    %cst_9 = arith.constant 9.99999996E-13 : f32
    %32 = vector.broadcast %cst_9 : f32 to vector<16x2048xf32>
    %33 = arith.maximumf %31, %32 : vector<16x2048xf32>
    %34 = math.log %33 : vector<16x2048xf32>
    %35 = arith.mulf %29, %34 : vector<16x2048xf32>
    %36 = arith.addf %27, %35 : vector<16x2048xf32>
    %cst_10 = arith.constant 0.000000e+00 : f32
    %37 = vector.broadcast %cst_10 : f32 to vector<16x2048xf32>
    %38 = arith.subf %37, %36 : vector<16x2048xf32>
    %c0_11 = arith.constant 0 : index
    %c0_12 = arith.constant 0 : index
    %c0_13 = arith.constant 0 : index
    %39 = vector.load %arg5[%c0_11, %c0_12, %c0_13] : memref<1x16x2048xf32, #tpu.memory_space<vmem>>, vector<1x16x2048xf32>
    %40 = arith.mulf %38, %23 : vector<16x2048xf32>
    %41 = vector.shape_cast %40 : vector<16x2048xf32> to vector<1x16x2048xf32>
    %42 = arith.addf %39, %41 : vector<1x16x2048xf32>
    %c0_14 = arith.constant 0 : index
    %c0_15 = arith.constant 0 : index
    %c0_16 = arith.constant 0 : index
    %43 = vector.load %arg5[%c0_14, %c0_15, %c0_16] : memref<1x16x2048xf32, #tpu.memory_space<vmem>>, vector<1x16x2048xf32>
    tpu.vector_store %arg5[%c0_14, %c0_15, %c0_16], %42 {strides = array<i32>} : memref<1x16x2048xf32, #tpu.memory_space<vmem>>, vector<1x16x2048xf32>,
    %cst_17 = arith.constant dense<0.000000e+00> : vector<2048xf32>
    %44 = vector.multi_reduction <add>, %4, %cst_17 [0] : vector<16x2048xf32> to vector<2048xf32>
    %45 = vector.shape_cast %44 : vector<2048xf32> to vector<1x2048xf32>
    %c0_18 = arith.constant 0 : index
    %c0_19 = arith.constant 0 : index
    %c0_20 = arith.constant 0 : index
    %46 = vector.load %arg7[%c0_18, %c0_19, %c0_20] : memref<1x1x2048xf32, #tpu.memory_space<vmem>>, vector<1x1x2048xf32>
    %47 = vector.shape_cast %45 : vector<1x2048xf32> to vector<1x1x2048xf32>
    %48 = arith.addf %46, %47 : vector<1x1x2048xf32>
    %c0_21 = arith.constant 0 : index
    %c0_22 = arith.constant 0 : index
    %c0_23 = arith.constant 0 : index
    %49 = vector.load %arg7[%c0_21, %c0_22, %c0_23] : memref<1x1x2048xf32, #tpu.memory_space<vmem>>, vector<1x1x2048xf32>
    tpu.vector_store %arg7[%c0_21, %c0_22, %c0_23], %48 {strides = array<i32>} : memref<1x1x2048xf32, #tpu.memory_space<vmem>>, vector<1x1x2048xf32>,
    %c0_24 = arith.constant 0 : index
    %c0_25 = arith.constant 0 : index
    %50 = vector.load %arg4[%c0_24, %c0_25] : memref<12x2048xf32, #tpu.memory_space<vmem>>, vector<2x2048xf32>
    %c2 = arith.constant 2 : index
    %c0_26 = arith.constant 0 : index
    %51 = vector.load %arg4[%c2, %c0_26] : memref<12x2048xf32, #tpu.memory_space<vmem>>, vector<2x2048xf32>
    %c4 = arith.constant 4 : index
    %c0_27 = arith.constant 0 : index
    %52 = vector.load %arg4[%c4, %c0_27] : memref<12x2048xf32, #tpu.memory_space<vmem>>, vector<2x2048xf32>
    %c6 = arith.constant 6 : index
    %c0_28 = arith.constant 0 : index
    %53 = vector.load %arg4[%c6, %c0_28] : memref<12x2048xf32, #tpu.memory_space<vmem>>, vector<2x2048xf32>
    %c8 = arith.constant 8 : index
    %c0_29 = arith.constant 0 : index
    %54 = vector.load %arg4[%c8, %c0_29] : memref<12x2048xf32, #tpu.memory_space<vmem>>, vector<2x2048xf32>
    %c10 = arith.constant 10 : index
    %c0_30 = arith.constant 0 : index
    %55 = vector.load %arg4[%c10, %c0_30] : memref<12x2048xf32, #tpu.memory_space<vmem>>, vector<1x2048xf32>
    %56 = arith.subf %50, %51 : vector<2x2048xf32>
    %57 = arith.addf %52, %50 : vector<2x2048xf32>
    %58 = arith.minimumf %57, %54 : vector<2x2048xf32>
    %59 = arith.maximumf %56, %53 : vector<2x2048xf32>
    %60 = arith.subf %58, %59 : vector<2x2048xf32>
    %cst_31 = arith.constant 0.000000e+00 : f32
    %61 = vector.broadcast %cst_31 : f32 to vector<2x2048xf32>
    %62 = arith.maximumf %60, %61 : vector<2x2048xf32>
    %63 = vector.extract_strided_slice %62 {offsets = [0, 0], sizes = [1, 2048], strides = [1, 1]} : vector<2x2048xf32> to vector<1x2048xf32>
    %64 = vector.extract_strided_slice %62 {offsets = [1, 0], sizes = [1, 2048], strides = [1, 1]} : vector<2x2048xf32> to vector<1x2048xf32>
    %65 = arith.mulf %63, %64 : vector<1x2048xf32>
    %66 = arith.subf %57, %56 : vector<2x2048xf32>
    %67 = arith.subf %54, %53 : vector<2x2048xf32>
    %68 = vector.extract_strided_slice %66 {offsets = [0, 0], sizes = [1, 2048], strides = [1, 1]} : vector<2x2048xf32> to vector<1x2048xf32>
    %69 = vector.extract_strided_slice %66 {offsets = [1, 0], sizes = [1, 2048], strides = [1, 1]} : vector<2x2048xf32> to vector<1x2048xf32>
    %70 = arith.mulf %68, %69 : vector<1x2048xf32>
    %71 = vector.extract_strided_slice %67 {offsets = [0, 0], sizes = [1, 2048], strides = [1, 1]} : vector<2x2048xf32> to vector<1x2048xf32>
    %72 = vector.extract_strided_slice %67 {offsets = [1, 0], sizes = [1, 2048], strides = [1, 1]} : vector<2x2048xf32> to vector<1x2048xf32>
    %73 = arith.mulf %71, %72 : vector<1x2048xf32>
    %74 = arith.addf %70, %73 : vector<1x2048xf32>
    %75 = arith.subf %74, %65 : vector<1x2048xf32>
    %cst_32 = arith.constant 9.99999971E-10 : f32
    %76 = vector.broadcast %cst_32 : f32 to vector<1x2048xf32>
    %77 = arith.addf %75, %76 : vector<1x2048xf32>
    %78 = arith.divf %65, %77 : vector<1x2048xf32>
    %79 = arith.maximumf %57, %54 : vector<2x2048xf32>
    %80 = arith.minimumf %56, %53 : vector<2x2048xf32>
    %81 = arith.subf %79, %80 : vector<2x2048xf32>
    %82 = vector.extract_strided_slice %81 {offsets = [0, 0], sizes = [1, 2048], strides = [1, 1]} : vector<2x2048xf32> to vector<1x2048xf32>
    %83 = vector.extract_strided_slice %81 {offsets = [1, 0], sizes = [1, 2048], strides = [1, 1]} : vector<2x2048xf32> to vector<1x2048xf32>
    %84 = arith.mulf %82, %83 : vector<1x2048xf32>
    %cst_33 = arith.constant 9.99999971E-10 : f32
    %85 = vector.broadcast %cst_33 : f32 to vector<1x2048xf32>
    %86 = arith.addf %84, %85 : vector<1x2048xf32>
    %87 = arith.subf %86, %77 : vector<1x2048xf32>
    %88 = arith.divf %87, %86 : vector<1x2048xf32>
    %89 = arith.subf %78, %88 : vector<1x2048xf32>
    %cst_34 = arith.constant 1.000000e+00 : f32
    %90 = vector.broadcast %cst_34 : f32 to vector<1x2048xf32>
    %91 = arith.subf %90, %89 : vector<1x2048xf32>
    %c0_35 = arith.constant 0 : index
    %c0_36 = arith.constant 0 : index
    %c0_37 = arith.constant 0 : index
    %92 = vector.load %arg6[%c0_35, %c0_36, %c0_37] : memref<1x1x2048xf32, #tpu.memory_space<vmem>>, vector<1x1x2048xf32>
    %93 = arith.mulf %91, %45 : vector<1x2048xf32>
    %94 = arith.mulf %93, %55 : vector<1x2048xf32>
    %95 = vector.shape_cast %94 : vector<1x2048xf32> to vector<1x1x2048xf32>
    %96 = arith.addf %92, %95 : vector<1x1x2048xf32>
    %c0_38 = arith.constant 0 : index
    %c0_39 = arith.constant 0 : index
    %c0_40 = arith.constant 0 : index
    %97 = vector.load %arg6[%c0_38, %c0_39, %c0_40] : memref<1x1x2048xf32, #tpu.memory_space<vmem>>, vector<1x1x2048xf32>
    tpu.vector_store %arg6[%c0_38, %c0_39, %c0_40], %96 {strides = array<i32>} : memref<1x1x2048xf32, #tpu.memory_space<vmem>>, vector<1x1x2048xf32>,
    return
  }
  func.func @transform_0(%arg0: i32, %arg1: i32) -> (i32, i32) {
    %c1_i32 = arith.constant 1 : i32
    %0 = arith.muli %arg0, %c1_i32 : i32
    %1 = arith.addi %0, %arg1 : i32
    %c0_i32 = arith.constant 0 : i32
    %c0_i32_0 = arith.constant 0 : i32
    return %c0_i32, %1 : i32, i32
  }
  func.func @transform_1(%arg0: i32, %arg1: i32) -> (i32, i32) {
    %c1_i32 = arith.constant 1 : i32
    %0 = arith.muli %arg0, %c1_i32 : i32
    %1 = arith.addi %0, %arg1 : i32
    %c0_i32 = arith.constant 0 : i32
    %c0_i32_0 = arith.constant 0 : i32
    return %c0_i32, %1 : i32, i32
  }
  func.func @transform_2(%arg0: i32, %arg1: i32) -> (i32, i32) {
    %c1_i32 = arith.constant 1 : i32
    %0 = arith.muli %arg0, %c1_i32 : i32
    %1 = arith.addi %0, %arg1 : i32
    %c0_i32 = arith.constant 0 : i32
    %c0_i32_0 = arith.constant 0 : i32
    return %c0_i32, %1 : i32, i32
  }
  func.func @transform_3(%arg0: i32, %arg1: i32) -> (i32, i32, i32) {
    %c0_i32 = arith.constant 0 : i32
    %c0_i32_0 = arith.constant 0 : i32
    %c0_i32_1 = arith.constant 0 : i32
    return %arg0, %c0_i32, %c0_i32_0 : i32, i32, i32
  }
  func.func @transform_4(%arg0: i32, %arg1: i32) -> (i32, i32, i32) {
    %c0_i32 = arith.constant 0 : i32
    %c0_i32_0 = arith.constant 0 : i32
    %c0_i32_1 = arith.constant 0 : i32
    return %arg0, %c0_i32, %c0_i32_0 : i32, i32, i32
  }
  func.func @transform_5(%arg0: i32, %arg1: i32) -> (i32, i32, i32) {
    %c0_i32 = arith.constant 0 : i32
    %c0_i32_0 = arith.constant 0 : i32
    %c0_i32_1 = arith.constant 0 : i32
    return %arg0, %c0_i32, %c0_i32_0 : i32, i32, i32
  }
}

</mosaic_0001>

<bundles_post_ra>
// kernel: mul.11
= control target key start
LH: loop header
LB: loop body
LE: loop exit
PB: predicated region body
PF: predicated region fallthrough
CT: control target
= control target key end

     0   :  { %vm52_vm0 = vcmask 1047556   ;;  %vm63_vm1 = vcmask 834560   ;;  %vm47_vm2 = vcmask 211968   ;;  %s104_s27 = smov 26   ;;  %vm70_vm3 = vcmask 425168   ;;  %s162_s0 = inlined_call_operand.vmem [shape: f32[2,1050], index: 0, kind: input, shape index: {}]   ;;  %s163_s1 = inlined_call_operand.vmem [shape: f32[2100], index: 1, kind: output, shape index: {}]  }
   0x1   :  { %v91_v0 = vld [vmem:[%s162_s0 + $0x10] sm:$0x3]  ;;  %v92_v1 = vld [vmem:[%s162_s0 + $0xe] sm:$0x3]  ;;  %v93_v2 = vld [vmem:[%s162_s0 + $0xc] sm:$0x3] }
   0x2   :  { %8 = vst [vmem:[#allocation0 + $0x40] sm:$0x3] %v91_v0  ;;  %13 = vst [vmem:[#allocation0 + $0x38] sm:$0x3] %v92_v1  ;;  %v94_v3 = vld [vmem:[%s162_s0 + $0xa] sm:$0x3] }
   0x3   :  { %18 = vst [vmem:[#allocation0 + $0x30] sm:$0x3] %v93_v2  ;;  %v95_v4 = vld [vmem:[%s162_s0 + $0x8] sm:$0x3]  ;;  %v96_v5 = vld [vmem:[%s162_s0 + $0x6] sm:$0x3] }
   0x4   :  { %23 = vst [vmem:[#allocation0 + $0x28] sm:$0x3] %v94_v3  ;;  %28 = vst [vmem:[#allocation0 + $0x20] sm:$0x3] %v95_v4  ;;  %v97_v6 = vld [vmem:[%s162_s0 + $0x4] sm:$0x3] }
   0x5   :  { %33 = vst [vmem:[#allocation0 + $0x18] sm:$0x3] %v96_v5  ;;  %v98_v7 = vld [vmem:[%s162_s0 + $0x2] sm:$0x3]  ;;  %v43_v8 = vld [vmem:[%s162_s0] sm:$0x3] }
   0x6   :  { %38 = vst [vmem:[#allocation0 + $0x10] sm:$0x3] %v97_v6  ;;  %42 = vst [vmem:[#allocation0 + $0x8] sm:$0x3] %v98_v7  ;;  %vm81_vm4 = vcmask 1047760  }
   0x7   :  { %44 = vst [vmem:[#allocation0] sm:$0x3] %v43_v8 }
   0x9   :  { %v62_v9 = vld [vmem:[#allocation0 + $0x41] sm:$0x1]   ;;  %v46_v10 = vld [vmem:[#allocation0 + $0x40] sm:$0x1]  }
   0xa   :  { %99 = vst.msk [vmem:[%s163_s1 + $0x8] sm:$0x1] %vm47_vm2, %v46_v10  }
   0xb   :  { %v58_v11 = vld [vmem:[#allocation0 + $0x1] ss:$8 sm:$0xf0]   ;;  %v51_v12 = vld [vmem:[#allocation0] ss:$8 sm:$0xf0]  }
   0xc   :  { %v76_v18 = vld [vmem:[#allocation0 + $0x1] ss:$8 sm:$0xf0]  }
   0xe   :  { %v56_v13 = vld [vmem:[#allocation0 + $0x1] ss:$8 sm:$0xf]   ;;  %v50_v14 = vld [vmem:[#allocation0] ss:$8 sm:$0xf]  }
   0xf   :  { %v60_v15 = vsel %vm52_vm0, %v58_v11, %v56_v13  ;;  %v53_v16 = vsel %vm52_vm0, %v51_v12, %v50_v14  ;;  %v74_v17 = vld [vmem:[#allocation0 + $0x1] ss:$8 sm:$0xf]  }
  0x10   :  { %v64_v19 = vsel %vm63_vm1, %v62_v9, %v60_v15  ;;  %54 = vst [vmem:[%s163_s1] sm:$0xff] %v53_v16   ;;  %v78_v20 = vsel %vm52_vm0, %v76_v18, %v74_v17 }
  0x11   :  { %65 = vrot.lane.b32.xlu0 %v64_v19, %s104_s27 }
  0x15   :  { %79 = vrot.lane.b32.xlu0 %v78_v20, %s104_s27 }
  0x83   :  { %v66_v21 = vpop.permute.xlu0 %65  }
  0x84   :  { %100 = vst.msk [vmem:[%s163_s1 + $0x9] sm:$0xff] %vm47_vm2, %v66_v21  }
  0x85   :  { %101 = vst.msk [vmem:[%s163_s1 + $0x10] sm:$0x1] %vm70_vm3, %v66_v21  }
  0x87   :  { %v80_v22 = vpop.permute.xlu0 %79  }
  0x88   :  { %102 = vst.msk [vmem:[%s163_s1 + $0x8] sm:$0xff] %vm81_vm4, %v80_v22  }

// kernel: compute_loss.1
= control target key start
LH: loop header
LB: loop body
LE: loop exit
PB: predicated region body
PF: predicated region fallthrough
CT: control target
= control target key end

     0   :  { %s3763_s18 = smov 0   ;;  %s3765_s19 = smov 0   ;;  %s5877_s0 = inlined_call_operand.vmem [shape: f32[16,4096], index: 0, kind: input, shape index: {}]   ;;  %s5878_s1 = inlined_call_operand.vmem [shape: f32[16,4096], index: 1, kind: input, shape index: {}]   ;;  %s5879_s2 = inlined_call_operand.vmem [shape: f32[12,4096], index: 2, kind: input, shape index: {}]   ;;  %s5880_s3 = inlined_call_operand.vmem [shape: f32[2,16,2048], index: 3, kind: output, shape index: {0}]   ;;  %s5881_s4 = inlined_call_operand.vmem [shape: f32[2,1,2048], index: 4, kind: output, shape index: {1}]   ;;  %s5882_s5 = inlined_call_operand.vmem [shape: f32[2,1,2048], index: 5, kind: output, shape index: {2}]  }
   0x1   :  { %s3767_s20 = smov 0   ;;  %s3769_s21 = smov 0  }
   0x2   :  { %s3771_s22 = smov 0  }
   0x3 LB: > { %s28_s23 = sadd.s32 1, %s3724_s21  ;;  %p44_p1 = scmp.ne.s32.totalorder %s3716_s19, %s3712_s18  ;;  %s3728_s22 = sphi %s3771_s22, %s16_s22   ;;  %s3724_s21 = sphi %s3769_s21, %s6252_s21   ;;  %s3720_s20 = sphi %s3767_s20, %s6251_s20   ;;  %s3716_s19 = sphi %s3765_s19, %s6250_s19   ;;  %s3712_s18 = sphi %s3763_s18, %s6249_s18  }
   0x4   : > { %p30_p0 = scmp.ge.s32.totalorder %s28_s23, 2  ;;  %p45_p2 = scmp.eq.s32.totalorder %s3728_s22, 0 }
   0x5   : > { %s37_s26 = sadd.s32 1, %s3716_s19  ;;  %p3379_p5 = scmp.ge.s32.totalorder %s3728_s22, 2 }
   0x6   : > { %s6254_s23 = smov (%p30_p0, %s28_s23), 0  ;;  %p3794_p3 = por %p45_p2, %p44_p1 }
   0x7   : > { %s34_s25 = ssub.s32 %s3724_s21, %s6254_s23  ;;  %204 = sbr.rel (%p3379_p5) target bundleno = 74 (0x4a), region = 16 }
   0x8   : > { %p35_p4 = scmp.eq.s32.totalorder %s34_s25, 0 }
   0xa   : > { %s3802_s27 = scalar_select %p35_p4, %s3716_s19, %s37_s26  }
   0xe   : > { %207 = sbr.rel (!%p3794_p3) target bundleno = 34 (0x22), region = 20  ;;  %s209_s28 = sand.u32 (%p3794_p3), 1, %s3716_s19  }
   0xf   : > { %s3439_s29 = sshll.u32 (%p3794_p3), %s3724_s21, 7  ;;  %s3380_s30 = sshll.u32 (%p3794_p3), %s209_s28, 8 }
  0x10   : > { %s3812_s8 = scalar_lea.vmem (%p3794_p3), %s5877_s0, %s3439_s29  ;;  %s3817_s9 = scalar_lea.vmem (%p3794_p3), [#allocation2], %s3380_s30 }
  0x11   : > { %v228_v0 = vld [vmem:[%s3812_s8] sm:$0xff] (%p3794_p3)  ;;  %v230_v1 = vld [vmem:[%s3812_s8 + $0x8] sm:$0xff] (%p3794_p3)  ;;  %v232_v2 = vld [vmem:[%s3812_s8 + $0x10] sm:$0xff] (%p3794_p3) }
  0x12   : > { %229 = vst [vmem:[%s3817_s9] sm:$0xff] (%p3794_p3), %v228_v0  ;;  %231 = vst [vmem:[%s3817_s9 + $0x8] sm:$0xff] (%p3794_p3), %v230_v1  ;;  %v234_v3 = vld [vmem:[%s3812_s8 + $0x18] sm:$0xff] (%p3794_p3)  ;;  %v236_v4 = vld [vmem:[%s3812_s8 + $0x20] sm:$0xff] (%p3794_p3) }
  0x13   : > { %233 = vst [vmem:[%s3817_s9 + $0x10] sm:$0xff] (%p3794_p3), %v232_v2  ;;  %v238_v5 = vld [vmem:[%s3812_s8 + $0x28] sm:$0xff] (%p3794_p3)  ;;  %235 = vst [vmem:[%s3817_s9 + $0x18] sm:$0xff] (%p3794_p3), %v234_v3  ;;  %v240_v6 = vld [vmem:[%s3812_s8 + $0x30] sm:$0xff] (%p3794_p3) }
  0x14   : > { %237 = vst [vmem:[%s3817_s9 + $0x20] sm:$0xff] (%p3794_p3), %v236_v4  ;;  %239 = vst [vmem:[%s3817_s9 + $0x28] sm:$0xff] (%p3794_p3), %v238_v5  ;;  %v242_v7 = vld [vmem:[%s3812_s8 + $0x38] sm:$0xff] (%p3794_p3)  ;;  %v244_v8 = vld [vmem:[%s3812_s8 + $0x40] sm:$0xff] (%p3794_p3) }
  0x15   : > { %241 = vst [vmem:[%s3817_s9 + $0x30] sm:$0xff] %v240_v6  ;;  %243 = vst [vmem:[%s3817_s9 + $0x38] sm:$0xff] %v242_v7  ;;  %v246_v9 = vld [vmem:[%s3812_s8 + $0x48] sm:$0xff]  ;;  %v248_v10 = vld [vmem:[%s3812_s8 + $0x50] sm:$0xff] }
  0x16   : > { %245 = vst [vmem:[%s3817_s9 + $0x40] sm:$0xff] %v244_v8  ;;  %v250_v11 = vld [vmem:[%s3812_s8 + $0x58] sm:$0xff]  ;;  %247 = vst [vmem:[%s3817_s9 + $0x48] sm:$0xff] %v246_v9  ;;  %v252_v12 = vld [vmem:[%s3812_s8 + $0x60] sm:$0xff] }
  0x17   : > { %249 = vst [vmem:[%s3817_s9 + $0x50] sm:$0xff] %v248_v10  ;;  %251 = vst [vmem:[%s3817_s9 + $0x58] sm:$0xff] %v250_v11  ;;  %v254_v13 = vld [vmem:[%s3812_s8 + $0x68] sm:$0xff]  ;;  %v256_v14 = vld [vmem:[%s3812_s8 + $0x70] sm:$0xff] }
  0x18   : > { %253 = vst [vmem:[%s3817_s9 + $0x60] sm:$0xff] %v252_v12  ;;  %255 = vst [vmem:[%s3817_s9 + $0x68] sm:$0xff] %v254_v13  ;;  %v258_v15 = vld [vmem:[%s3812_s8 + $0x78] sm:$0xff]  ;;  %v260_v16 = vld [vmem:[%s3812_s8 + $0x100] sm:$0xff] }
  0x19   : > { %257 = vst [vmem:[%s3817_s9 + $0x70] sm:$0xff] %v256_v14  ;;  %v262_v17 = vld [vmem:[%s3812_s8 + $0x108] sm:$0xff]  ;;  %259 = vst [vmem:[%s3817_s9 + $0x78] sm:$0xff] %v258_v15  ;;  %v264_v18 = vld [vmem:[%s3812_s8 + $0x110] sm:$0xff] }
  0x1a   : > { %261 = vst [vmem:[%s3817_s9 + $0x80] sm:$0xff] %v260_v16  ;;  %263 = vst [vmem:[%s3817_s9 + $0x88] sm:$0xff] %v262_v17  ;;  %v266_v19 = vld [vmem:[%s3812_s8 + $0x118] sm:$0xff]  ;;  %v268_v20 = vld [vmem:[%s3812_s8 + $0x120] sm:$0xff] }
  0x1b   : > { %265 = vst [vmem:[%s3817_s9 + $0x90] sm:$0xff] %v264_v18  ;;  %267 = vst [vmem:[%s3817_s9 + $0x98] sm:$0xff] %v266_v19  ;;  %v270_v21 = vld [vmem:[%s3812_s8 + $0x128] sm:$0xff]  ;;  %v272_v22 = vld [vmem:[%s3812_s8 + $0x130] sm:$0xff] }
  0x1c   : > { %269 = vst [vmem:[%s3817_s9 + $0xa0] sm:$0xff] %v268_v20  ;;  %v274_v23 = vld [vmem:[%s3812_s8 + $0x138] sm:$0xff]  ;;  %271 = vst [vmem:[%s3817_s9 + $0xa8] sm:$0xff] %v270_v21  ;;  %v276_v24 = vld [vmem:[%s3812_s8 + $0x140] sm:$0xff] }
  0x1d   : > { %273 = vst [vmem:[%s3817_s9 + $0xb0] sm:$0xff] %v272_v22  ;;  %275 = vst [vmem:[%s3817_s9 + $0xb8] sm:$0xff] %v274_v23  ;;  %v278_v25 = vld [vmem:[%s3812_s8 + $0x148] sm:$0xff]  ;;  %v280_v26 = vld [vmem:[%s3812_s8 + $0x150] sm:$0xff] }
  0x1e   : > { %277 = vst [vmem:[%s3817_s9 + $0xc0] sm:$0xff] %v276_v24  ;;  %279 = vst [vmem:[%s3817_s9 + $0xc8] sm:$0xff] %v278_v25  ;;  %v282_v27 = vld [vmem:[%s3812_s8 + $0x158] sm:$0xff]  ;;  %v284_v28 = vld [vmem:[%s3812_s8 + $0x160] sm:$0xff] }
  0x1f   : > { %281 = vst [vmem:[%s3817_s9 + $0xd0] sm:$0xff] %v280_v26  ;;  %v286_v29 = vld [vmem:[%s3812_s8 + $0x168] sm:$0xff]  ;;  %283 = vst [vmem:[%s3817_s9 + $0xd8] sm:$0xff] %v282_v27  ;;  %v288_v30 = vld [vmem:[%s3812_s8 + $0x170] sm:$0xff] }
  0x20   : > { %285 = vst [vmem:[%s3817_s9 + $0xe0] sm:$0xff] %v284_v28  ;;  %287 = vst [vmem:[%s3817_s9 + $0xe8] sm:$0xff] %v286_v29  ;;  %v290_v31 = vld [vmem:[%s3812_s8 + $0x178] sm:$0xff] }
  0x21   : > { %289 = vst [vmem:[%s3817_s9 + $0xf0] sm:$0xff] %v288_v30  ;;  %291 = vst [vmem:[%s3817_s9 + $0xf8] sm:$0xff] %v290_v31 }
  0x22 PF: > { %297 = sbr.rel (!%p3794_p3) target bundleno = 54 (0x36), region = 43  ;;  %s299_s10 = sand.u32 (%p3794_p3), 1, %s3716_s19  }
  0x23   : > { %s3440_s11 = sshll.u32 (%p3794_p3), %s3724_s21, 7  ;;  %s3383_s12 = sshll.u32 (%p3794_p3), %s299_s10, 8 }
  0x24   : > { %s3887_s15 = scalar_lea.vmem (%p3794_p3), %s5878_s1, %s3440_s11  ;;  %s3892_s16 = scalar_lea.vmem (%p3794_p3), [#allocation3], %s3383_s12 }
  0x25   : > { %v318_v32 = vld [vmem:[%s3887_s15] sm:$0xff] (%p3794_p3)  ;;  %v320_v33 = vld [vmem:[%s3887_s15 + $0x8] sm:$0xff] (%p3794_p3)  ;;  %v322_v34 = vld [vmem:[%s3887_s15 + $0x10] sm:$0xff] (%p3794_p3) }
  0x26   : > { %319 = vst [vmem:[%s3892_s16] sm:$0xff] (%p3794_p3), %v318_v32  ;;  %321 = vst [vmem:[%s3892_s16 + $0x8] sm:$0xff] (%p3794_p3), %v320_v33  ;;  %v324_v35 = vld [vmem:[%s3887_s15 + $0x18] sm:$0xff] (%p3794_p3)  ;;  %v326_v36 = vld [vmem:[%s3887_s15 + $0x20] sm:$0xff] (%p3794_p3) }
  0x27   : > { %323 = vst [vmem:[%s3892_s16 + $0x10] sm:$0xff] (%p3794_p3), %v322_v34  ;;  %v328_v37 = vld [vmem:[%s3887_s15 + $0x28] sm:$0xff] (%p3794_p3)  ;;  %325 = vst [vmem:[%s3892_s16 + $0x18] sm:$0xff] (%p3794_p3), %v324_v35  ;;  %v330_v38 = vld [vmem:[%s3887_s15 + $0x30] sm:$0xff] (%p3794_p3) }
  0x28   : > { %327 = vst [vmem:[%s3892_s16 + $0x20] sm:$0xff] (%p3794_p3), %v326_v36  ;;  %329 = vst [vmem:[%s3892_s16 + $0x28] sm:$0xff] (%p3794_p3), %v328_v37  ;;  %v332_v39 = vld [vmem:[%s3887_s15 + $0x38] sm:$0xff] (%p3794_p3)  ;;  %v334_v40 = vld [vmem:[%s3887_s15 + $0x40] sm:$0xff] (%p3794_p3) }
  0x29   : > { %331 = vst [vmem:[%s3892_s16 + $0x30] sm:$0xff] %v330_v38  ;;  %333 = vst [vmem:[%s3892_s16 + $0x38] sm:$0xff] %v332_v39  ;;  %v336_v41 = vld [vmem:[%s3887_s15 + $0x48] sm:$0xff]  ;;  %v338_v42 = vld [vmem:[%s3887_s15 + $0x50] sm:$0xff] }
  0x2a   : > { %335 = vst [vmem:[%s3892_s16 + $0x40] sm:$0xff] %v334_v40  ;;  %v340_v43 = vld [vmem:[%s3887_s15 + $0x58] sm:$0xff]  ;;  %337 = vst [vmem:[%s3892_s16 + $0x48] sm:$0xff] %v336_v41  ;;  %v342_v44 = vld [vmem:[%s3887_s15 + $0x60] sm:$0xff] }
  0x2b   : > { %339 = vst [vmem:[%s3892_s16 + $0x50] sm:$0xff] %v338_v42  ;;  %341 = vst [vmem:[%s3892_s16 + $0x58] sm:$0xff] %v340_v43  ;;  %v344_v45 = vld [vmem:[%s3887_s15 + $0x68] sm:$0xff]  ;;  %v346_v46 = vld [vmem:[%s3887_s15 + $0x70] sm:$0xff] }
  0x2c   : > { %343 = vst [vmem:[%s3892_s16 + $0x60] sm:$0xff] %v342_v44  ;;  %345 = vst [vmem:[%s3892_s16 + $0x68] sm:$0xff] %v344_v45  ;;  %v348_v47 = vld [vmem:[%s3887_s15 + $0x78] sm:$0xff]  ;;  %v350_v48 = vld [vmem:[%s3887_s15 + $0x100] sm:$0xff] }
  0x2d   : > { %347 = vst [vmem:[%s3892_s16 + $0x70] sm:$0xff] %v346_v46  ;;  %v352_v49 = vld [vmem:[%s3887_s15 + $0x108] sm:$0xff]  ;;  %349 = vst [vmem:[%s3892_s16 + $0x78] sm:$0xff] %v348_v47  ;;  %v354_v50 = vld [vmem:[%s3887_s15 + $0x110] sm:$0xff] }
  0x2e   : > { %351 = vst [vmem:[%s3892_s16 + $0x80] sm:$0xff] %v350_v48  ;;  %353 = vst [vmem:[%s3892_s16 + $0x88] sm:$0xff] %v352_v49  ;;  %v356_v51 = vld [vmem:[%s3887_s15 + $0x118] sm:$0xff]  ;;  %v358_v52 = vld [vmem:[%s3887_s15 + $0x120] sm:$0xff] }
  0x2f   : > { %355 = vst [vmem:[%s3892_s16 + $0x90] sm:$0xff] %v354_v50  ;;  %357 = vst [vmem:[%s3892_s16 + $0x98] sm:$0xff] %v356_v51  ;;  %v360_v53 = vld [vmem:[%s3887_s15 + $0x128] sm:$0xff]  ;;  %v362_v54 = vld [vmem:[%s3887_s15 + $0x130] sm:$0xff] }
  0x30   : > { %359 = vst [vmem:[%s3892_s16 + $0xa0] sm:$0xff] %v358_v52  ;;  %v364_v55 = vld [vmem:[%s3887_s15 + $0x138] sm:$0xff]  ;;  %361 = vst [vmem:[%s3892_s16 + $0xa8] sm:$0xff] %v360_v53  ;;  %v366_v56 = vld [vmem:[%s3887_s15 + $0x140] sm:$0xff] }
  0x31   : > { %363 = vst [vmem:[%s3892_s16 + $0xb0] sm:$0xff] %v362_v54  ;;  %365 = vst [vmem:[%s3892_s16 + $0xb8] sm:$0xff] %v364_v55  ;;  %v368_v57 = vld [vmem:[%s3887_s15 + $0x148] sm:$0xff]  ;;  %v370_v58 = vld [vmem:[%s3887_s15 + $0x150] sm:$0xff] }
  0x32   : > { %367 = vst [vmem:[%s3892_s16 + $0xc0] sm:$0xff] %v366_v56  ;;  %369 = vst [vmem:[%s3892_s16 + $0xc8] sm:$0xff] %v368_v57  ;;  %v372_v59 = vld [vmem:[%s3887_s15 + $0x158] sm:$0xff]  ;;  %v374_v60 = vld [vmem:[%s3887_s15 + $0x160] sm:$0xff] }
  0x33   : > { %371 = vst [vmem:[%s3892_s16 + $0xd0] sm:$0xff] %v370_v58  ;;  %v376_v61 = vld [vmem:[%s3887_s15 + $0x168] sm:$0xff]  ;;  %373 = vst [vmem:[%s3892_s16 + $0xd8] sm:$0xff] %v372_v59  ;;  %v378_v62 = vld [vmem:[%s3887_s15 + $0x170] sm:$0xff] }
  0x34   : > { %375 = vst [vmem:[%s3892_s16 + $0xe0] sm:$0xff] %v374_v60  ;;  %377 = vst [vmem:[%s3892_s16 + $0xe8] sm:$0xff] %v376_v61  ;;  %v380_v63 = vld [vmem:[%s3887_s15 + $0x178] sm:$0xff] }
  0x35   : > { %379 = vst [vmem:[%s3892_s16 + $0xf0] sm:$0xff] %v378_v62  ;;  %381 = vst [vmem:[%s3892_s16 + $0xf8] sm:$0xff] %v380_v63 }
  0x36 PF: > { %387 = sbr.rel (!%p3794_p3) target bundleno = 74 (0x4a), region = 66  ;;  %s389_s17 = sand.u32 (%p3794_p3), 1, %s3716_s19  }
  0x37   : > { %s3441_s25 = sshll.u32 (%p3794_p3), %s3724_s21, 7  ;;  %s3386_s26 = sshll.u32 (%p3794_p3), %s389_s17, 8 }
  0x38   : > { %s3962_s30 = scalar_lea.vmem (%p3794_p3), %s5879_s2, %s3441_s25  ;;  %s3967_s24 = scalar_lea.vmem (%p3794_p3), [#allocation4], %s3386_s26 }
  0x39   : > { %v408_v0 = vld [vmem:[%s3962_s30] sm:$0xff] (%p3794_p3)  ;;  %v410_v1 = vld [vmem:[%s3962_s30 + $0x8] sm:$0xff] (%p3794_p3)  ;;  %v412_v2 = vld [vmem:[%s3962_s30 + $0x10] sm:$0xff] (%p3794_p3) }
  0x3a   : > { %409 = vst [vmem:[%s3967_s24] sm:$0xff] (%p3794_p3), %v408_v0  ;;  %411 = vst [vmem:[%s3967_s24 + $0x8] sm:$0xff] (%p3794_p3), %v410_v1  ;;  %v414_v3 = vld [vmem:[%s3962_s30 + $0x18] sm:$0xff] (%p3794_p3)  ;;  %v416_v4 = vld [vmem:[%s3962_s30 + $0x20] sm:$0xff] (%p3794_p3) }
  0x3b   : > { %413 = vst [vmem:[%s3967_s24 + $0x10] sm:$0xff] (%p3794_p3), %v412_v2  ;;  %v418_v5 = vld [vmem:[%s3962_s30 + $0x28] sm:$0xff] (%p3794_p3)  ;;  %415 = vst [vmem:[%s3967_s24 + $0x18] sm:$0xff] (%p3794_p3), %v414_v3  ;;  %v420_v6 = vld [vmem:[%s3962_s30 + $0x30] sm:$0xff] (%p3794_p3) }
  0x3c   : > { %417 = vst [vmem:[%s3967_s24 + $0x20] sm:$0xff] (%p3794_p3), %v416_v4  ;;  %419 = vst [vmem:[%s3967_s24 + $0x28] sm:$0xff] (%p3794_p3), %v418_v5  ;;  %v422_v7 = vld [vmem:[%s3962_s30 + $0x38] sm:$0xff] (%p3794_p3)  ;;  %v424_v8 = vld [vmem:[%s3962_s30 + $0x40] sm:$0xff] (%p3794_p3) }
  0x3d   : > { %421 = vst [vmem:[%s3967_s24 + $0x30] sm:$0xff] %v420_v6  ;;  %423 = vst [vmem:[%s3967_s24 + $0x38] sm:$0xff] %v422_v7  ;;  %v426_v9 = vld [vmem:[%s3962_s30 + $0x48] sm:$0xff]  ;;  %v428_v10 = vld [vmem:[%s3962_s30 + $0x50] sm:$0xff] }
  0x3e   : > { %425 = vst [vmem:[%s3967_s24 + $0x40] sm:$0xff] %v424_v8  ;;  %v430_v11 = vld [vmem:[%s3962_s30 + $0x58] sm:$0xff]  ;;  %427 = vst [vmem:[%s3967_s24 + $0x48] sm:$0xff] %v426_v9  ;;  %v432_v12 = vld [vmem:[%s3962_s30 + $0x60] sm:$0xff] }
  0x3f   : > { %429 = vst [vmem:[%s3967_s24 + $0x50] sm:$0xff] %v428_v10  ;;  %431 = vst [vmem:[%s3967_s24 + $0x58] sm:$0xff] %v430_v11  ;;  %v434_v13 = vld [vmem:[%s3962_s30 + $0x68] sm:$0xff]  ;;  %v436_v14 = vld [vmem:[%s3962_s30 + $0x70] sm:$0xff] }
  0x40   : > { %433 = vst [vmem:[%s3967_s24 + $0x60] sm:$0xff] %v432_v12  ;;  %435 = vst [vmem:[%s3967_s24 + $0x68] sm:$0xff] %v434_v13  ;;  %v438_v15 = vld [vmem:[%s3962_s30 + $0x78] sm:$0xff]  ;;  %v440_v16 = vld [vmem:[%s3962_s30 + $0x100] sm:$0xff] }
  0x41   : > { %437 = vst [vmem:[%s3967_s24 + $0x70] sm:$0xff] %v436_v14  ;;  %v442_v17 = vld [vmem:[%s3962_s30 + $0x108] sm:$0xff]  ;;  %439 = vst [vmem:[%s3967_s24 + $0x78] sm:$0xff] %v438_v15  ;;  %v444_v18 = vld [vmem:[%s3962_s30 + $0x110] sm:$0xff] }
  0x42   : > { %441 = vst [vmem:[%s3967_s24 + $0x80] sm:$0xff] %v440_v16  ;;  %443 = vst [vmem:[%s3967_s24 + $0x88] sm:$0xff] %v442_v17  ;;  %v446_v19 = vld [vmem:[%s3962_s30 + $0x118] sm:$0xff]  ;;  %v448_v20 = vld [vmem:[%s3962_s30 + $0x120] sm:$0xff] }
  0x43   : > { %445 = vst [vmem:[%s3967_s24 + $0x90] sm:$0xff] %v444_v18  ;;  %447 = vst [vmem:[%s3967_s24 + $0x98] sm:$0xff] %v446_v19  ;;  %v450_v21 = vld [vmem:[%s3962_s30 + $0x128] sm:$0xff]  ;;  %v452_v22 = vld [vmem:[%s3962_s30 + $0x130] sm:$0xff] }
  0x44   : > { %449 = vst [vmem:[%s3967_s24 + $0xa0] sm:$0xff] %v448_v20  ;;  %v454_v23 = vld [vmem:[%s3962_s30 + $0x138] sm:$0xff]  ;;  %451 = vst [vmem:[%s3967_s24 + $0xa8] sm:$0xff] %v450_v21  ;;  %v456_v24 = vld [vmem:[%s3962_s30 + $0x140] sm:$0xff] }
  0x45   : > { %453 = vst [vmem:[%s3967_s24 + $0xb0] sm:$0xff] %v452_v22  ;;  %455 = vst [vmem:[%s3967_s24 + $0xb8] sm:$0xff] %v454_v23  ;;  %v458_v25 = vld [vmem:[%s3962_s30 + $0x148] sm:$0xff]  ;;  %v460_v26 = vld [vmem:[%s3962_s30 + $0x150] sm:$0xff] }
  0x46   : > { %457 = vst [vmem:[%s3967_s24 + $0xc0] sm:$0xff] %v456_v24  ;;  %459 = vst [vmem:[%s3967_s24 + $0xc8] sm:$0xff] %v458_v25  ;;  %v462_v27 = vld [vmem:[%s3962_s30 + $0x158] sm:$0xff]  ;;  %v464_v28 = vld [vmem:[%s3962_s30 + $0x160] sm:$0xff] }
  0x47   : > { %461 = vst [vmem:[%s3967_s24 + $0xd0] sm:$0xff] %v460_v26  ;;  %v466_v29 = vld [vmem:[%s3962_s30 + $0x168] sm:$0xff]  ;;  %463 = vst [vmem:[%s3967_s24 + $0xd8] sm:$0xff] %v462_v27  ;;  %v468_v30 = vld [vmem:[%s3962_s30 + $0x170] sm:$0xff] }
  0x48   : > { %465 = vst [vmem:[%s3967_s24 + $0xe0] sm:$0xff] %v464_v28  ;;  %467 = vst [vmem:[%s3967_s24 + $0xe8] sm:$0xff] %v466_v29  ;;  %v470_v31 = vld [vmem:[%s3962_s30 + $0x178] sm:$0xff] }
  0x49   : > { %469 = vst [vmem:[%s3967_s24 + $0xf0] sm:$0xff] %v468_v30  ;;  %471 = vst [vmem:[%s3967_s24 + $0xf8] sm:$0xff] %v470_v31 }
  0x4a PF: > { %p3389_p6 = scmp.ge.s32.totalorder %s3728_s22, 1  ;;  %p476_p7 = scmp.lt.s32.totalorder %s3728_s22, 3 }
  0x4c   : > { %p477_p8 = pnand %p3389_p6, %p476_p7 }
  0x4e   : > { %480 = sbr.rel (%p477_p8) target bundleno = 506 (0x1fa), region = 89 }
  0x55   : > { %s483_s6 = sand.u32 1, %s3712_s18   ;;  %v673_v32 = vlaneseq  ;;  %v3730_v13 = vmov 0   ;;  %p546_p9 = scmp.lt.s32.totalorder %s3720_s20, 1  ;;  %v5883_v31 = vmov 0.0  }
  0x56   : > { %s3390_s7 = sshll.u32 %s483_s6, 8 }
  0x57   : > { %v4033_v33 = vshrl.u32 %v673_v32, 7  ;;  %s4035_s8 = scalar_lea.vmem [#allocation2], %s3390_s7  ;;  %s4038_s9 = scalar_lea.vmem [#allocation3], %s3390_s7 }
  0x58   : > { %v599_v34 = vld [vmem:[%s4035_s8] sm:$0xff]  ;;  %v600_v41 = vld [vmem:[%s4035_s8 + $0x8] sm:$0xff]  ;;  %v601_v47 = vld [vmem:[%s4035_s8 + $0x10] sm:$0xff]  ;;  %s4056_s18 = scalar_lea.vmem [#allocation4], %s3390_s7  ;;  %s6256_s20 = smov (!%p546_p9, %s3720_s20), 1 }
  0x59   : > { %6003 = vst [vmem:[#allocation5_spill] sm:$0xff] %v4033_v33  ;;  %v4041_v35 = vld [vmem:[%s4038_s9] sm:$0xff]  ;;  %v4044_v36 = vsub.s32 0, %v4033_v33  ;;  %v952_v37 = vmul.f32 %v599_v34, %v599_v34  ;;  %v1144_v38 = vmax.f32 %v599_v34, 1e-12  ;;  %v1304_v40 = vsub.f32 1.0, %v599_v34 }
  0x5a   : > { %v1272_v39 = vsub.f32 1.0, %v4041_v35  ;;  %v4049_v42 = vld [vmem:[%s4038_s9 + $0x8] sm:$0xff]  ;;  %v4052_v43 = vsub.s32 1, %v4033_v33  ;;  %v953_v44 = vmul.f32 %v600_v41, %v600_v41  ;;  %v1145_v45 = vmax.f32 %v600_v41, 1e-12  ;;  %v4065_v56 = vld [vmem:[%s4038_s9 + $0x10] sm:$0xff] }
  0x5b   : > { %6004 = vst [vmem:[#allocation6_spill] sm:$0xff] %v4044_v36  ;;  %v1273_v46 = vsub.f32 1.0, %v4049_v42  ;;  %v3397_v48 = vld [vmem:[%s4056_s18 + $0x83] ss:$8 sm:$0xf]  ;;  %3490 = vlog2.f32 %v1144_v38  ;;  %v954_v50 = vmul.f32 %v601_v47, %v601_v47  ;;  %v4060_v52 = vmul.f32 0.75, %v952_v37 }
  0x5c   : > { %6005 = vst [vmem:[#allocation7_spill] sm:$0xff] %v4052_v43  ;;  %v3398_v49 = vld [vmem:[%s4056_s18 + $0x83] ss:$8 sm:$0xf0]  ;;  %v1336_v53 = vmax.f32 %v1304_v40, 1e-12  ;;  %3492 = vlog2.f32 %v1145_v45 }
  0x5d   : > { %v666_v51 = vor.u32 %v3398_v49, %v3397_v48  ;;  %v4062_v54 = vmul.f32 0.75, %v953_v44  ;;  %v1305_v55 = vsub.f32 1.0, %v600_v41  ;;  %v4068_v57 = vsub.s32 2, %v4033_v33  ;;  %v602_v62 = vld [vmem:[%s4035_s8 + $0x18] sm:$0xff]  ;;  %v4144_v28 = vld [vmem:[%s4035_s8 + $0x20] sm:$0xff]  ;;  %s3442_s10 = sshll.u32 %s6256_s20, 8 }
  0x5e   : > { %v4070_v58 = vmul.f32 0.75, %v954_v50  ;;  %3494 = vlog2.f32 %v1336_v53  ;;  %v1146_v60 = vmax.f32 %v601_v47, 1e-12  ;;  %v1274_v61 = vsub.f32 1.0, %v4065_v56  ;;  %v4075_v1 = vld [vmem:[%s4038_s9 + $0x18] sm:$0xff]  ;;  %s4202_s13 = scalar_lea.vmem %s5880_s3, %s3442_s10  ;;  %v4582_v24 = vld [vmem:[%s4038_s9 + $0x88] sm:$0xff] }
  0x5f   : > { %6006 = vst [vmem:[#allocation8_spill] sm:$0xff] %v4068_v57  ;;  %v3443_v59 = vtrunc.f32 %v666_v51  ;;  %v1337_v63 = vmax.f32 %v1305_v55, 1e-12  ;;  %v1306_v0 = vsub.f32 1.0, %v601_v47  ;;  %v4078_v2 = vsub.s32 3, %v4033_v33  ;;  %v4594_v22 = vld [vmem:[%s4038_s9 + $0x90] sm:$0xff] }
  0x60   : > { %v955_v3 = vmul.f32 %v602_v62, %v602_v62  ;;  %3496 = vlog2.f32 %v1146_v60  ;;  %v1147_v5 = vmax.f32 %v602_v62, 1e-12  ;;  %v1275_v6 = vsub.f32 1.0, %v4075_v1  ;;  %s3395_s14 = sshll.u32 %s6256_s20, 4 }
  0x61   : > { %6007 = vst [vmem:[#allocation9_spill] sm:$0xff] %v4078_v2  ;;  %v4080_v4 = vcvt.f32.s32 %v3443_v59  ;;  %3498 = vlog2.f32 %v1337_v63  ;;  %v1338_v7 = vmax.f32 %v1306_v0, 1e-12  ;;  %v1307_v9 = vsub.f32 1.0, %v602_v62  ;;  %s5028_s17 = scalar_lea.vmem %s5882_s5, %s3395_s14  ;;  %s5652_s28 = scalar_lea.vmem %s5881_s4, %s3395_s14 }
  0x62   : > { %v4083_v8 = vmul.f32 0.75, %v955_v3  ;;  %v4147_v29 = vsub.s32 4, %v4033_v33  ;;  %v956_v38 = vmul.f32 %v4144_v28, %v4144_v28 }
  0x63   : > { %v4087_v10 = vrot.slane %v4080_v4, %v4044_v36  ;;  %vm772_vm0 = vcmp.lt.s32.totalorder %v4080_v4, 16  ;;  %v4092_v11 = vrot.slane %v4080_v4, %v4052_v43  ;;  %v4096_v12 = vrot.slane %v4080_v4, %v4068_v57 }
  0x64   : > { %v4099_v14 = vsel %vm772_vm0, 1, %v3730_v13  ;;  %3500 = vlog2.f32 %v1338_v7  ;;  %v4103_v15 = vrot.slane %v4080_v4, %v4078_v2  ;;  %v1339_v16 = vmax.f32 %v1307_v9, 1e-12  ;;  %6016 = vst [vmem:[#allocation10_spill] sm:$0xff] %v4147_v29 }
  0x65   : > { %vm740_vm1 = vcmp.eq.s32.totalorder %v4033_v33, %v4087_v10  ;;  %v779_v17 = vrot.slane %v4099_v14, %v4044_v36  ;;  %vm741_vm2 = vcmp.eq.s32.totalorder %v4033_v33, %v4092_v11  ;;  %v783_v18 = vrot.slane %v4099_v14, %v4052_v43  ;;  %v3491_v19 = vpop.eup %3490 }
  0x66   : > { %vm742_vm3 = vcmp.eq.s32.totalorder %v4033_v33, %v4096_v12  ;;  %v787_v20 = vrot.slane %v4099_v14, %v4068_v57  ;;  %vm743_vm4 = vcmp.eq.s32.totalorder %v4033_v33, %v4103_v15  ;;  %v791_v21 = vrot.slane %v4099_v14, %v4078_v2  ;;  %v3493_v25 = vpop.eup %3492 }
  0x67   : > { %vm4121_vm5 = vcmp.eq.s32.totalorder %v779_v17, 1  ;;  %v1177_v23 = vmul.f32 0.6931472, %v3491_v19  ;;  %vm4125_vm6 = vcmp.eq.s32.totalorder %v783_v18, 1  ;;  %3502 = vlog2.f32 %v1147_v5 }
  0x68   : > { %vm856_vm7 = vmand %vm740_vm1, %vm4121_vm5  ;;  %vm4135_vm8 = vcmp.eq.s32.totalorder %v787_v20, 1  ;;  %vm4139_vm9 = vcmp.eq.s32.totalorder %v791_v21, 1  ;;  %3504 = vlog2.f32 %v1339_v16  ;;  %v3495_v30 = vpop.eup %3494  ;;  %v1179_v37 = vmul.f32 0.6931472, %v3493_v25 }
  0x69   : > { %v3401_v32 = vsel %vm856_vm7, 1.0, %v5883_v31  ;;  %v1240_v34 = vmul.f32 %v1177_v23, %v4041_v35  ;;  %vm857_vm10 = vmand %vm741_vm2, %vm4125_vm6  ;;  %v1369_v44 = vmul.f32 0.6931472, %v3495_v30 }
  0x6a   : > { %v1016_v40 = vsub.f32 1.0, %v3401_v32  ;;  %v1080_v41 = vmul.f32 %v3401_v32, %v4041_v35  ;;  %v3402_v45 = vsel %vm857_vm10, 1.0, %v5883_v31  ;;  %vm858_vm11 = vmand %vm742_vm3, %vm4135_vm8  ;;  %v3497_v47 = vpop.eup %3496  ;;  %v1241_v50 = vmul.f32 %v1179_v37, %v4049_v42 }
  0x6b   : > { %v1017_v48 = vsub.f32 1.0, %v3402_v45  ;;  %v1081_v49 = vmul.f32 %v3402_v45, %v4049_v42  ;;  %v3403_v51 = vsel %vm858_vm11, 1.0, %v5883_v31  ;;  %vm859_vm12 = vmand %vm743_vm4, %vm4139_vm9  ;;  %v3499_v53 = vpop.eup %3498  ;;  %v1432_v59 = vmul.f32 %v1369_v44, %v1272_v39  ;;  %v4208_v45 = vld [vmem:[%s4038_s9 + $0x20] sm:$0xff] }
  0x6c   : > { %v1048_v55 = vmul.f32 %v1016_v40, %v4060_v52  ;;  %v1018_v60 = vsub.f32 1.0, %v3403_v51  ;;  %v1082_v62 = vmul.f32 %v3403_v51, %v4065_v56  ;;  %v1371_v0 = vmul.f32 0.6931472, %v3499_v53 }
  0x6d   : > { %v1049_v63 = vmul.f32 %v1017_v48, %v4062_v54  ;;  %v1181_v3 = vmul.f32 0.6931472, %v3497_v47  ;;  %v3404_v5 = vsel %vm859_vm12, 1.0, %v5883_v31  ;;  %v1464_v16 = vadd.f32 %v1432_v59, %v1240_v34 }
  0x6e   : > { %v3501_v7 = vpop.eup %3500  ;;  %v1112_v9 = vadd.f32 %v1080_v41, %v1048_v55  ;;  %v1050_v17 = vmul.f32 %v1018_v60, %v4070_v58  ;;  %v1019_v18 = vsub.f32 1.0, %v3404_v5  ;;  %v1433_v35 = vmul.f32 %v1371_v0, %v1273_v46  ;;  %v604_v0 = vld [vmem:[%s4035_s8 + $0x28] sm:$0xff] }
  0x6f   : > { %v1113_v52 = vadd.f32 %v1081_v49, %v1049_v63  ;;  %v1242_v39 = vmul.f32 %v1181_v3, %v4065_v56  ;;  %v1373_v19 = vmul.f32 0.6931472, %v3501_v7  ;;  %v1496_v20 = vsub.f32 0.0, %v1464_v16  ;;  %v4236_v16 = vld [vmem:[%s4038_s9 + $0x28] sm:$0xff] }
  0x70   : > { %v1114_v54 = vadd.f32 %v1082_v62, %v1050_v17  ;;  %v1051_v21 = vmul.f32 %v1019_v18, %v4083_v8  ;;  %v1083_v23 = vmul.f32 %v3404_v5, %v4075_v1  ;;  %v1465_v30 = vadd.f32 %v1433_v35, %v1241_v50 }
  0x71   : > { %v3503_v25 = vpop.eup %3502  ;;  %v1434_v58 = vmul.f32 %v1373_v19, %v1274_v61  ;;  %v4195_v42 = vrot.slane %v4080_v4, %v4147_v29  ;;  %v795_v46 = vrot.slane %v4099_v14, %v4147_v29  ;;  %v1560_v34 = vmul.f32 %v1496_v20, %v1112_v9 }
  0x72   : > { %v3505_v32 = vpop.eup %3504  ;;  %v1115_v37 = vadd.f32 %v1083_v23, %v1051_v21  ;;  %v1183_v40 = vmul.f32 0.6931472, %v3503_v25  ;;  %v988_v8 = vmul.f32 0.75, %v956_v38  ;;  %v1497_v56 = vsub.f32 0.0, %v1465_v30  ;;  %v605_v21 = vld [vmem:[%s4035_s8 + $0x30] sm:$0xff] }
  0x73   : > { %v1466_v61 = vadd.f32 %v1434_v58, %v1242_v39  ;;  %v1375_v41 = vmul.f32 0.6931472, %v3505_v32  ;;  %vm744_vm13 = vcmp.eq.s32.totalorder %v4033_v33, %v4195_v42  ;;  %vm4210_vm14 = vcmp.eq.s32.totalorder %v795_v46, 1  ;;  %1624 = vst [vmem:[%s4202_s13] sm:$0xff] %v1560_v34  ;;  %v4257_v32 = vld [vmem:[%s4038_s9 + $0x30] sm:$0xff] }
  0x74   : > { %v1243_v44 = vmul.f32 %v1183_v40, %v4075_v1  ;;  %v1148_v38 = vmax.f32 %v4144_v28, 1e-12  ;;  %v1561_v48 = vmul.f32 %v1497_v56, %v1113_v52  ;;  %vm860_vm15 = vmand %vm744_vm13, %vm4210_vm14  ;;  %v1276_v51 = vsub.f32 1.0, %v4208_v45 }
  0x75   : > { %v1498_v49 = vsub.f32 0.0, %v1466_v61  ;;  %v1435_v50 = vmul.f32 %v1375_v41, %v1275_v6  ;;  %v3405_v53 = vsel %vm860_vm15, 1.0, %v5883_v31  ;;  %v1308_v55 = vsub.f32 1.0, %v4144_v28 }
  0x76   : > { %3506 = vlog2.f32 %v1148_v38  ;;  %v4224_v59 = vsub.s32 5, %v4033_v33  ;;  %v1020_v1 = vsub.f32 1.0, %v3405_v53  ;;  %v1084_v6 = vmul.f32 %v3405_v53, %v4208_v45  ;;  %1625 = vst [vmem:[%s4202_s13 + $0x8] sm:$0xff] %v1561_v48 }
  0x77   : > { %v1562_v60 = vmul.f32 %v1498_v49, %v1114_v54  ;;  %v1467_v62 = vadd.f32 %v1435_v50, %v1243_v44  ;;  %v1340_v63 = vmax.f32 %v1308_v55, 1e-12  ;;  %v957_v9 = vmul.f32 %v604_v0, %v604_v0  ;;  %v606_v55 = vld [vmem:[%s4035_s8 + $0x38] sm:$0xff] }
  0x78   : > { %6019 = vst [vmem:[#allocation11_spill] sm:$0xff] %v4224_v59  ;;  %v4230_v3 = vrot.slane %v4080_v4, %v4224_v59  ;;  %v799_v5 = vrot.slane %v4099_v14, %v4224_v59  ;;  %v1052_v7 = vmul.f32 %v1020_v1, %v988_v8  ;;  %v1149_v18 = vmax.f32 %v604_v0, 1e-12 }
  0x79   : > { %v1499_v28 = vsub.f32 0.0, %v1467_v62  ;;  %3508 = vlog2.f32 %v1340_v63  ;;  %1626 = vst [vmem:[%s4202_s13 + $0x10] sm:$0xff] %v1562_v60  ;;  %v989_v39 = vmul.f32 0.75, %v957_v9  ;;  %v1277_v19 = vsub.f32 1.0, %v4236_v16 }
  0x7a   : > { %vm745_vm0 = vcmp.eq.s32.totalorder %v4033_v33, %v4230_v3  ;;  %vm4240_vm1 = vcmp.eq.s32.totalorder %v799_v5, 1  ;;  %v4245_v35 = vadd.f32 %v1084_v6, %v1052_v7  ;;  %3510 = vlog2.f32 %v1149_v18  ;;  %v3399_v63 = vld [vmem:[%s4056_s18 + $0xc3] ss:$8 sm:$0xf] }
  0x7b   : > { %v1563_v52 = vmul.f32 %v1499_v28, %v1115_v37  ;;  %vm861_vm2 = vmand %vm745_vm0, %vm4240_vm1  ;;  %v1309_v54 = vsub.f32 1.0, %v604_v0  ;;  %v4253_v23 = vsub.s32 6, %v4033_v33  ;;  %v958_v58 = vmul.f32 %v605_v21, %v605_v21  ;;  %v3400_v7 = vld [vmem:[%s4056_s18 + $0xc3] ss:$8 sm:$0xf0] }
  0x7c   : > { %v3406_v20 = vsel %vm861_vm2, 1.0, %v5883_v31  ;;  %v1150_v40 = vmax.f32 %v605_v21, 1e-12  ;;  %v1278_v61 = vsub.f32 1.0, %v4257_v32  ;;  %v1310_v41 = vsub.f32 1.0, %v605_v21  ;;  %v4293_v18 = vld [vmem:[%s4038_s9 + $0x38] sm:$0xff] }
  0x7d   : > { %6022 = vst [vmem:[#allocation12_spill] sm:$0xff] %v4253_v23  ;;  %v1021_v25 = vsub.f32 1.0, %v3406_v20  ;;  %v1085_v30 = vmul.f32 %v3406_v20, %v4236_v16  ;;  %v1341_v46 = vmax.f32 %v1309_v54, 1e-12  ;;  %v4261_v34 = vrot.slane %v4080_v4, %v4253_v23  ;;  %1627 = vst [vmem:[%s4202_s13 + $0x18] sm:$0xff] %v1563_v52 }
  0x7e   : > { %v803_v37 = vrot.slane %v4099_v14, %v4253_v23  ;;  %v990_v56 = vmul.f32 0.75, %v958_v58  ;;  %v4274_v48 = vsub.s32 7, %v4033_v33  ;;  %v1342_v53 = vmax.f32 %v1310_v41, 1e-12 }
  0x7f   : > { %v1053_v8 = vmul.f32 %v1021_v25, %v989_v39  ;;  %3512 = vlog2.f32 %v1341_v46  ;;  %vm746_vm3 = vcmp.eq.s32.totalorder %v4033_v33, %v4261_v34  ;;  %v959_v6 = vmul.f32 %v606_v55, %v606_v55  ;;  %v607_v25 = vld [vmem:[%s4035_s8 + $0x40] sm:$0xff] }
  0x80   : > { %v3507_v44 = vpop.eup %3506  ;;  %vm4269_vm4 = vcmp.eq.s32.totalorder %v803_v37, 1  ;;  %6025 = vst [vmem:[#allocation13_spill] sm:$0xff] %v4274_v48  ;;  %3514 = vlog2.f32 %v1150_v40  ;;  %v4284_v62 = vrot.slane %v4080_v4, %v4274_v48  ;;  %v807_v1 = vrot.slane %v4099_v14, %v4274_v48 }
  0x81   : > { %v1185_v49 = vmul.f32 0.6931472, %v3507_v44  ;;  %v4276_v50 = vadd.f32 %v1085_v30, %v1053_v8  ;;  %vm862_vm7 = vmand %vm746_vm3, %vm4269_vm4  ;;  %3516 = vlog2.f32 %v1342_v53  ;;  %v991_v14 = vmul.f32 0.75, %v959_v6 }
  0x82   : > { %v3407_v60 = vsel %vm862_vm7, 1.0, %v5883_v31  ;;  %vm747_vm10 = vcmp.eq.s32.totalorder %v4033_v33, %v4284_v62  ;;  %vm4297_vm11 = vcmp.eq.s32.totalorder %v807_v1, 1  ;;  %v1151_v52 = vmax.f32 %v606_v55, 1e-12 }
  0x83   : > { %v1244_v0 = vmul.f32 %v1185_v49, %v4208_v45  ;;  %v1022_v5 = vsub.f32 1.0, %v3407_v60  ;;  %v1086_v28 = vmul.f32 %v3407_v60, %v4257_v32  ;;  %v3509_v9 = vpop.eup %3508  ;;  %vm863_vm12 = vmand %vm747_vm10, %vm4297_vm11  ;;  %v1279_v54 = vsub.f32 1.0, %v4293_v18 }
  0x84   : > { %v1377_v39 = vmul.f32 0.6931472, %v3509_v9  ;;  %v1311_v21 = vsub.f32 1.0, %v606_v55  ;;  %v3511_v30 = vpop.eup %3510  ;;  %v3408_v58 = vsel %vm863_vm12, 1.0, %v5883_v31  ;;  %3518 = vlog2.f32 %v1151_v52 }
  0x85   : > { %v1054_v20 = vmul.f32 %v1022_v5, %v990_v56  ;;  %v670_v46 = vor.u32 %v3400_v7, %v3399_v63  ;;  %v960_v37 = vmul.f32 %v607_v25, %v607_v25  ;;  %v1187_v8 = vmul.f32 0.6931472, %v3511_v30  ;;  %v4313_v5 = vld [vmem:[%s4038_s9 + $0x40] sm:$0xff] }
  0x86   : > { %v1436_v40 = vmul.f32 %v1377_v39, %v1276_v51  ;;  %v1023_v56 = vsub.f32 1.0, %v3408_v58  ;;  %v1087_v44 = vmul.f32 %v3408_v58, %v4293_v18  ;;  %v1343_v49 = vmax.f32 %v1311_v21, 1e-12 }
  0x87   : > { %v4308_v41 = vadd.f32 %v1086_v28, %v1054_v20  ;;  %v3445_v53 = vtrunc.f32 %v670_v46  ;;  %v992_v55 = vmul.f32 0.75, %v960_v37  ;;  %v1245_v1 = vmul.f32 %v1187_v8, %v4236_v16 }
  0x88   : > { %v1468_v60 = vadd.f32 %v1436_v40, %v1244_v0  ;;  %v1055_v6 = vmul.f32 %v1023_v56, %v991_v14  ;;  %v1152_v63 = vmax.f32 %v607_v25, 1e-12  ;;  %3520 = vlog2.f32 %v1343_v49 }
  0x89   : > { %v3513_v7 = vpop.eup %3512  ;;  %v4315_v9 = vcvt.f32.s32 %v3445_v53  ;;  %v1280_v51 = vsub.f32 1.0, %v4313_v5  ;;  %v1312_v28 = vsub.f32 1.0, %v607_v25 }
  0x8a   : > { %v3515_v52 = vpop.eup %3514  ;;  %v1500_v39 = vsub.f32 0.0, %v1468_v60  ;;  %v1379_v20 = vmul.f32 0.6931472, %v3513_v7  ;;  %v4318_v21 = vadd.f32 %v1087_v44, %v1055_v6  ;;  %3522 = vlog2.f32 %v1152_v63  ;;  %v4350_v60 = vld [vmem:[%s4038_s9 + $0x48] sm:$0xff] }
  0x8b   : > { %v1189_v0 = vmul.f32 0.6931472, %v3515_v52  ;;  %v4322_v14 = vrot.slane %v4315_v9, %v4044_v36  ;;  %vm773_vm13 = vcmp.lt.s32.totalorder %v4315_v9, 16  ;;  %v1344_v30 = vmax.f32 %v1312_v28, 1e-12  ;;  %v3517_v58 = vpop.eup %3516 }
  0x8c   : > { %v1564_v46 = vmul.f32 %v1500_v39, %v4245_v35  ;;  %v1437_v25 = vmul.f32 %v1379_v20, %v1277_v19  ;;  %v4329_v37 = vsel %vm773_vm13, 1, %v3730_v13  ;;  %v4333_v40 = vrot.slane %v4315_v9, %v4052_v43  ;;  %v608_v19 = vld [vmem:[%s4035_s8 + $0x48] sm:$0xff] }
  0x8d   : > { %v1246_v8 = vmul.f32 %v1189_v0, %v4257_v32  ;;  %v1381_v56 = vmul.f32 0.6931472, %v3517_v58  ;;  %vm748_vm15 = vcmp.eq.s32.totalorder %v4033_v33, %v4322_v14  ;;  %v811_v35 = vrot.slane %v4329_v37, %v4044_v36 }
  0x8e   : > { %v1469_v44 = vadd.f32 %v1437_v25, %v1245_v1  ;;  %3524 = vlog2.f32 %v1344_v30  ;;  %vm749_vm0 = vcmp.eq.s32.totalorder %v4033_v33, %v4333_v40  ;;  %v3519_v13 = vpop.eup %3518  ;;  %v815_v6 = vrot.slane %v4329_v37, %v4052_v43  ;;  %1628 = vst [vmem:[%s4202_s13 + $0x20] sm:$0xff] %v1564_v46  ;;  %v613_v43 = vld [vmem:[%s4035_s8 + $0x70] sm:$0xff] }
  0x8f   : > { %v1438_v49 = vmul.f32 %v1381_v56, %v1278_v61  ;;  %vm4345_vm2 = vcmp.eq.s32.totalorder %v811_v35, 1  ;;  %v961_v63 = vmul.f32 %v608_v19, %v608_v19  ;;  %v1191_v7 = vmul.f32 0.6931472, %v3519_v13 }
  0x90   : > { %v1501_v1 = vsub.f32 0.0, %v1469_v44  ;;  %vm864_vm3 = vmand %vm748_vm15, %vm4345_vm2  ;;  %v1153_v32 = vmax.f32 %v608_v19, 1e-12  ;;  %v1281_v61 = vsub.f32 1.0, %v4350_v60  ;;  %vm4362_vm7 = vcmp.eq.s32.totalorder %v815_v6, 1 }
  0x91   : > { %v1470_v28 = vadd.f32 %v1438_v49, %v1246_v8  ;;  %v3409_v52 = vsel %vm864_vm3, 1.0, %v5883_v31  ;;  %v993_v20 = vmul.f32 0.75, %v961_v63  ;;  %v1247_v30 = vmul.f32 %v1191_v7, %v4293_v18  ;;  %vm865_vm10 = vmand %vm749_vm0, %vm4362_vm7 }
  0x92   : > { %v1565_v0 = vmul.f32 %v1501_v1, %v4276_v50  ;;  %v1024_v58 = vsub.f32 1.0, %v3409_v52  ;;  %v1088_v46 = vmul.f32 %v3409_v52, %v4313_v5  ;;  %v3521_v25 = vpop.eup %3520  ;;  %v3410_v56 = vsel %vm865_vm10, 1.0, %v5883_v31 }
  0x93   : > { %v1502_v8 = vsub.f32 0.0, %v1470_v28  ;;  %3526 = vlog2.f32 %v1153_v32  ;;  %v1313_v35 = vsub.f32 1.0, %v608_v19  ;;  %v1383_v44 = vmul.f32 0.6931472, %v3521_v25 }
  0x94   : > { %v3523_v50 = vpop.eup %3522  ;;  %v1056_v13 = vmul.f32 %v1024_v58, %v992_v55  ;;  %v1025_v49 = vsub.f32 1.0, %v3410_v56  ;;  %v1089_v1 = vmul.f32 %v3410_v56, %v4350_v60  ;;  %1629 = vst [vmem:[%s4202_s13 + $0x28] sm:$0xff] %v1565_v0  ;;  %v4382_v19 = vrot.slane %v4315_v9, %v4068_v57  ;;  %v4391_v0 = vld [vmem:[%s4038_s9 + $0x50] sm:$0xff] }
  0x95   : > { %v1566_v6 = vmul.f32 %v1502_v8, %v4308_v41  ;;  %v1193_v63 = vmul.f32 0.6931472, %v3523_v50  ;;  %v1345_v7 = vmax.f32 %v1313_v35, 1e-12  ;;  %v1439_v28 = vmul.f32 %v1383_v44, %v1279_v54  ;;  %v609_v41 = vld [vmem:[%s4035_s8 + $0x50] sm:$0xff] }
  0x96   : > { %v1120_v52 = vadd.f32 %v1088_v46, %v1056_v13  ;;  %v1057_v32 = vmul.f32 %v1025_v49, %v993_v20  ;;  %v819_v58 = vrot.slane %v4329_v37, %v4068_v57  ;;  %vm750_vm12 = vcmp.eq.s32.totalorder %v4033_v33, %v4382_v19 }
  0x97   : > { %v1248_v55 = vmul.f32 %v1193_v63, %v4313_v5  ;;  %3528 = vlog2.f32 %v1345_v7  ;;  %v1471_v8 = vadd.f32 %v1439_v28, %v1247_v30  ;;  %v962_v18 = vmul.f32 %v609_v41, %v609_v41  ;;  %1630 = vst [vmem:[%s4202_s13 + $0x30] sm:$0xff] %v1566_v6 }
  0x98   : > { %v3525_v25 = vpop.eup %3524  ;;  %v4388_v56 = vadd.f32 %v1089_v1, %v1057_v32  ;;  %vm4396_vm13 = vcmp.eq.s32.totalorder %v819_v58, 1  ;;  %v1154_v46 = vmax.f32 %v609_v41, 1e-12  ;;  %v1314_v44 = vsub.f32 1.0, %v609_v41  ;;  %v610_v41 = vld [vmem:[%s4035_s8 + $0x58] sm:$0xff] }
  0x99   : > { %v1385_v54 = vmul.f32 0.6931472, %v3525_v25  ;;  %v1503_v50 = vsub.f32 0.0, %v1471_v8  ;;  %vm866_vm15 = vmand %vm750_vm12, %vm4396_vm13  ;;  %v994_v30 = vmul.f32 0.75, %v962_v18  ;;  %v4405_v13 = vrot.slane %v4315_v9, %v4078_v2 }
  0x9a   : > { %v3411_v6 = vsel %vm866_vm15, 1.0, %v5883_v31  ;;  %3530 = vlog2.f32 %v1154_v46  ;;  %v823_v63 = vrot.slane %v4329_v37, %v4078_v2  ;;  %v1346_v32 = vmax.f32 %v1314_v44, 1e-12 }
  0x9b   : > { %v1440_v49 = vmul.f32 %v1385_v54, %v1280_v51  ;;  %v1567_v1 = vmul.f32 %v1503_v50, %v4318_v21  ;;  %v1026_v7 = vsub.f32 1.0, %v3411_v6  ;;  %v1090_v28 = vmul.f32 %v3411_v6, %v4391_v0  ;;  %v4424_v54 = vld [vmem:[%s4038_s9 + $0x58] sm:$0xff] }
  0x9c   : > { %vm751_vm0 = vcmp.eq.s32.totalorder %v4033_v33, %v4405_v13  ;;  %vm4417_vm3 = vcmp.eq.s32.totalorder %v823_v63, 1  ;;  %v963_v51 = vmul.f32 %v610_v41, %v610_v41  ;;  %3532 = vlog2.f32 %v1346_v32  ;;  %v612_v32 = vld [vmem:[%s4035_s8 + $0x68] sm:$0xff] }
  0x9d   : > { %v3527_v58 = vpop.eup %3526  ;;  %v1472_v25 = vadd.f32 %v1440_v49, %v1248_v55  ;;  %v1058_v18 = vmul.f32 %v1026_v7, %v994_v30  ;;  %vm867_vm10 = vmand %vm751_vm0, %vm4417_vm3  ;;  %v1155_v50 = vmax.f32 %v610_v41, 1e-12  ;;  %1631 = vst [vmem:[%s4202_s13 + $0x38] sm:$0xff] %v1567_v1  ;;  %v4436_v1 = vrot.slane %v4315_v9, %v4147_v29 }
  0x9e   : > { %v1195_v8 = vmul.f32 0.6931472, %v3527_v58  ;;  %v3412_v55 = vsel %vm867_vm10, 1.0, %v5883_v31  ;;  %v995_v46 = vmul.f32 0.75, %v963_v51  ;;  %v1315_v58 = vsub.f32 1.0, %v610_v41  ;;  %v611_v51 = vld [vmem:[%s4035_s8 + $0x60] sm:$0xff] }
  0x9f   : > { %v1504_v21 = vsub.f32 0.0, %v1472_v25  ;;  %v4429_v49 = vadd.f32 %v1090_v28, %v1058_v18  ;;  %v1027_v6 = vsub.f32 1.0, %v3412_v55  ;;  %v1091_v30 = vmul.f32 %v3412_v55, %v4424_v54 }
  0xa0   : > { %v1249_v44 = vmul.f32 %v1195_v8, %v4350_v60  ;;  %3534 = vlog2.f32 %v1155_v50  ;;  %v827_v28 = vrot.slane %v4329_v37, %v4147_v29  ;;  %v1347_v8 = vmax.f32 %v1315_v58, 1e-12  ;;  %v4445_v50 = vld [vmem:[%s4038_s9 + $0x60] sm:$0xff] }
  0xa1   : > { %v3529_v63 = vpop.eup %3528  ;;  %v1568_v7 = vmul.f32 %v1504_v21, %v1120_v52  ;;  %v1059_v35 = vmul.f32 %v1027_v6, %v995_v46  ;;  %v964_v18 = vmul.f32 %v611_v51, %v611_v51  ;;  %v1156_v55 = vmax.f32 %v611_v51, 1e-12 }
  0xa2   : > { %v1387_v25 = vmul.f32 0.6931472, %v3529_v63  ;;  %vm752_vm12 = vcmp.eq.s32.totalorder %v4033_v33, %v4436_v1  ;;  %vm4449_vm15 = vcmp.eq.s32.totalorder %v827_v28, 1  ;;  %3536 = vlog2.f32 %v1347_v8 }
  0xa3   : > { %v4442_v21 = vadd.f32 %v1091_v30, %v1059_v35  ;;  %1632 = vst [vmem:[%s4202_s13 + $0x40] sm:$0xff] %v1568_v7  ;;  %vm868_vm0 = vmand %vm752_vm12, %vm4449_vm15  ;;  %v996_v60 = vmul.f32 0.75, %v964_v18  ;;  %v1316_v35 = vsub.f32 1.0, %v611_v51  ;;  %3538 = vlog2.f32 %v1156_v55 }
  0xa4   : > { %v1441_v52 = vmul.f32 %v1387_v25, %v1281_v61  ;;  %v3531_v46 = vpop.eup %3530  ;;  %v3413_v63 = vsel %vm868_vm0, 1.0, %v5883_v31  ;;  %v4462_v7 = vrot.slane %v4315_v9, %v4224_v59  ;;  %v965_v51 = vmul.f32 %v612_v32, %v612_v32 }
  0xa5   : > { %v1197_v30 = vmul.f32 0.6931472, %v3531_v46  ;;  %v1028_v58 = vsub.f32 1.0, %v3413_v63  ;;  %v1092_v25 = vmul.f32 %v3413_v63, %v4445_v50  ;;  %v1348_v28 = vmax.f32 %v1316_v35, 1e-12  ;;  %v4471_v35 = vld [vmem:[%s4038_s9 + $0x68] sm:$0xff] }
  0xa6   : > { %v1473_v6 = vadd.f32 %v1441_v52, %v1249_v44  ;;  %v3533_v8 = vpop.eup %3532  ;;  %v831_v44 = vrot.slane %v4329_v37, %v4224_v59  ;;  %vm753_vm10 = vcmp.eq.s32.totalorder %v4033_v33, %v4462_v7  ;;  %v6038_v63 = vmov 0 }
  0xa7   : > { %v1250_v61 = vmul.f32 %v1197_v30, %v4391_v0  ;;  %v1389_v52 = vmul.f32 0.6931472, %v3533_v8  ;;  %v1060_v55 = vmul.f32 %v1028_v58, %v996_v60  ;;  %3540 = vlog2.f32 %v1348_v28 }
  0xa8   : > { %v1505_v18 = vsub.f32 0.0, %v1473_v6  ;;  %vm4473_vm12 = vcmp.eq.s32.totalorder %v831_v44, 1  ;;  %v997_v6 = vmul.f32 0.75, %v965_v51  ;;  %v1157_v30 = vmax.f32 %v612_v32, 1e-12 }
  0xa9   : > { %v6039_v63 = vsel %vm4473_vm12, 4294967295, %v6038_v63  ;;  %v6040_v8 = vsub.f32 1.0, %v4391_v0  ;;  %v4479_v58 = vadd.f32 %v1092_v25, %v1060_v55  ;;  %vm869_vm0 = vmand %vm753_vm10, %vm4473_vm12  ;;  %v1317_v28 = vsub.f32 1.0, %v612_v32 }
  0xaa   : > { %v1569_v46 = vmul.f32 %v1505_v18, %v4388_v56  ;;  %v3535_v31 = vpop.eup %3534  ;;  %v6041_v44 = vmov 0.0   ;;  %3542 = vlog2.f32 %v1157_v30  ;;  %v966_v32 = vmul.f32 %v613_v43, %v613_v43 }
  0xab   : > { %v1442_v60 = vmul.f32 %v1389_v52, %v6040_v8  ;;  %v1199_v18 = vmul.f32 0.6931472, %v3535_v31  ;;  %v3414_v59 = vsel %vm869_vm0, 1.0, %v6041_v44  ;;  %v1349_v57 = vmax.f32 %v1317_v28, 1e-12 }
  0xac   : > { %v1029_v51 = vsub.f32 1.0, %v3414_v59  ;;  %v1093_v2 = vmul.f32 %v3414_v59, %v4471_v35  ;;  %1633 = vst [vmem:[%s4202_s13 + $0x48] sm:$0xff] %v1569_v46  ;;  %v4491_v52 = vrot.slane %v4315_v9, %v4253_v23  ;;  %v835_v31 = vrot.slane %v4329_v37, %v4253_v23  ;;  %v3537_v55 = vpop.eup %3536 }
  0xad   : > { %v1474_v29 = vadd.f32 %v1442_v60, %v1250_v61  ;;  %v1251_v25 = vmul.f32 %v1199_v18, %v4424_v54  ;;  %3544 = vlog2.f32 %v1349_v57  ;;  %v1158_v8 = vmax.f32 %v613_v43, 1e-12  ;;  %v3539_v59 = vpop.eup %3538 }
  0xae   : > { %6042 = vst [vmem:[#allocation14_spill] sm:$0xff] %v4491_v52  ;;  %v1061_v61 = vmul.f32 %v1029_v51, %v997_v6  ;;  %v1391_v60 = vmul.f32 0.6931472, %v3537_v55  ;;  %vm754_vm10 = vcmp.eq.s32.totalorder %v4033_v33, %v4491_v52  ;;  %vm4497_vm0 = vcmp.eq.s32.totalorder %v835_v31, 1 }
  0xaf   : > { %v1506_v30 = vsub.f32 0.0, %v1474_v29  ;;  %v6043_v46 = vmov 0  ;;  %v998_v28 = vmul.f32 0.75, %v966_v32  ;;  %v1201_v56 = vmul.f32 0.6931472, %v3539_v59  ;;  %v4505_v29 = vld [vmem:[%s4038_s9 + $0x70] sm:$0xff]  ;;  %vm870_vm12 = vmand %vm754_vm10, %vm4497_vm0 }
  0xb0   : > { %v6044_v46 = vsel %vm4497_vm0, 4294967295, %v6043_v46  ;;  %v4502_v23 = vadd.f32 %v1093_v2, %v1061_v61  ;;  %3546 = vlog2.f32 %v1158_v8  ;;  %v6046_v57 = vsub.f32 1.0, %v4424_v54 }
  0xb1   : > { %6045 = vst [vmem:[#allocation15_spill] sm:$0xff] %v6044_v46  ;;  %v1570_v18 = vmul.f32 %v1506_v30, %v4429_v49  ;;  %v3415_v51 = vsel %vm870_vm12, 1.0, %v6041_v44  ;;  %v1318_v32 = vsub.f32 1.0, %v613_v43  ;;  %v3541_v49 = vpop.eup %3540  ;;  %v1252_v55 = vmul.f32 %v1201_v56, %v4445_v50  ;;  %v614_v46 = vld [vmem:[%s4035_s8 + $0x78] sm:$0xff] }
  0xb2   : > { %v1443_v6 = vmul.f32 %v1391_v60, %v6046_v57  ;;  %v1030_v2 = vsub.f32 1.0, %v3415_v51  ;;  %v1094_v30 = vmul.f32 %v3415_v51, %v4505_v29  ;;  %v1393_v59 = vmul.f32 0.6931472, %v3541_v49 }
  0xb3   : > { %v1350_v36 = vmax.f32 %v1318_v32, 1e-12  ;;  %v4518_v8 = vrot.slane %v4315_v9, %v4274_v48  ;;  %1634 = vst [vmem:[%s4202_s13 + $0x50] sm:$0xff] %v1570_v18  ;;  %v839_v43 = vrot.slane %v4329_v37, %v4274_v48  ;;  %v967_v57 = vmul.f32 %v614_v46, %v614_v46  ;;  %v4530_v9 = vld [vmem:[%s4038_s9 + $0x78] sm:$0xff] }
  0xb4   : > { %v1475_v61 = vadd.f32 %v1443_v6, %v1251_v25  ;;  %v1062_v60 = vmul.f32 %v1030_v2, %v998_v28  ;;  %v1159_v31 = vmax.f32 %v614_v46, 1e-12  ;;  %v3543_v56 = vpop.eup %3542  ;;  %v6047_v51 = vsub.f32 1.0, %v4445_v50 }
  0xb5   : > { %3548 = vlog2.f32 %v1350_v36  ;;  %vm755_vm12 = vcmp.eq.s32.totalorder %v4033_v33, %v4518_v8  ;;  %v1203_v6 = vmul.f32 0.6931472, %v3543_v56  ;;  %vm4532_vm10 = vcmp.eq.s32.totalorder %v839_v43, 1 }
  0xb6   : > { %v1507_v52 = vsub.f32 0.0, %v1475_v61  ;;  %v1444_v25 = vmul.f32 %v1393_v59, %v6047_v51  ;;  %v4527_v32 = vadd.f32 %v1094_v30, %v1062_v60  ;;  %v999_v37 = vmul.f32 0.75, %v967_v57  ;;  %vm871_vm0 = vmand %vm755_vm12, %vm4532_vm10 }
  0xb7   : > { %3550 = vlog2.f32 %v1159_v31  ;;  %v3545_v2 = vpop.eup %3544  ;;  %v1253_v30 = vmul.f32 %v1203_v6, %v4471_v35  ;;  %v3416_v61 = vsel %vm871_vm0, 1.0, %v6041_v44  ;;  %v1319_v59 = vsub.f32 1.0, %v614_v46 }
  0xb8   : > { %v1571_v18 = vmul.f32 %v1507_v52, %v4442_v21  ;;  %v1476_v49 = vadd.f32 %v1444_v25, %v1252_v55  ;;  %v4543_v60 = vadd.s32 8, %v4033_v33  ;;  %v1395_v21 = vmul.f32 0.6931472, %v3545_v2  ;;  %v615_v55 = vld [vmem:[%s4035_s8 + $0x80] sm:$0xff]  ;;  %v3685_v33 = vld [vmem:[%s4038_s9 + $0x18] sm:$0xff] }
  0xb9   : > { %v1031_v52 = vsub.f32 1.0, %v3416_v61  ;;  %v1095_v31 = vmul.f32 %v3416_v61, %v4530_v9  ;;  %v1351_v56 = vmax.f32 %v1319_v59, 1e-12  ;;  %v968_v51 = vmul.f32 %v615_v55, %v615_v55  ;;  %v4556_v2 = vld [vmem:[%s4038_s9 + $0x80] sm:$0xff] }
  0xba   : > { %v1508_v43 = vsub.f32 0.0, %v1476_v49  ;;  %v3547_v57 = vpop.eup %3546  ;;  %vm756_vm12 = vcmp.eq.s32.totalorder %v4543_v60, %v4087_v10  ;;  %1635 = vst [vmem:[%s4202_s13 + $0x58] sm:$0xff] %v1571_v18  ;;  %v6050_v46 = vsub.f32 1.0, %v4471_v35  ;;  %v1160_v18 = vmax.f32 %v615_v55, 1e-12 }
  0xbb   : > { %v1205_v36 = vmul.f32 0.6931472, %v3547_v57  ;;  %v1063_v49 = vmul.f32 %v1031_v52, %v999_v37  ;;  %vm872_vm0 = vmand %vm756_vm12, %vm4121_vm5  ;;  %3552 = vlog2.f32 %v1351_v56  ;;  %v1000_v10 = vmul.f32 0.75, %v968_v51 }
  0xbc   : > { %v1572_v25 = vmul.f32 %v1508_v43, %v4479_v58  ;;  %v1445_v6 = vmul.f32 %v1395_v21, %v6050_v46  ;;  %v3417_v61 = vsel %vm872_vm0, 1.0, %v6041_v44  ;;  %3554 = vlog2.f32 %v1160_v18  ;;  %v3682_v46 = vld [vmem:[%s4038_s9] sm:$0xff] }
  0xbd   : > { %v1254_v58 = vmul.f32 %v1205_v36, %v4505_v29  ;;  %v4560_v43 = vadd.f32 %v1095_v31, %v1063_v49  ;;  %v1032_v21 = vsub.f32 1.0, %v3417_v61  ;;  %v1096_v37 = vmul.f32 %v3417_v61, %v4556_v2 }
  0xbe   : > { %v1477_v59 = vadd.f32 %v1445_v6, %v1253_v30  ;;  %1636 = vst [vmem:[%s4202_s13 + $0x60] sm:$0xff] %v1572_v25  ;;  %v1320_v56 = vsub.f32 1.0, %v615_v55  ;;  %v4567_v48 = vadd.f32 %v3682_v46, %v4556_v2  ;;  %v616_v30 = vld [vmem:[%s4035_s8 + $0x88] sm:$0xff]  ;;  %vm757_vm5 = vcmp.eq.s32.totalorder %v4543_v60, %v4092_v11 }
  0xbf   : > { %v3549_v52 = vpop.eup %3548  ;;  %v1064_v31 = vmul.f32 %v1032_v21, %v1000_v10  ;;  %vm873_vm12 = vmand %vm757_vm5, %vm4125_vm6  ;;  %v969_v51 = vmul.f32 %v616_v30, %v616_v30  ;;  %v1161_v6 = vmax.f32 %v616_v30, 1e-12  ;;  %vm758_vm6 = vcmp.eq.s32.totalorder %v4543_v60, %v4096_v12 }
  0xc0   : > { %v1509_v57 = vsub.f32 0.0, %v1477_v59  ;;  %v1397_v36 = vmul.f32 0.6931472, %v3549_v52  ;;  %v1352_v55 = vmax.f32 %v1320_v56, 1e-12  ;;  %v3418_v18 = vsel %vm873_vm12, 1.0, %v6041_v44  ;;  %vm874_vm0 = vmand %vm758_vm6, %vm4135_vm8 }
  0xc1   : > { %v3551_v49 = vpop.eup %3550  ;;  %v6051_v59 = vsub.f32 1.0, %v4505_v29  ;;  %v4579_v10 = vadd.f32 %v1096_v37, %v1064_v31  ;;  %v1001_v21 = vmul.f32 0.75, %v969_v51  ;;  %v617_v31 = vld [vmem:[%s4035_s8 + $0x90] sm:$0xff]  ;;  %vm759_vm8 = vcmp.eq.s32.totalorder %v4543_v60, %v4103_v15 }
  0xc2   : > { %v1573_v25 = vmul.f32 %v1509_v57, %v4502_v23  ;;  %v1207_v52 = vmul.f32 0.6931472, %v3551_v49  ;;  %3556 = vlog2.f32 %v1352_v55  ;;  %v1033_v23 = vsub.f32 1.0, %v3418_v18  ;;  %vm875_vm5 = vmand %vm759_vm8, %vm4139_vm9 }
  0xc3   : > { %v1446_v11 = vmul.f32 %v1397_v36, %v6051_v59  ;;  %v1097_v57 = vmul.f32 %v3418_v18, %v4582_v24  ;;  %3558 = vlog2.f32 %v1161_v6  ;;  %v1321_v49 = vsub.f32 1.0, %v616_v30  ;;  %v3683_v59 = vld [vmem:[%s4038_s9 + $0x8] sm:$0xff] }
  0xc4   : > { %v1255_v46 = vmul.f32 %v1207_v52, %v4530_v9  ;;  %1637 = vst [vmem:[%s4202_s13 + $0x68] sm:$0xff] %v1573_v25  ;;  %v1065_v36 = vmul.f32 %v1033_v23, %v1001_v21  ;;  %v4590_v37 = vadd.f32 %v3683_v59, %v4582_v24  ;;  %v970_v6 = vmul.f32 %v617_v31, %v617_v31 }
  0xc5   : > { %v1478_v56 = vadd.f32 %v1446_v11, %v1254_v58  ;;  %v3553_v51 = vpop.eup %3552  ;;  %v1162_v55 = vmax.f32 %v617_v31, 1e-12  ;;  %v1353_v11 = vmax.f32 %v1321_v49, 1e-12  ;;  %v3419_v23 = vsel %vm874_vm0, 1.0, %v6041_v44 }
  0xc6   : > { %v1399_v30 = vmul.f32 0.6931472, %v3553_v51  ;;  %v4601_v18 = vadd.f32 %v1097_v57, %v1065_v36  ;;  %v3555_v21 = vpop.eup %3554  ;;  %v1002_v26 = vmul.f32 0.75, %v970_v6  ;;  %v1034_v57 = vsub.f32 1.0, %v3419_v23  ;;  %v3684_v51 = vld [vmem:[%s4038_s9 + $0x10] sm:$0xff]  ;;  %v618_v6 = vld [vmem:[%s4035_s8 + $0x98] sm:$0xff] }
  0xc7   : > { %v1510_v58 = vsub.f32 0.0, %v1478_v56  ;;  %3560 = vlog2.f32 %v1162_v55  ;;  %v6052_v56 = vsub.f32 1.0, %v4530_v9  ;;  %v1209_v25 = vmul.f32 0.6931472, %v3555_v21 }
  0xc8   : > { %3562 = vlog2.f32 %v1353_v11  ;;  %v1098_v36 = vmul.f32 %v3419_v23, %v4594_v22  ;;  %v1322_v49 = vsub.f32 1.0, %v617_v31  ;;  %v4611_v52 = vadd.f32 %v3684_v51, %v4594_v22  ;;  %v4620_v11 = vld [vmem:[%s4038_s9 + $0x98] sm:$0xff] }
  0xc9   : > { %v1574_v12 = vmul.f32 %v1510_v58, %v4527_v32  ;;  %v1447_v59 = vmul.f32 %v1399_v30, %v6052_v56  ;;  %v1256_v58 = vmul.f32 %v1209_v25, %v4556_v2  ;;  %v1066_v61 = vmul.f32 %v1034_v57, %v1002_v26 }
  0xca   : > { %v1354_v55 = vmax.f32 %v1322_v49, 1e-12  ;;  %v971_v31 = vmul.f32 %v618_v6, %v618_v6  ;;  %v1163_v21 = vmax.f32 %v618_v6, 1e-12  ;;  %v3420_v26 = vsel %vm875_vm5, 1.0, %v6041_v44 }
  0xcb   : > { %v1479_v32 = vadd.f32 %v1447_v59, %v1255_v46  ;;  %1638 = vst [vmem:[%s4202_s13 + $0x70] sm:$0xff] %v1574_v12  ;;  %v4624_v25 = vadd.f32 %v1098_v36, %v1066_v61  ;;  %v1035_v57 = vsub.f32 1.0, %v3420_v26  ;;  %v1099_v51 = vmul.f32 %v3420_v26, %v4620_v11 }
  0xcc   : > { %v3557_v23 = vpop.eup %3556  ;;  %3564 = vlog2.f32 %v1354_v55  ;;  %v1003_v59 = vmul.f32 0.75, %v971_v31  ;;  %v1323_v30 = vsub.f32 1.0, %v618_v6  ;;  %v4634_v15 = vadd.f32 %v3685_v33, %v4620_v11 }
  0xcd   : > { %v1511_v46 = vsub.f32 0.0, %v1479_v32  ;;  %v3559_v12 = vpop.eup %3558  ;;  %v1401_v56 = vmul.f32 0.6931472, %v3557_v23  ;;  %3566 = vlog2.f32 %v1163_v21  ;;  %v6053_v32 = vsub.f32 1.0, %v4556_v2  ;;  %v619_v23 = vld [vmem:[%s4035_s8 + $0xa0] sm:$0xff] }
  0xce   : > { %v1211_v49 = vmul.f32 0.6931472, %v3559_v12  ;;  %v1067_v36 = vmul.f32 %v1035_v57, %v1003_v59  ;;  %vm760_vm9 = vcmp.eq.s32.totalorder %v4543_v60, %v4195_v42  ;;  %v1355_v2 = vmax.f32 %v1323_v30, 1e-12 }
  0xcf   : > { %v1575_v27 = vmul.f32 %v1511_v46, %v4560_v43  ;;  %v1448_v61 = vmul.f32 %v1401_v56, %v6053_v32  ;;  %v972_v43 = vmul.f32 %v619_v23, %v619_v23  ;;  %v1678_v26 = vrot.slane %v4634_v15, 4  ;;  %vm876_vm12 = vmand %vm760_vm9, %vm4210_vm14 }
  0xd0   : > { %v1257_v55 = vmul.f32 %v1211_v49, %v4582_v24  ;;  %v4640_v46 = vadd.f32 %v1099_v51, %v1067_v36  ;;  %v3421_v12 = vsel %vm876_vm12, 1.0, %v6041_v44  ;;  %v1164_v42 = vmax.f32 %v619_v23, 1e-12 }
  0xd1   : > { %v3561_v31 = vpop.eup %3560  ;;  %v1480_v21 = vadd.f32 %v1448_v61, %v1256_v58  ;;  %1639 = vst [vmem:[%s4202_s13 + $0x78] sm:$0xff] %v1575_v27  ;;  %v1004_v56 = vmul.f32 0.75, %v972_v43  ;;  %3568 = vlog2.f32 %v1355_v2  ;;  %v4648_v58 = vld [vmem:[%s4038_s9 + $0xa0] sm:$0xff]  ;;  %v1036_v49 = vsub.f32 1.0, %v3421_v12 }
  0xd2   : > { %v3563_v33 = vpop.eup %3562  ;;  %v1213_v6 = vmul.f32 0.6931472, %v3561_v31  ;;  %v1100_v51 = vmul.f32 %v3421_v12, %v4648_v58  ;;  %3570 = vlog2.f32 %v1164_v42  ;;  %v1292_v47 = vsub.f32 1.0, %v4648_v58  ;;  %v620_v31 = vld [vmem:[%s4035_s8 + $0xa8] sm:$0xff] }
  0xd3   : > { %v1512_v59 = vsub.f32 0.0, %v1480_v21  ;;  %v1403_v57 = vmul.f32 0.6931472, %v3563_v33  ;;  %v6054_v32 = vsub.f32 1.0, %v4582_v24  ;;  %v1068_v36 = vmul.f32 %v1036_v49, %v1004_v56  ;;  %v4671_v49 = vld [vmem:[%s4038_s9 + $0xa8] sm:$0xff] }
  0xd4   : > { %v1258_v30 = vmul.f32 %v1213_v6, %v4594_v22  ;;  %v1324_v43 = vsub.f32 1.0, %v619_v23  ;;  %v4659_v21 = vadd.f32 %v4648_v58, %v4208_v45  ;;  %vm761_vm14 = vcmp.eq.s32.totalorder %v4543_v60, %v4230_v3 }
  0xd5   : > { %v1576_v27 = vmul.f32 %v1512_v59, %v4579_v10  ;;  %v1449_v61 = vmul.f32 %v1403_v57, %v6054_v32  ;;  %v973_v2 = vmul.f32 %v620_v31, %v620_v31  ;;  %v1165_v33 = vmax.f32 %v620_v31, 1e-12  ;;  %vm877_vm6 = vmand %vm761_vm14, %vm4240_vm1 }
  0xd6   : > { %v3565_v6 = vpop.eup %3564  ;;  %v4663_v10 = vadd.f32 %v1100_v51, %v1068_v36  ;;  %v1356_v24 = vmax.f32 %v1324_v43, 1e-12  ;;  %v1685_v42 = vrot.slane %v4659_v21, 4  ;;  %v3422_v45 = vsel %vm877_vm6, 1.0, %v6041_v44 }
  0xd7   : > { %v1481_v12 = vadd.f32 %v1449_v61, %v1257_v55  ;;  %v3567_v23 = vpop.eup %3566  ;;  %v1405_v56 = vmul.f32 0.6931472, %v3565_v6  ;;  %v1005_v59 = vmul.f32 0.75, %v973_v2  ;;  %1640 = vst [vmem:[%s4202_s13 + $0x80] sm:$0xff] %v1576_v27  ;;  %v1037_v55 = vsub.f32 1.0, %v3422_v45  ;;  %v621_v6 = vld [vmem:[%s4035_s8 + $0xb0] sm:$0xff] }
  0xd8   : > { %v1215_v57 = vmul.f32 0.6931472, %v3567_v23  ;;  %3572 = vlog2.f32 %v1356_v24  ;;  %v6055_v51 = vsub.f32 1.0, %v4594_v22  ;;  %v1101_v17 = vmul.f32 %v3422_v45, %v4671_v49 }
  0xd9   : > { %v1513_v3 = vsub.f32 0.0, %v1481_v12  ;;  %3574 = vlog2.f32 %v1165_v33  ;;  %v1293_v61 = vsub.f32 1.0, %v4671_v49  ;;  %v1069_v2 = vmul.f32 %v1037_v55, %v1005_v59 }
  0xda   : > { %v1450_v32 = vmul.f32 %v1405_v56, %v6055_v51  ;;  %v1259_v43 = vmul.f32 %v1215_v57, %v4620_v11  ;;  %v1325_v27 = vsub.f32 1.0, %v620_v31  ;;  %v4682_v24 = vadd.f32 %v4671_v49, %v4236_v16 }
  0xdb   : > { %v1577_v36 = vmul.f32 %v1513_v3, %v4601_v18  ;;  %vm762_vm1 = vcmp.eq.s32.totalorder %v4543_v60, %v4261_v34  ;;  %v974_v22 = vmul.f32 %v621_v6, %v621_v6  ;;  %v3569_v33 = vpop.eup %3568  ;;  %v4686_v23 = vadd.f32 %v1101_v17, %v1069_v2  ;;  %v4694_v34 = vld [vmem:[%s4038_s9 + $0xb0] sm:$0xff] }
  0xdc   : > { %v1482_v12 = vadd.f32 %v1450_v32, %v1258_v30  ;;  %v1357_v18 = vmax.f32 %v1325_v27, 1e-12  ;;  %vm878_vm0 = vmand %vm762_vm1, %vm4269_vm4  ;;  %v1166_v31 = vmax.f32 %v621_v6, 1e-12  ;;  %v3571_v56 = vpop.eup %3570  ;;  %v1407_v30 = vmul.f32 0.6931472, %v3569_v33 }
  0xdd   : > { %v1692_v59 = vrot.slane %v4682_v24, 4  ;;  %v3423_v16 = vsel %vm878_vm0, 1.0, %v6041_v44  ;;  %1641 = vst [vmem:[%s4202_s13 + $0x88] sm:$0xff] %v1577_v36  ;;  %v1217_v3 = vmul.f32 0.6931472, %v3571_v56  ;;  %v1006_v57 = vmul.f32 0.75, %v974_v22 }
  0xde   : > { %v1514_v45 = vsub.f32 0.0, %v1482_v12  ;;  %3576 = vlog2.f32 %v1357_v18  ;;  %v1038_v55 = vsub.f32 1.0, %v3423_v16  ;;  %v6056_v51 = vsub.f32 1.0, %v4620_v11  ;;  %v3686_v18 = vld [vmem:[%s4038_s9 + $0x30] sm:$0xff]  ;;  %v622_v56 = vld [vmem:[%s4035_s8 + $0xb8] sm:$0xff] }
  0xdf   : > { %v1102_v17 = vmul.f32 %v3423_v16, %v4694_v34  ;;  %3578 = vlog2.f32 %v1166_v31  ;;  %v1260_v2 = vmul.f32 %v1217_v3, %v4648_v58  ;;  %v1294_v36 = vsub.f32 1.0, %v4694_v34 }
  0xe0   : > { %v1578_v38 = vmul.f32 %v1514_v45, %v4624_v25  ;;  %v1451_v32 = vmul.f32 %v1407_v30, %v6056_v51  ;;  %v1070_v27 = vmul.f32 %v1038_v55, %v1006_v57  ;;  %v1326_v12 = vsub.f32 1.0, %v621_v6 }
  0xe1   : > { %v4704_v22 = vadd.f32 %v3686_v18, %v4694_v34  ;;  %vm763_vm4 = vcmp.eq.s32.totalorder %v4543_v60, %v4284_v62  ;;  %v975_v45 = vmul.f32 %v622_v56, %v622_v56  ;;  %v1167_v30 = vmax.f32 %v622_v56, 1e-12  ;;  %v4717_v62 = vld [vmem:[%s4038_s9 + $0xb8] sm:$0xff] }
  0xe2   : > { %v1483_v33 = vadd.f32 %v1451_v32, %v1259_v43  ;;  %v3573_v11 = vpop.eup %3572  ;;  %v4709_v25 = vadd.f32 %v1102_v17, %v1070_v27  ;;  %v1358_v31 = vmax.f32 %v1326_v12, 1e-12  ;;  %vm879_vm8 = vmand %vm763_vm4, %vm4297_vm11  ;;  %1642 = vst [vmem:[%s4202_s13 + $0x90] sm:$0xff] %v1578_v38  ;;  %v1327_v18 = vsub.f32 1.0, %v622_v56 }
  0xe3   : > { %v3575_v6 = vpop.eup %3574  ;;  %v1409_v16 = vmul.f32 0.6931472, %v3573_v11  ;;  %v1699_v3 = vrot.slane %v4704_v22, 4  ;;  %v3424_v57 = vsel %vm879_vm8, 1.0, %v6041_v44  ;;  %v1007_v51 = vmul.f32 0.75, %v975_v45 }
  0xe4   : > { %v1515_v43 = vsub.f32 0.0, %v1483_v33  ;;  %v1219_v55 = vmul.f32 0.6931472, %v3575_v6  ;;  %3580 = vlog2.f32 %v1358_v31  ;;  %v1039_v32 = vsub.f32 1.0, %v3424_v57  ;;  %v3687_v31 = vld [vmem:[%s4038_s9 + $0x38] sm:$0xff]  ;;  %v623_v6 = vld [vmem:[%s4035_s8 + $0xc0] sm:$0xff] }
  0xe5   : > { %v1452_v17 = vmul.f32 %v1409_v16, %v1292_v47  ;;  %v1103_v38 = vmul.f32 %v3424_v57, %v4717_v62  ;;  %3582 = vlog2.f32 %v1167_v30  ;;  %v1295_v33 = vsub.f32 1.0, %v4717_v62 }
  0xe6   : > { %v1579_v4 = vmul.f32 %v1515_v43, %v4640_v46  ;;  %v1261_v27 = vmul.f32 %v1219_v55, %v4671_v49  ;;  %v1071_v12 = vmul.f32 %v1039_v32, %v1007_v51  ;;  %v4727_v45 = vadd.f32 %v3687_v31, %v4717_v62 }
  0xe7   : > { %v1484_v11 = vadd.f32 %v1452_v17, %v1260_v2  ;;  %vm764_vm11 = vcmp.eq.s32.totalorder %v4543_v60, %v4322_v14  ;;  %v1359_v47 = vmax.f32 %v1327_v18, 1e-12  ;;  %v976_v30 = vmul.f32 %v623_v6, %v623_v6  ;;  %v4740_v14 = vld [vmem:[%s4038_s9 + $0xc0] sm:$0xff] }
  0xe8   : > { %v3577_v46 = vpop.eup %3576  ;;  %v4732_v58 = vadd.f32 %v1103_v38, %v1071_v12  ;;  %vm880_vm5 = vmand %vm764_vm11, %vm4345_vm2  ;;  %v1168_v43 = vmax.f32 %v623_v6, 1e-12  ;;  %1643 = vst [vmem:[%s4202_s13 + $0x98] sm:$0xff] %v1579_v4  ;;  %v1706_v57 = vrot.slane %v4727_v45, 4  ;;  %v1328_v31 = vsub.f32 1.0, %v623_v6 }
  0xe9   : > { %v3579_v56 = vpop.eup %3578  ;;  %v1516_v2 = vsub.f32 0.0, %v1484_v11  ;;  %v1411_v16 = vmul.f32 0.6931472, %v3577_v46  ;;  %v3425_v55 = vsel %vm880_vm5, 1.0, %v6041_v44  ;;  %3584 = vlog2.f32 %v1359_v47  ;;  %v3688_v47 = vld [vmem:[%s4038_s9 + $0x40] sm:$0xff] }
  0xea   : > { %v1221_v51 = vmul.f32 0.6931472, %v3579_v56  ;;  %v1008_v32 = vmul.f32 0.75, %v976_v30  ;;  %v1040_v17 = vsub.f32 1.0, %v3425_v55  ;;  %v1104_v4 = vmul.f32 %v3425_v55, %v4740_v14  ;;  %v624_v56 = vld [vmem:[%s4035_s8 + $0xc8] sm:$0xff] }
  0xeb   : > { %v1580_v53 = vmul.f32 %v1516_v2, %v4663_v10  ;;  %v1453_v38 = vmul.f32 %v1411_v16, %v1293_v61  ;;  %3586 = vlog2.f32 %v1168_v43  ;;  %v1296_v11 = vsub.f32 1.0, %v4740_v14 }
  0xec   : > { %v1262_v12 = vmul.f32 %v1221_v51, %v4694_v34  ;;  %v1072_v18 = vmul.f32 %v1040_v17, %v1008_v32  ;;  %v4750_v30 = vadd.f32 %v3688_v47, %v4740_v14  ;;  %vm765_vm2 = vcmp.eq.s32.totalorder %v4543_v60, %v4333_v40  ;;  %v4763_v40 = vld [vmem:[%s4038_s9 + $0xc8] sm:$0xff] }
  0xed   : > { %v1485_v46 = vadd.f32 %v1453_v38, %v1261_v27  ;;  %v1360_v61 = vmax.f32 %v1328_v31, 1e-12  ;;  %vm881_vm9 = vmand %vm765_vm2, %vm4362_vm7  ;;  %v977_v43 = vmul.f32 %v624_v56, %v624_v56  ;;  %v1169_v2 = vmax.f32 %v624_v56, 1e-12  ;;  %1644 = vst [vmem:[%s4202_s13 + $0xa0] sm:$0xff] %v1580_v53 }
  0xee   : > { %v3581_v10 = vpop.eup %3580  ;;  %v4755_v49 = vadd.f32 %v1104_v4, %v1072_v18  ;;  %v1713_v55 = vrot.slane %v4750_v30, 4  ;;  %v3426_v51 = vsel %vm881_vm9, 1.0, %v6041_v44  ;;  %v1329_v47 = vsub.f32 1.0, %v624_v56 }
  0xef   : > { %v3583_v6 = vpop.eup %3582  ;;  %v1517_v27 = vsub.f32 0.0, %v1485_v46  ;;  %v1413_v16 = vmul.f32 0.6931472, %v3581_v10  ;;  %3588 = vlog2.f32 %v1360_v61  ;;  %v1009_v17 = vmul.f32 0.75, %v977_v43  ;;  %v3689_v61 = vld [vmem:[%s4038_s9 + $0x48] sm:$0xff] }
  0xf0   : > { %v1223_v32 = vmul.f32 0.6931472, %v3583_v6  ;;  %v1041_v38 = vsub.f32 1.0, %v3426_v51  ;;  %v1105_v53 = vmul.f32 %v3426_v51, %v4763_v40  ;;  %3590 = vlog2.f32 %v1169_v2  ;;  %v625_v6 = vld [vmem:[%s4035_s8 + $0xd0] sm:$0xff] }
  0xf1   : > { %v1581_v39 = vmul.f32 %v1517_v27, %v4686_v23  ;;  %v1454_v4 = vmul.f32 %v1413_v16, %v1294_v36  ;;  %v1297_v46 = vsub.f32 1.0, %v4763_v40  ;;  %v4773_v43 = vadd.f32 %v3689_v61, %v4763_v40 }
  0xf2   : > { %v1263_v18 = vmul.f32 %v1223_v32, %v4717_v62  ;;  %v1073_v31 = vmul.f32 %v1041_v38, %v1009_v17  ;;  %vm766_vm7 = vcmp.eq.s32.totalorder %v4543_v60, %v4382_v19  ;;  %v1361_v36 = vmax.f32 %v1329_v47, 1e-12  ;;  %v4786_v19 = vld [vmem:[%s4038_s9 + $0xd0] sm:$0xff] }
  0xf3   : > { %v1486_v10 = vadd.f32 %v1454_v4, %v1262_v12  ;;  %v3585_v23 = vpop.eup %3584  ;;  %vm882_vm12 = vmand %vm766_vm7, %vm4396_vm13  ;;  %v978_v2 = vmul.f32 %v625_v6, %v625_v6  ;;  %v1170_v27 = vmax.f32 %v625_v6, 1e-12  ;;  %1645 = vst [vmem:[%s4202_s13 + $0xa8] sm:$0xff] %v1581_v39  ;;  %v1720_v51 = vrot.slane %v4773_v43, 4 }
  0xf4   : > { %v4778_v34 = vadd.f32 %v1105_v53, %v1073_v31  ;;  %v1415_v16 = vmul.f32 0.6931472, %v3585_v23  ;;  %v3427_v32 = vsel %vm882_vm12, 1.0, %v6041_v44  ;;  %3592 = vlog2.f32 %v1361_v36 }
  0xf5   : > { %v3587_v56 = vpop.eup %3586  ;;  %v1518_v12 = vsub.f32 0.0, %v1486_v10  ;;  %v1010_v38 = vmul.f32 0.75, %v978_v2  ;;  %v1042_v4 = vsub.f32 1.0, %v3427_v32  ;;  %v1106_v39 = vmul.f32 %v3427_v32, %v4786_v19  ;;  %v626_v2 = vld [vmem:[%s4035_s8 + $0xd8] sm:$0xff] }
  0xf6   : > { %v1225_v17 = vmul.f32 0.6931472, %v3587_v56  ;;  %v1455_v53 = vmul.f32 %v1415_v16, %v1295_v33  ;;  %3594 = vlog2.f32 %v1170_v27  ;;  %v1298_v10 = vsub.f32 1.0, %v4786_v19 }
  0xf7   : > { %v1582_v20 = vmul.f32 %v1518_v12, %v4709_v25  ;;  %v1074_v47 = vmul.f32 %v1042_v4, %v1010_v38  ;;  %v1330_v61 = vsub.f32 1.0, %v625_v6  ;;  %v4796_v36 = vadd.f32 %v4786_v19, %v4391_v0 }
  0xf8   : > { %v1264_v31 = vmul.f32 %v1225_v17, %v4740_v14  ;;  %v1487_v23 = vadd.f32 %v1455_v53, %v1263_v18  ;;  %vm767_vm13 = vcmp.eq.s32.totalorder %v4543_v60, %v4405_v13  ;;  %v979_v27 = vmul.f32 %v626_v2, %v626_v2  ;;  %v4809_v13 = vld [vmem:[%s4038_s9 + $0xd8] sm:$0xff] }
  0xf9   : > { %v3589_v25 = vpop.eup %3588  ;;  %v4801_v62 = vadd.f32 %v1106_v39, %v1074_v47  ;;  %v1362_v33 = vmax.f32 %v1330_v61, 1e-12  ;;  %vm883_vm14 = vmand %vm767_vm13, %vm4417_vm3  ;;  %v1171_v56 = vmax.f32 %v626_v2, 1e-12  ;;  %1646 = vst [vmem:[%s4202_s13 + $0xb0] sm:$0xff] %v1582_v20  ;;  %v1727_v0 = vrot.slane %v4796_v36, 4 }
  0xfa   : > { %v3591_v6 = vpop.eup %3590  ;;  %v1519_v18 = vsub.f32 0.0, %v1487_v23  ;;  %v1417_v12 = vmul.f32 0.6931472, %v3589_v25  ;;  %v3428_v16 = vsel %vm883_vm14, 1.0, %v6041_v44  ;;  %v1011_v17 = vmul.f32 0.75, %v979_v27 }
  0xfb   : > { %v1227_v32 = vmul.f32 0.6931472, %v3591_v6  ;;  %3596 = vlog2.f32 %v1362_v33  ;;  %v1043_v38 = vsub.f32 1.0, %v3428_v16  ;;  %v1107_v20 = vmul.f32 %v3428_v16, %v4809_v13  ;;  %v627_v33 = vld [vmem:[%s4035_s8 + $0xe0] sm:$0xff] }
  0xfc   : > { %v1583_v5 = vmul.f32 %v1519_v18, %v4732_v58  ;;  %v1456_v4 = vmul.f32 %v1417_v12, %v1296_v11  ;;  %3598 = vlog2.f32 %v1171_v56  ;;  %v1299_v47 = vsub.f32 1.0, %v4809_v13 }
  0xfd   : > { %v1265_v53 = vmul.f32 %v1227_v32, %v4763_v40  ;;  %v1075_v39 = vmul.f32 %v1043_v38, %v1011_v17  ;;  %v1331_v61 = vsub.f32 1.0, %v626_v2  ;;  %v4819_v25 = vadd.f32 %v4809_v13, %v4424_v54 }
  0xfe   : > { %v1488_v23 = vadd.f32 %v1456_v4, %v1264_v31  ;;  %vm768_vm3 = vcmp.eq.s32.totalorder %v4543_v60, %v4436_v1  ;;  %v3593_v58 = vpop.eup %3592  ;;  %v980_v27 = vmul.f32 %v627_v33, %v627_v33  ;;  %v1172_v56 = vmax.f32 %v627_v33, 1e-12  ;;  %1647 = vst [vmem:[%s4202_s13 + $0xb8] sm:$0xff] %v1583_v5  ;;  %v4832_v1 = vld [vmem:[%s4038_s9 + $0xe0] sm:$0xff] }
  0xff   : > { %v4824_v14 = vadd.f32 %v1107_v20, %v1075_v39  ;;  %v1363_v11 = vmax.f32 %v1331_v61, 1e-12  ;;  %vm884_vm6 = vmand %vm768_vm3, %vm4449_vm15  ;;  %v1419_v6 = vmul.f32 0.6931472, %v3593_v58  ;;  %v1734_v54 = vrot.slane %v4819_v25, 4  ;;  %v628_v58 = vld [vmem:[%s4035_s8 + $0xe8] sm:$0xff] }
 0x100   : > { %v3595_v2 = vpop.eup %3594  ;;  %v1520_v31 = vsub.f32 0.0, %v1488_v23  ;;  %v3429_v18 = vsel %vm884_vm6, 1.0, %v6041_v44  ;;  %v1012_v16 = vmul.f32 0.75, %v980_v27  ;;  %v1300_v20 = vsub.f32 1.0, %v4832_v1 }
 0x101   : > { %v1229_v12 = vmul.f32 0.6931472, %v3595_v2  ;;  %3600 = vlog2.f32 %v1363_v11  ;;  %v1044_v32 = vsub.f32 1.0, %v3429_v18  ;;  %v1457_v17 = vmul.f32 %v1419_v6, %v1297_v46 }
 0x102   : > { %v1584_v41 = vmul.f32 %v1520_v31, %v4755_v49  ;;  %v1108_v38 = vmul.f32 %v3429_v18, %v4832_v1  ;;  %3602 = vlog2.f32 %v1172_v56  ;;  %v1332_v39 = vsub.f32 1.0, %v627_v33 }
 0x103   : > { %v1266_v5 = vmul.f32 %v1229_v12, %v4786_v19  ;;  %v1076_v4 = vmul.f32 %v1044_v32, %v1012_v16  ;;  %v1489_v61 = vadd.f32 %v1457_v17, %v1265_v53  ;;  %v4842_v23 = vadd.f32 %v4832_v1, %v4445_v50 }
 0x104   : > { %vm769_vm15 = vcmp.eq.s32.totalorder %v4543_v60, %v4462_v7  ;;  %v1364_v46 = vmax.f32 %v1332_v39, 1e-12  ;;  %vm6057_vm1 = vnez %v6039_v63  ;;  %v981_v11 = vmul.f32 %v628_v58, %v628_v58  ;;  %1648 = vst [vmem:[%s4202_s13 + $0xc0] sm:$0xff] %v1584_v41  ;;  %v4855_v7 = vld [vmem:[%s4038_s9 + $0xe8] sm:$0xff] }
 0x105   : > { %v3597_v49 = vpop.eup %3596  ;;  %v4847_v40 = vadd.f32 %v1108_v38, %v1076_v4  ;;  %vm885_vm0 = vmand %vm769_vm15, %vm6057_vm1  ;;  %v1173_v27 = vmax.f32 %v628_v58, 1e-12  ;;  %v1521_v53 = vsub.f32 0.0, %v1489_v61  ;;  %v1741_v50 = vrot.slane %v4842_v23, 4  ;;  %v629_v61 = vld [vmem:[%s4035_s8 + $0xf0] sm:$0xff] }
 0x106   : > { %v3599_v33 = vpop.eup %3598  ;;  %v1421_v56 = vmul.f32 0.6931472, %v3597_v49  ;;  %v3430_v2 = vsel %vm885_vm0, 1.0, %v6041_v44  ;;  %3604 = vlog2.f32 %v1364_v46  ;;  %v1013_v6 = vmul.f32 0.75, %v981_v11  ;;  %v6059_v46 = vld [vmem:[#allocation15_spill] sm:$0xff] }
 0x107   : > { %v1231_v31 = vmul.f32 0.6931472, %v3599_v33  ;;  %v1045_v18 = vsub.f32 1.0, %v3430_v2  ;;  %v1585_v63 = vmul.f32 %v1521_v53, %v4778_v34  ;;  %v1109_v16 = vmul.f32 %v3430_v2, %v4855_v7  ;;  %v6058_v34 = vld [vmem:[#allocation14_spill] sm:$0xff]  ;;  %v4878_v2 = vld [vmem:[%s4038_s9 + $0xf0] sm:$0xff] }
 0x108   : > { %v1458_v12 = vmul.f32 %v1421_v56, %v1298_v10  ;;  %3606 = vlog2.f32 %v1173_v27  ;;  %v1301_v17 = vsub.f32 1.0, %v4855_v7  ;;  %v1333_v38 = vsub.f32 1.0, %v628_v58 }
 0x109   : > { %v1267_v32 = vmul.f32 %v1231_v31, %v4809_v13  ;;  %v1077_v41 = vmul.f32 %v1045_v18, %v1013_v6  ;;  %v4865_v39 = vadd.f32 %v4855_v7, %v4471_v35  ;;  %vm770_vm4 = vcmp.eq.s32.totalorder %v4543_v60, %v6058_v34  ;;  %1649 = vst [vmem:[%s4202_s13 + $0xc8] sm:$0xff] %v1585_v63 }
 0x10a   : > { %v1490_v4 = vadd.f32 %v1458_v12, %v1266_v5  ;;  %v1365_v49 = vmax.f32 %v1333_v38, 1e-12  ;;  %vm6060_vm8 = vnez %v6059_v46  ;;  %v982_v11 = vmul.f32 %v629_v61, %v629_v61 }
 0x10b   : > { %v3601_v19 = vpop.eup %3600  ;;  %v4870_v10 = vadd.f32 %v1109_v16, %v1077_v41  ;;  %vm886_vm11 = vmand %vm770_vm4, %vm6060_vm8  ;;  %v1174_v27 = vmax.f32 %v629_v61, 1e-12  ;;  %v1748_v35 = vrot.slane %v4865_v39, 4  ;;  %v1302_v38 = vsub.f32 1.0, %v4878_v2 }
 0x10c   : > { %v3603_v58 = vpop.eup %3602  ;;  %v1522_v5 = vsub.f32 0.0, %v1490_v4  ;;  %v1423_v33 = vmul.f32 0.6931472, %v3601_v19  ;;  %v3431_v53 = vsel %vm886_vm11, 1.0, %v6041_v44  ;;  %3608 = vlog2.f32 %v1365_v49  ;;  %v630_v49 = vld [vmem:[%s4035_s8 + $0xf8] sm:$0xff] }
 0x10d   : > { %v1233_v56 = vmul.f32 0.6931472, %v3603_v58  ;;  %v1014_v31 = vmul.f32 0.75, %v982_v11  ;;  %v1046_v6 = vsub.f32 1.0, %v3431_v53  ;;  %v1110_v63 = vmul.f32 %v3431_v53, %v4878_v2 }
 0x10e   : > { %v1586_v18 = vmul.f32 %v1522_v5, %v4801_v62  ;;  %v1459_v12 = vmul.f32 %v1423_v33, %v1299_v47  ;;  %3610 = vlog2.f32 %v1174_v27  ;;  %v1334_v4 = vsub.f32 1.0, %v629_v61 }
 0x10f   : > { %v1268_v16 = vmul.f32 %v1233_v56, %v4832_v1  ;;  %v1078_v41 = vmul.f32 %v1046_v6, %v1014_v31  ;;  %v4888_v19 = vadd.f32 %v4878_v2, %v4505_v29  ;;  %vm771_vm5 = vcmp.eq.s32.totalorder %v4543_v60, %v4518_v8  ;;  %v4901_v8 = vld [vmem:[%s4038_s9 + $0xf8] sm:$0xff] }
 0x110   : > { %v1491_v34 = vadd.f32 %v1459_v12, %v1267_v32  ;;  %v3605_v62 = vpop.eup %3604  ;;  %v1366_v47 = vmax.f32 %v1334_v4, 1e-12  ;;  %vm887_vm2 = vmand %vm771_vm5, %vm4532_vm10  ;;  %v983_v46 = vmul.f32 %v630_v49, %v630_v49  ;;  %v1175_v11 = vmax.f32 %v630_v49, 1e-12  ;;  %1650 = vst [vmem:[%s4202_s13 + $0xd0] sm:$0xff] %v1586_v18 }
 0x111   : > { %v4893_v13 = vadd.f32 %v1110_v63, %v1078_v41  ;;  %v1425_v27 = vmul.f32 0.6931472, %v3605_v62  ;;  %v1755_v29 = vrot.slane %v4888_v19, 4  ;;  %v3432_v58 = vsel %vm887_vm2, 1.0, %v6041_v44 }
 0x112   : > { %v3607_v61 = vpop.eup %3606  ;;  %v1523_v32 = vsub.f32 0.0, %v1491_v34  ;;  %3612 = vlog2.f32 %v1366_v47  ;;  %v1015_v60 = vmul.f32 0.75, %v983_v46  ;;  %v1047_v33 = vsub.f32 1.0, %v3432_v58 }
 0x113   : > { %v1235_v5 = vmul.f32 0.6931472, %v3607_v61  ;;  %v1460_v28 = vmul.f32 %v1425_v27, %v1300_v20  ;;  %v1111_v56 = vmul.f32 %v3432_v58, %v4901_v8  ;;  %3614 = vlog2.f32 %v1175_v11 }
 0x114   : > { %v1587_v53 = vmul.f32 %v1523_v32, %v4824_v14  ;;  %v1079_v6 = vmul.f32 %v1047_v33, %v1015_v60  ;;  %v1303_v44 = vsub.f32 1.0, %v4901_v8  ;;  %v1335_v18 = vsub.f32 1.0, %v630_v49 }
 0x115   : > { %v1269_v31 = vmul.f32 %v1235_v5, %v4855_v7  ;;  %v1492_v12 = vadd.f32 %v1460_v28, %v1268_v16  ;;  %v4911_v63 = vadd.f32 %v4901_v8, %v4530_v9  ;;  %v6061_v14 = vrot.slane %v4567_v48, 4 }
 0x116   : > { %v3609_v20 = vpop.eup %3608  ;;  %v4916_v41 = vadd.f32 %v1111_v56, %v1079_v6  ;;  %v1367_v4 = vmax.f32 %v1335_v18, 1e-12  ;;  %v6062_v34 = vrot.slane %v4590_v37, 4  ;;  %v6063_v49 = vrot.slane %v4611_v52, 4  ;;  %1651 = vst [vmem:[%s4202_s13 + $0xd8] sm:$0xff] %v1587_v53 }
 0x117   : > { %v1658_v1 = vadd.f32 %v6061_v14, %v4567_v48  ;;  %v1524_v9 = vsub.f32 0.0, %v1492_v12  ;;  %v1427_v46 = vmul.f32 0.6931472, %v3609_v20  ;;  %v1762_v11 = vrot.slane %v4911_v63, 4 }
 0x118   : > { %v1665_v62 = vadd.f32 %v6062_v34, %v4590_v37  ;;  %v1672_v16 = vadd.f32 %v6063_v49, %v4611_v52  ;;  %v3611_v47 = vpop.eup %3610  ;;  %3616 = vlog2.f32 %v1367_v4  ;;  %v1679_v52 = vadd.f32 %v1678_v26, %v4634_v15 }
 0x119   : > { %v1659_v61 = vrot.slane %v1658_v1, 2  ;;  %v1237_v48 = vmul.f32 0.6931472, %v3611_v47  ;;  %v1588_v58 = vmul.f32 %v1524_v9, %v4847_v40  ;;  %v1461_v37 = vmul.f32 %v1427_v46, %v1301_v17 }
 0x11a   : > { %v1666_v32 = vrot.slane %v1665_v62, 2  ;;  %v1673_v27 = vrot.slane %v1672_v16, 2  ;;  %v1686_v28 = vadd.f32 %v1685_v42, %v4659_v21  ;;  %v1680_v40 = vrot.slane %v1679_v52, 2 }
 0x11b   : > { %v1660_v5 = vadd.f32 %v1659_v61, %v1658_v1  ;;  %v1270_v60 = vmul.f32 %v1237_v48, %v4878_v2  ;;  %v1493_v56 = vadd.f32 %v1461_v37, %v1269_v31  ;;  %v1693_v14 = vadd.f32 %v1692_v59, %v4682_v24  ;;  %1652 = vst [vmem:[%s4202_s13 + $0xe0] sm:$0xff] %v1588_v58 }
 0x11c   : > { %v1667_v33 = vadd.f32 %v1666_v32, %v1665_v62  ;;  %v1674_v53 = vadd.f32 %v1673_v27, %v1672_v16  ;;  %v3613_v18 = vpop.eup %3612  ;;  %v1687_v12 = vrot.slane %v1686_v28, 2  ;;  %v1681_v4 = vadd.f32 %v1680_v40, %v1679_v52 }
 0x11d   : > { %v1661_v6 = vrot.slane %v1660_v5, 1  ;;  %v3615_v15 = vpop.eup %3614  ;;  %v1525_v26 = vsub.f32 0.0, %v1493_v56  ;;  %v1429_v1 = vmul.f32 0.6931472, %v3613_v18  ;;  %v1694_v59 = vrot.slane %v1693_v14, 2 }
 0x11e   : > { %v1668_v7 = vrot.slane %v1667_v33, 1  ;;  %v1675_v17 = vrot.slane %v1674_v53, 1  ;;  %v1239_v34 = vmul.f32 0.6931472, %v3615_v15  ;;  %v1688_v31 = vadd.f32 %v1687_v12, %v1686_v28  ;;  %v6072_v15 = vld [vmem:[#allocation5_spill] sm:$0xff] }
 0x11f   : > { %v4940_v20 = vadd.f32 %v1661_v6, %v1660_v5  ;;  %v1589_v62 = vmul.f32 %v1525_v26, %v4870_v10  ;;  %v1462_v49 = vmul.f32 %v1429_v1, %v1302_v38  ;;  %v1682_v24 = vrot.slane %v1681_v4, 1 }
 0x120   : > { %v4942_v21 = vadd.f32 %v1668_v7, %v1667_v33  ;;  %v4944_v42 = vadd.f32 %v1675_v17, %v1674_v53  ;;  %v1271_v16 = vmul.f32 %v1239_v34, %v4901_v8  ;;  %v1689_v47 = vrot.slane %v1688_v31, 1 }
 0x121   : > { %6064 = vst [vmem:[#allocation14_spill] sm:$0xff] %v4940_v20  ;;  %v1700_v9 = vadd.f32 %v1699_v3, %v4704_v22  ;;  %v1707_v46 = vadd.f32 %v1706_v57, %v4727_v45  ;;  %v1494_v61 = vadd.f32 %v1462_v49, %v1270_v60  ;;  %v4956_v48 = vadd.f32 %v1682_v24, %v1681_v4 }
 0x122   : > { %6065 = vst [vmem:[#allocation15_spill] sm:$0xff] %v4942_v21  ;;  %6066 = vst [vmem:[#allocation16_spill] sm:$0xff] %v4944_v42  ;;  %v1695_v10 = vadd.f32 %v1694_v59, %v1693_v14  ;;  %v3617_v2 = vpop.eup %3616  ;;  %v4958_v32 = vadd.f32 %v1689_v47, %v1688_v31  ;;  %v1786_v58 = vcombine.low %v4940_v20, %v4942_v21  ;;  %v3732_v28 = vmov 1966171168  }
 0x123   : > { %6067 = vst [vmem:[#allocation17_spill] sm:$0xff] %v4956_v48  ;;  %v1701_v38 = vrot.slane %v1700_v9, 2  ;;  %v1708_v27 = vrot.slane %v1707_v46, 2  ;;  %1653 = vst [vmem:[%s4202_s13 + $0xe8] sm:$0xff] %v1589_v62  ;;  %v1526_v37 = vsub.f32 0.0, %v1494_v61  ;;  %v1787_v3 = vcombine.low %v4944_v42, %v4956_v48 }
 0x124   : > { %6068 = vst [vmem:[#allocation18_spill] sm:$0xff] %v4958_v32  ;;  %v1431_v5 = vmul.f32 0.6931472, %v3617_v2  ;;  %v1696_v22 = vrot.slane %v1695_v10, 1  ;;  %v1714_v52 = vadd.f32 %v1713_v55, %v4750_v30  ;;  %v1791_v56 = vunpack.c.l.s4 %v3732_v28  ;;  %v1908_v28 = vld [vmem:[%s4056_s18 + $0x10] sm:$0xc] }
 0x125   : > { %v1702_v45 = vadd.f32 %v1701_v38, %v1700_v9  ;;  %v1709_v57 = vadd.f32 %v1708_v27, %v1707_v46  ;;  %v1590_v60 = vmul.f32 %v1526_v37, %v4893_v13  ;;  %v1721_v7 = vadd.f32 %v1720_v51, %v4773_v43 }
 0x126   : > { %v1463_v33 = vmul.f32 %v1431_v5, %v1303_v44  ;;  %v4971_v53 = vadd.f32 %v1696_v22, %v1695_v10  ;;  %v1715_v18 = vrot.slane %v1714_v52, 2  ;;  %v1792_v55 = vunpack.c.0.s8 %v1791_v56  ;;  %v1909_v56 = vld [vmem:[%s4056_s18 + $0x18] sm:$0xc] }
 0x127   : > { %v1703_v6 = vrot.slane %v1702_v45, 1  ;;  %v1710_v40 = vrot.slane %v1709_v57, 1  ;;  %v1722_v12 = vrot.slane %v1721_v7, 2  ;;  %1654 = vst [vmem:[%s4202_s13 + $0xf0] sm:$0xff] %v1590_v60  ;;  %v1728_v43 = vadd.f32 %v1727_v0, %v4796_v36 }
 0x128   : > { %6069 = vst [vmem:[#allocation19_spill] sm:$0xff] %v4971_v53  ;;  %v1495_v17 = vadd.f32 %v1463_v33, %v1271_v16  ;;  %v1788_v30 = vcombine.low %v4958_v32, %v4971_v53  ;;  %v1716_v44 = vadd.f32 %v1715_v18, %v1714_v52  ;;  %v4984_v26 = vsub.s32 %v1792_v55, %v6072_v15  ;;  %v1907_v52 = vld [vmem:[%s4056_s18 + $0x8] sm:$0xc]  ;;  %v5047_v55 = vld [vmem:[%s4056_s18 + $0x10] sm:$0x3] }
 0x129   : > { %v4978_v13 = vadd.f32 %v1703_v6, %v1702_v45  ;;  %v4980_v8 = vadd.f32 %v1710_v40, %v1709_v57  ;;  %v1735_v51 = vadd.f32 %v1734_v54, %v4819_v25  ;;  %v1723_v34 = vadd.f32 %v1722_v12, %v1721_v7  ;;  %v1906_v57 = vld [vmem:[%s4056_s18] sm:$0xc]  ;;  %v1912_v12 = vld [vmem:[%s4056_s18 + $0x30] sm:$0xc] }
 0x12a   : > { %v1527_v14 = vsub.f32 0.0, %v1495_v17  ;;  %6073 = vst [vmem:[#allocation5_spill] sm:$0xff] %v4984_v26  ;;  %v1717_v4 = vrot.slane %v1716_v44, 1  ;;  %v1742_v31 = vadd.f32 %v1741_v50, %v4842_v23  ;;  %v1796_v49 = vrot.slane %v1786_v58, %v4984_v26  ;;  %v1910_v6 = vld [vmem:[%s4056_s18 + $0x20] sm:$0xc] }
 0x12b   : > { %6070 = vst [vmem:[#allocation20_spill] sm:$0xff] %v4978_v13  ;;  %6071 = vst [vmem:[#allocation21_spill] sm:$0xff] %v4980_v8  ;;  %v1789_v1 = vcombine.low %v4978_v13, %v4980_v8  ;;  %v1803_v36 = vrot.slane %v1787_v3, %v4984_v26  ;;  %v1810_v0 = vrot.slane %v1788_v30, %v4984_v26  ;;  %v1724_v24 = vrot.slane %v1723_v34, 1  ;;  %v5041_v17 = vld [vmem:[%s4056_s18] sm:$0x3] }
 0x12c   : > { %v1591_v62 = vmul.f32 %v1527_v14, %v4916_v41  ;;  %v5002_v54 = vadd.f32 %v1717_v4, %v1716_v44  ;;  %v1729_v59 = vrot.slane %v1728_v43, 2  ;;  %v1736_v47 = vrot.slane %v1735_v51, 2  ;;  %v5044_v30 = vld [vmem:[%s4056_s18 + $0x8] sm:$0x3]  ;;  %v1911_v44 = vld [vmem:[%s4056_s18 + $0x28] sm:$0xc] }
 0x12d   : > { %v1817_v25 = vrot.slane %v1789_v1, %v4984_v26  ;;  %v1818_v16 = vcombine.low %v1796_v49, %v1803_v36  ;;  %v1743_v9 = vrot.slane %v1742_v31, 2  ;;  %v5004_v50 = vadd.f32 %v1724_v24, %v1723_v34  ;;  %v1895_v24 = vld [vmem:[%s4056_s18 + $0x28] sm:$0x3] }
 0x12e   : > { %6074 = vst [vmem:[#allocation22_spill] sm:$0xff] %v5002_v54  ;;  %v1730_v41 = vadd.f32 %v1729_v59, %v1728_v43  ;;  %v1749_v46 = vadd.f32 %v1748_v35, %v4865_v39  ;;  %1655 = vst [vmem:[%s4202_s13 + $0xf8] sm:$0xff] %v1591_v62  ;;  %v1737_v10 = vadd.f32 %v1736_v47, %v1735_v51  ;;  %v1913_v43 = vld [vmem:[%s4056_s18 + $0x38] sm:$0xc]  ;;  %v1994_v51 = vrot.slane %v1906_v57, 2 }
 0x12f   : > { %v1819_v23 = vcombine.low %v1810_v0, %v1817_v25  ;;  %6075 = vst [vmem:[#allocation23_spill] sm:$0xff] %v5004_v50  ;;  %v1826_v61 = vrot.slane %v1818_v16, %v4984_v26  ;;  %v1744_v2 = vadd.f32 %v1743_v9, %v1742_v31  ;;  %v1756_v38 = vadd.f32 %v1755_v29, %v4888_v19  ;;  %v1893_v31 = vld [vmem:[%s4056_s18 + $0x18] sm:$0x3]  ;;  %v1894_v25 = vld [vmem:[%s4056_s18 + $0x20] sm:$0x3] }
 0x130   : > { %v1731_v58 = vrot.slane %v1730_v41, 1  ;;  %v1750_v37 = vrot.slane %v1749_v46, 2  ;;  %v1763_v39 = vadd.f32 %v1762_v11, %v4911_v63  ;;  %v1738_v35 = vrot.slane %v1737_v10, 1 }
 0x131   : > { %v1833_v27 = vrot.slane %v1819_v23, %v4984_v26  ;;  %v1745_v5 = vrot.slane %v1744_v2, 1  ;;  %v1757_v22 = vrot.slane %v1756_v38, 2  ;;  %v1835_v3 = vcombine.low %v5002_v54, %v5004_v50  ;;  %v1896_v23 = vld [vmem:[%s4056_s18 + $0x30] sm:$0x3] }
 0x132   : > { %v1751_v19 = vadd.f32 %v1750_v37, %v1749_v46  ;;  %v1764_v29 = vrot.slane %v1763_v39, 2  ;;  %v5030_v63 = vadd.f32 %v1731_v58, %v1730_v41  ;;  %v5032_v11 = vadd.f32 %v1738_v35, %v1737_v10  ;;  %v1897_v41 = vld [vmem:[%s4056_s18 + $0x38] sm:$0x3] }
 0x133   : > { %v1834_v45 = vcombine.low %v1826_v61, %v1833_v27  ;;  %v5034_v60 = vadd.f32 %v1745_v5, %v1744_v2  ;;  %v1758_v33 = vadd.f32 %v1757_v22, %v1756_v38  ;;  %v1845_v7 = vrot.slane %v1835_v3, %v4984_v26  ;;  %v1922_v2 = vld [vmem:[%s4056_s18] sm:$0x30]  ;;  %v1923_v38 = vld [vmem:[%s4056_s18 + $0x8] sm:$0x30]  ;;  %v1924_v5 = vld [vmem:[%s4056_s18 + $0x10] sm:$0x30] }
 0x134   : > { %6076 = vst [vmem:[#allocation24_spill] sm:$0xff] %v5030_v63  ;;  %6077 = vst [vmem:[#allocation25_spill] sm:$0xff] %v5032_v11  ;;  %v1752_v40 = vrot.slane %v1751_v19, 1  ;;  %v1765_v18 = vadd.f32 %v1764_v29, %v1763_v39  ;;  %v1836_v15 = vcombine.low %v5030_v63, %v5032_v11  ;;  %v1995_v1 = vrot.slane %v1907_v52, 2  ;;  %v1925_v22 = vld [vmem:[%s4056_s18 + $0x18] sm:$0x30] }
 0x135   : > { %6078 = vst [vmem:[#allocation26_spill] sm:$0xff] %v5034_v60  ;;  %v1759_v14 = vrot.slane %v1758_v33, 1  ;;  %1888 = vst [vmem:[%s5028_s17] sm:$0xff] %v1834_v45  ;;  %v1996_v62 = vrot.slane %v1908_v28, 2  ;;  %v1997_v49 = vrot.slane %v1909_v56, 2  ;;  %v1998_v59 = vrot.slane %v1910_v6, 2 }
 0x136   : > { %v5055_v4 = vadd.f32 %v1752_v40, %v1751_v19  ;;  %v1766_v34 = vrot.slane %v1765_v18, 1  ;;  %v1852_v0 = vrot.slane %v1836_v15, %v4984_v26  ;;  %v1999_v16 = vrot.slane %v1911_v44, 2  ;;  %v1926_v3 = vld [vmem:[%s4056_s18 + $0x20] sm:$0x30]  ;;  %v1927_v45 = vld [vmem:[%s4056_s18 + $0x28] sm:$0x30] }
 0x137   : > { %v5058_v36 = vadd.f32 %v1759_v14, %v1758_v33  ;;  %v2000_v46 = vrot.slane %v1912_v12, 2  ;;  %v2001_v61 = vrot.slane %v1913_v43, 2  ;;  %v5072_v27 = vsub.f32 %v5041_v17, %v1994_v51  ;;  %v1928_v52 = vld [vmem:[%s4056_s18 + $0x30] sm:$0x30]  ;;  %v1929_v33 = vld [vmem:[%s4056_s18 + $0x38] sm:$0x30] }
 0x138   : > { %6079 = vst [vmem:[#allocation27_spill] sm:$0xff] %v5055_v4  ;;  %v5063_v47 = vadd.f32 %v1766_v34, %v1765_v18  ;;  %v1837_v9 = vcombine.low %v5034_v60, %v5055_v4  ;;  %v1867_v10 = vcombine.low %v1845_v7, %v1852_v0  ;;  %v5075_v58 = vsub.f32 %v5044_v30, %v1995_v1  ;;  %v5095_v28 = vld [vmem:[%s4056_s18 + $0x80] sm:$0x3]  ;;  %v5105_v7 = vld [vmem:[%s4056_s18 + $0x88] sm:$0x3] }
 0x139   : > { %6080 = vst [vmem:[#allocation28_spill] sm:$0xff] %v5058_v36  ;;  %6082 = vst [vmem:[#allocation30_spill] sm:$0xff] %v5072_v27  ;;  %v5078_v37 = vsub.f32 %v5047_v55, %v1996_v62  ;;  %v5087_v19 = vsub.f32 %v1893_v31, %v1997_v49  ;;  %v5089_v29 = vsub.f32 %v1894_v25, %v1998_v59  ;;  %v2058_v44 = vrot.slane %v5041_v17, 4  ;;  %v5111_v15 = vld [vmem:[%s4056_s18 + $0x90] sm:$0x3] }
 0x13a   : > { %6081 = vst [vmem:[#allocation29_spill] sm:$0xff] %v5063_v47  ;;  %6083 = vst [vmem:[#allocation31_spill] sm:$0xff] %v5075_v58  ;;  %v1838_v39 = vcombine.low %v5058_v36, %v5063_v47  ;;  %v1859_v35 = vrot.slane %v1837_v9, %v4984_v26  ;;  %v1875_v57 = vrot.slane %v1867_v10, %v4984_v26  ;;  %v2059_v12 = vrot.slane %v5044_v30, 4  ;;  %v5114_v49 = vld [vmem:[%s4056_s18 + $0x98] sm:$0x3] }
 0x13b   : > { %6084 = vst [vmem:[#allocation32_spill] sm:$0xff] %v5078_v37  ;;  %6085 = vst [vmem:[#allocation33_spill] sm:$0xff] %v5087_v19  ;;  %v5097_v56 = vsub.f32 %v1895_v24, %v1999_v16  ;;  %v5099_v6 = vsub.f32 %v1896_v23, %v2000_v46  ;;  %v5101_v40 = vsub.f32 %v1897_v41, %v2001_v61  ;;  %v2060_v14 = vrot.slane %v5047_v55, 4  ;;  %v5117_v0 = vld [vmem:[%s4056_s18 + $0xa0] sm:$0x3] }
 0x13c   : > { %6086 = vst [vmem:[#allocation34_spill] sm:$0xff] %v5089_v29  ;;  %v1866_v18 = vrot.slane %v1838_v39, %v4984_v26  ;;  %v2061_v43 = vrot.slane %v1893_v31, 4  ;;  %v2062_v51 = vrot.slane %v1894_v25, 4  ;;  %v2063_v1 = vrot.slane %v1895_v24, 4  ;;  %v5124_v55 = vld [vmem:[%s4056_s18 + $0xa8] sm:$0x3] }
 0x13d   : > { %6087 = vst [vmem:[#allocation35_spill] sm:$0xff] %v5097_v56  ;;  %6088 = vst [vmem:[#allocation36_spill] sm:$0xff] %v5099_v6  ;;  %v2064_v34 = vrot.slane %v1896_v23, 4  ;;  %v2065_v59 = vrot.slane %v1897_v41, 4  ;;  %v5119_v17 = vadd.f32 %v2058_v44, %v1922_v2  ;;  %v5121_v30 = vadd.f32 %v2059_v12, %v1923_v38  ;;  %v5127_v16 = vld [vmem:[%s4056_s18 + $0xb0] sm:$0x3] }
 0x13e   : > { %6089 = vst [vmem:[#allocation37_spill] sm:$0xff] %v5101_v40  ;;  %v1868_v62 = vcombine.low %v1859_v35, %v1866_v18  ;;  %6090 = vst [vmem:[#allocation38_spill] sm:$0xff] %v5127_v16  ;;  %v5130_v31 = vld [vmem:[%s4056_s18 + $0xb8] sm:$0x3]  ;;  %v5132_v25 = vadd.f32 %v2060_v14, %v1924_v5  ;;  %v5134_v24 = vadd.f32 %v2061_v43, %v1925_v22  ;;  %v1938_v46 = vld [vmem:[%s4056_s18] sm:$0xc0] }
 0x13f   : > { %6091 = vst [vmem:[#allocation39_spill] sm:$0xff] %v5130_v31  ;;  %v5136_v9 = vadd.f32 %v2062_v51, %v1926_v3  ;;  %v5138_v23 = vadd.f32 %v2063_v1, %v1927_v45  ;;  %v1939_v61 = vld [vmem:[%s4056_s18 + $0x8] sm:$0xc0]  ;;  %v5143_v10 = vadd.f32 %v2064_v34, %v1928_v52  ;;  %v5145_v2 = vadd.f32 %v2065_v59, %v1929_v33  ;;  %v1940_v39 = vld [vmem:[%s4056_s18 + $0x10] sm:$0xc0] }
 0x140   : > { %v1882_v41 = vrot.slane %v1868_v62, %v4984_v26  ;;  %v5908_v38 = vrot.slane %v5095_v28, 4  ;;  %v5906_v35 = vrot.slane %v5105_v7, 4  ;;  %v5907_v5 = vrot.slane %v5111_v15, 4  ;;  %v1941_v18 = vld [vmem:[%s4056_s18 + $0x18] sm:$0xc0] }
 0x141   : > { %6092 = vst [vmem:[#allocation40_spill] sm:$0xff] %v5143_v10  ;;  %6093 = vst [vmem:[#allocation41_spill] sm:$0xff] %v5145_v2  ;;  %v5909_v22 = vrot.slane %v5114_v49, 4  ;;  %v5911_v3 = vrot.slane %v5117_v0, 4  ;;  %v5913_v44 = vrot.slane %v5124_v55, 4  ;;  %v5915_v52 = vrot.slane %v5127_v16, 4 }
 0x142   : > { %v1883_v45 = vcombine.low %v1875_v57, %v1882_v41  ;;  %v5916_v33 = vrot.slane %v5130_v31, 4  ;;  %v1942_v12 = vld [vmem:[%s4056_s18 + $0x20] sm:$0xc0]  ;;  %v1943_v14 = vld [vmem:[%s4056_s18 + $0x28] sm:$0xc0]  ;;  %v2154_v51 = vmin.f32 %v5119_v17, %v5908_v38  ;;  %v2155_v1 = vmin.f32 %v5121_v30, %v5906_v35 }
 0x143   : > { %v1944_v43 = vld [vmem:[%s4056_s18 + $0x30] sm:$0xc0]  ;;  %v2156_v57 = vmin.f32 %v5132_v25, %v5907_v5  ;;  %v2157_v34 = vmin.f32 %v5134_v24, %v5909_v22  ;;  %v1945_v62 = vld [vmem:[%s4056_s18 + $0x38] sm:$0xc0]  ;;  %v2158_v59 = vmin.f32 %v5136_v9, %v5911_v3  ;;  %v2159_v41 = vmin.f32 %v5138_v23, %v5913_v44 }
 0x144   : > { %v2160_v35 = vmin.f32 %v5143_v10, %v5915_v52  ;;  %v2161_v5 = vmin.f32 %v5145_v2, %v5916_v33  ;;  %v5185_v38 = vrot.slane %v1938_v46, 6  ;;  %v5187_v22 = vrot.slane %v1939_v61, 6  ;;  %1889 = vst [vmem:[%s5028_s17 + $0x8] sm:$0xff] %v1883_v45 }
 0x145   : > { %v5189_v47 = vrot.slane %v1940_v39, 6  ;;  %v5192_v3 = vrot.slane %v1941_v18, 6  ;;  %v5194_v36 = vrot.slane %v1942_v12, 6  ;;  %v5196_v44 = vrot.slane %v1943_v14, 6 }
 0x146   : > { %6094 = vst [vmem:[#allocation42_spill] sm:$0xff] %v5185_v38  ;;  %6095 = vst [vmem:[#allocation43_spill] sm:$0xff] %v5187_v22  ;;  %v5198_v4 = vrot.slane %v1944_v43, 6  ;;  %v5200_v52 = vrot.slane %v1945_v62, 6  ;;  %v2218_v33 = vmax.f32 %v5072_v27, %v5185_v38  ;;  %v2219_v46 = vmax.f32 %v5075_v58, %v5187_v22 }
 0x147   : > { %6096 = vst [vmem:[#allocation44_spill] sm:$0xff] %v5189_v47  ;;  %6097 = vst [vmem:[#allocation45_spill] sm:$0xff] %v5192_v3  ;;  %v2220_v61 = vmax.f32 %v5078_v37, %v5189_v47  ;;  %v2221_v39 = vmax.f32 %v5087_v19, %v5192_v3  ;;  %v2222_v45 = vmax.f32 %v5089_v29, %v5194_v36 }
 0x148   : > { %6098 = vst [vmem:[#allocation46_spill] sm:$0xff] %v5194_v36  ;;  %6099 = vst [vmem:[#allocation47_spill] sm:$0xff] %v5196_v44  ;;  %v2223_v18 = vmax.f32 %v5097_v56, %v5196_v44  ;;  %v2224_v12 = vmax.f32 %v5099_v6, %v5198_v4  ;;  %v2225_v14 = vmax.f32 %v5101_v40, %v5200_v52  ;;  %v2250_v43 = vrot.slane %v2218_v33, 4 }
 0x149   : > { %6100 = vst [vmem:[#allocation48_spill] sm:$0xff] %v5198_v4  ;;  %6101 = vst [vmem:[#allocation49_spill] sm:$0xff] %v5200_v52  ;;  %v2251_v62 = vrot.slane %v2219_v46, 4  ;;  %v2252_v60 = vrot.slane %v2220_v61, 4  ;;  %v2253_v11 = vrot.slane %v2221_v39, 4  ;;  %v2254_v63 = vrot.slane %v2222_v45, 4 }
 0x14a   : > { %v2255_v50 = vrot.slane %v2223_v18, 4  ;;  %v2256_v54 = vrot.slane %v2224_v12, 4  ;;  %v2257_v26 = vrot.slane %v2225_v14, 4  ;;  %v2282_v8 = vsub.f32 %v2154_v51, %v2250_v43 }
 0x14b   : > { %v2283_v13 = vsub.f32 %v2155_v1, %v2251_v62  ;;  %v2284_v53 = vsub.f32 %v2156_v57, %v2252_v60  ;;  %v2285_v32 = vsub.f32 %v2157_v34, %v2253_v11  ;;  %v2286_v48 = vsub.f32 %v2158_v59, %v2254_v63 }
 0x14c   : > { %v2287_v42 = vsub.f32 %v2159_v41, %v2255_v50  ;;  %v2288_v21 = vsub.f32 %v2160_v35, %v2256_v54  ;;  %v2289_v20 = vsub.f32 %v2161_v5, %v2257_v26  ;;  %v2298_v31 = vmax.f32 %v2282_v8, 0.0 }
 0x14d   : > { %v2299_v16 = vmax.f32 %v2283_v13, 0.0  ;;  %v2300_v4 = vmax.f32 %v2284_v53, 0.0  ;;  %v2301_v52 = vmax.f32 %v2285_v32, 0.0  ;;  %v2302_v33 = vmax.f32 %v2286_v48, 0.0 }
 0x14e   : > { %v2303_v46 = vmax.f32 %v2287_v42, 0.0  ;;  %v2304_v61 = vmax.f32 %v2288_v21, 0.0  ;;  %v2305_v39 = vmax.f32 %v2289_v20, 0.0  ;;  %v2330_v45 = vrot.slane %v2298_v31, 1 }
 0x14f   : > { %v2331_v18 = vrot.slane %v2299_v16, 1  ;;  %v2332_v12 = vrot.slane %v2300_v4, 1  ;;  %v2333_v14 = vrot.slane %v2301_v52, 1  ;;  %v2334_v51 = vrot.slane %v2302_v33, 1 }
 0x150   : > { %v2335_v1 = vrot.slane %v2303_v46, 1  ;;  %v2336_v60 = vrot.slane %v2304_v61, 1  ;;  %v2337_v11 = vrot.slane %v2305_v39, 1  ;;  %v5218_v63 = vmul.f32 %v2330_v45, %v2298_v31 }
 0x151   : > { %v5220_v54 = vmul.f32 %v2331_v18, %v2299_v16  ;;  %v5222_v8 = vmul.f32 %v2332_v12, %v2300_v4  ;;  %v5224_v53 = vmul.f32 %v2333_v14, %v2301_v52  ;;  %v5226_v48 = vmul.f32 %v2334_v51, %v2302_v33  ;;  %v6102_v12 = vld [vmem:[#allocation48_spill] sm:$0xff]  ;;  %v6103_v14 = vld [vmem:[#allocation38_spill] sm:$0xff] }
 0x152   : > { %v5228_v21 = vmul.f32 %v2335_v1, %v2303_v46  ;;  %v5230_v20 = vmul.f32 %v2336_v60, %v2304_v61  ;;  %v5232_v42 = vmul.f32 %v2337_v11, %v2305_v39  ;;  %v2394_v32 = vrot.slane %v5072_v27, 4  ;;  %v6104_v1 = vld [vmem:[#allocation49_spill] sm:$0xff]  ;;  %v6105_v60 = vld [vmem:[#allocation39_spill] sm:$0xff] }
 0x153   : > { %v2395_v13 = vrot.slane %v5075_v58, 4  ;;  %v2396_v26 = vrot.slane %v5078_v37, 4  ;;  %v2397_v50 = vrot.slane %v5087_v19, 4  ;;  %v2398_v4 = vrot.slane %v5089_v29, 4 }
 0x154   : > { %v2399_v16 = vrot.slane %v5097_v56, 4  ;;  %v2400_v31 = vrot.slane %v5099_v6, 4  ;;  %v2401_v35 = vrot.slane %v5101_v40, 4  ;;  %v2426_v5 = vsub.f32 %v5119_v17, %v2394_v32 }
 0x155   : > { %v2427_v52 = vsub.f32 %v5121_v30, %v2395_v13  ;;  %v2428_v57 = vsub.f32 %v5132_v25, %v2396_v26  ;;  %v2429_v34 = vsub.f32 %v5134_v24, %v2397_v50  ;;  %v2430_v59 = vsub.f32 %v5136_v9, %v2398_v4 }
 0x156   : > { %v2431_v41 = vsub.f32 %v5138_v23, %v2399_v16  ;;  %v2432_v43 = vsub.f32 %v5143_v10, %v2400_v31  ;;  %v2433_v62 = vsub.f32 %v5145_v2, %v2401_v35  ;;  %v2442_v33 = vsub.f32 %v5095_v28, %v5185_v38 }
 0x157   : > { %v2443_v46 = vsub.f32 %v5105_v7, %v5187_v22  ;;  %v2444_v61 = vsub.f32 %v5111_v15, %v5189_v47  ;;  %v2445_v39 = vsub.f32 %v5114_v49, %v5192_v3  ;;  %v2446_v45 = vsub.f32 %v5117_v0, %v5194_v36 }
 0x158   : > { %v2447_v18 = vsub.f32 %v5124_v55, %v5196_v44  ;;  %v2448_v51 = vsub.f32 %v6103_v14, %v6102_v12  ;;  %v2449_v11 = vsub.f32 %v6105_v60, %v6104_v1  ;;  %v2474_v32 = vrot.slane %v2426_v5, 1 }
 0x159   : > { %v2475_v13 = vrot.slane %v2427_v52, 1  ;;  %v2476_v26 = vrot.slane %v2428_v57, 1  ;;  %v2477_v50 = vrot.slane %v2429_v34, 1  ;;  %v2478_v4 = vrot.slane %v2430_v59, 1 }
 0x15a   : > { %v2479_v16 = vrot.slane %v2431_v41, 1  ;;  %v2480_v31 = vrot.slane %v2432_v43, 1  ;;  %v2481_v35 = vrot.slane %v2433_v62, 1  ;;  %v2506_v40 = vmul.f32 %v2474_v32, %v2426_v5 }
 0x15b   : > { %v2507_v6 = vmul.f32 %v2475_v13, %v2427_v52  ;;  %v2508_v56 = vmul.f32 %v2476_v26, %v2428_v57  ;;  %v2509_v29 = vmul.f32 %v2477_v50, %v2429_v34  ;;  %v2510_v36 = vmul.f32 %v2478_v4, %v2430_v59 }
 0x15c   : > { %v2511_v44 = vmul.f32 %v2479_v16, %v2431_v41  ;;  %v2512_v19 = vmul.f32 %v2480_v31, %v2432_v43  ;;  %v2513_v3 = vmul.f32 %v2481_v35, %v2433_v62  ;;  %v2538_v12 = vrot.slane %v2442_v33, 1 }
 0x15d   : > { %v2539_v37 = vrot.slane %v2443_v46, 1  ;;  %v2540_v47 = vrot.slane %v2444_v61, 1  ;;  %v2541_v1 = vrot.slane %v2445_v39, 1  ;;  %v2542_v58 = vrot.slane %v2446_v45, 1 }
 0x15e   : > { %v2543_v22 = vrot.slane %v2447_v18, 1  ;;  %v2544_v27 = vrot.slane %v2448_v51, 1  ;;  %v2545_v38 = vrot.slane %v2449_v11, 1  ;;  %v2570_v2 = vmul.f32 %v2538_v12, %v2442_v33 }
 0x15f   : > { %v2571_v60 = vmul.f32 %v2539_v37, %v2443_v46  ;;  %v2572_v10 = vmul.f32 %v2540_v47, %v2444_v61  ;;  %v2573_v14 = vmul.f32 %v2541_v1, %v2445_v39  ;;  %v2574_v5 = vmul.f32 %v2542_v58, %v2446_v45 }
 0x160   : > { %v2575_v52 = vmul.f32 %v2543_v22, %v2447_v18  ;;  %v2576_v57 = vmul.f32 %v2544_v27, %v2448_v51  ;;  %v2577_v34 = vmul.f32 %v2545_v38, %v2449_v11  ;;  %v2602_v59 = vrot.slane %v2570_v2, 4 }
 0x161   : > { %v2603_v41 = vrot.slane %v2571_v60, 4  ;;  %v2604_v43 = vrot.slane %v2572_v10, 4  ;;  %v2605_v62 = vrot.slane %v2573_v14, 4  ;;  %v2606_v32 = vrot.slane %v2574_v5, 4  ;;  %v6112_v5 = vld [vmem:[#allocation38_spill] sm:$0xff] }
 0x162   : > { %v2607_v13 = vrot.slane %v2575_v52, 4  ;;  %v2608_v26 = vrot.slane %v2576_v57, 4  ;;  %v2609_v50 = vrot.slane %v2577_v34, 4  ;;  %v2634_v4 = vadd.f32 %v2602_v59, %v2506_v40  ;;  %v6114_v57 = vld [vmem:[#allocation40_spill] sm:$0xff]  ;;  %v6115_v34 = vld [vmem:[#allocation39_spill] sm:$0xff]  ;;  %v6117_v59 = vld [vmem:[#allocation41_spill] sm:$0xff] }
 0x163   : > { %v2635_v16 = vadd.f32 %v2603_v41, %v2507_v6  ;;  %v2636_v31 = vadd.f32 %v2604_v43, %v2508_v56  ;;  %v2637_v35 = vadd.f32 %v2605_v62, %v2509_v29  ;;  %v2638_v33 = vadd.f32 %v2606_v32, %v2510_v36  ;;  %v6120_v41 = vld [vmem:[#allocation43_spill] sm:$0xff]  ;;  %v6123_v32 = vld [vmem:[#allocation32_spill] sm:$0xff] }
 0x164   : > { %v2639_v37 = vadd.f32 %v2607_v13, %v2511_v44  ;;  %v2640_v47 = vadd.f32 %v2608_v26, %v2512_v19  ;;  %v2641_v46 = vadd.f32 %v2609_v50, %v2513_v3  ;;  %v2650_v58 = vsub.f32 %v2634_v4, %v5218_v63  ;;  %v6121_v43 = vld [vmem:[#allocation31_spill] sm:$0xff]  ;;  %v6124_v13 = vld [vmem:[#allocation45_spill] sm:$0xff]  ;;  %v6126_v4 = vld [vmem:[#allocation46_spill] sm:$0xff] }
 0x165   : > { %v2651_v27 = vsub.f32 %v2635_v16, %v5220_v54  ;;  %v2652_v2 = vsub.f32 %v2636_v31, %v5222_v8  ;;  %v2653_v10 = vsub.f32 %v2637_v35, %v5224_v53  ;;  %v2654_v38 = vsub.f32 %v2638_v33, %v5226_v48  ;;  %v6125_v26 = vld [vmem:[#allocation33_spill] sm:$0xff]  ;;  %v6127_v16 = vld [vmem:[#allocation34_spill] sm:$0xff]  ;;  %v6128_v35 = vld [vmem:[#allocation47_spill] sm:$0xff] }
 0x166   : > { %v2655_v22 = vsub.f32 %v2639_v37, %v5228_v21  ;;  %v2656_v6 = vsub.f32 %v2640_v47, %v5230_v20  ;;  %v2657_v29 = vsub.f32 %v2641_v46, %v5232_v42  ;;  %v5274_v36 = vadd.f32 1e-09, %v2650_v58  ;;  %v6129_v33 = vld [vmem:[#allocation35_spill] sm:$0xff]  ;;  %v6130_v47 = vld [vmem:[#allocation48_spill] sm:$0xff] }
 0x167   : > { %v5276_v19 = vadd.f32 1e-09, %v2651_v27  ;;  %v5278_v56 = vadd.f32 1e-09, %v2652_v2  ;;  %v5280_v40 = vadd.f32 1e-09, %v2653_v10  ;;  %v2731_v62 = vmin.f32 %v6121_v43, %v6120_v41 }
 0x168   : > { %v5282_v3 = vadd.f32 1e-09, %v2654_v38  ;;  %v5284_v44 = vadd.f32 1e-09, %v2655_v22  ;;  %v6106_v61 = vrot.slane %v5095_v28, 4  ;;  %3618 = vrcp.f32 %v5274_v36  ;;  %v6131_v46 = vld [vmem:[#allocation36_spill] sm:$0xff] }
 0x169   : > { %v5289_v45 = vadd.f32 1e-09, %v2656_v6  ;;  %v5291_v18 = vadd.f32 1e-09, %v2657_v29  ;;  %v6107_v12 = vrot.slane %v5105_v7, 4  ;;  %3620 = vrcp.f32 %v5276_v19  ;;  %v6132_v27 = vld [vmem:[#allocation49_spill] sm:$0xff] }
 0x16a   : > { %v2714_v39 = vmax.f32 %v5119_v17, %v6106_v61  ;;  %v6108_v51 = vrot.slane %v5111_v15, 4  ;;  %v6109_v28 = vrot.slane %v5114_v49, 4  ;;  %v6110_v60 = vrot.slane %v5117_v0, 4  ;;  %v6119_v0 = vld [vmem:[#allocation30_spill] sm:$0xff]  ;;  %v6133_v2 = vld [vmem:[#allocation37_spill] sm:$0xff] }
 0x16b   : > { %v2715_v14 = vmax.f32 %v5121_v30, %v6107_v12  ;;  %3622 = vrcp.f32 %v5278_v56  ;;  %v6111_v7 = vrot.slane %v5124_v55, 4  ;;  %v6113_v52 = vrot.slane %v6112_v5, 4  ;;  %v6122_v55 = vld [vmem:[#allocation44_spill] sm:$0xff] }
 0x16c   : > { %v2716_v1 = vmax.f32 %v5132_v25, %v6108_v51  ;;  %v2717_v17 = vmax.f32 %v5134_v24, %v6109_v28  ;;  %v2718_v11 = vmax.f32 %v5136_v9, %v6110_v60  ;;  %v6116_v25 = vrot.slane %v6115_v34, 4  ;;  %v6118_v24 = vld [vmem:[#allocation42_spill] sm:$0xff] }
 0x16d   : > { %v2719_v30 = vmax.f32 %v5138_v23, %v6111_v7  ;;  %v2720_v15 = vmax.f32 %v6114_v57, %v6113_v52  ;;  %3624 = vrcp.f32 %v5280_v40  ;;  %v2730_v9 = vmin.f32 %v6119_v0, %v6118_v24  ;;  %v3433_v61 = vld [vmem:[%s4056_s18 + $0x82] ss:$8 sm:$0xf] }
 0x16e   : > { %v2721_v49 = vmax.f32 %v6117_v59, %v6116_v25  ;;  %v2732_v23 = vmin.f32 %v6123_v32, %v6122_v55  ;;  %3626 = vrcp.f32 %v5282_v3  ;;  %v2733_v50 = vmin.f32 %v6125_v26, %v6124_v13  ;;  %v3434_v60 = vld [vmem:[%s4056_s18 + $0x82] ss:$8 sm:$0xf0] }
 0x16f   : > { %v2734_v31 = vmin.f32 %v6127_v16, %v6126_v4  ;;  %v2735_v37 = vmin.f32 %v6129_v33, %v6128_v35  ;;  %3628 = vrcp.f32 %v5284_v44  ;;  %v2736_v58 = vmin.f32 %v6131_v46, %v6130_v47 }
 0x170   : > { %v2737_v10 = vmin.f32 %v6133_v2, %v6132_v27  ;;  %v2762_v38 = vrot.slane %v2730_v9, 4  ;;  %3630 = vrcp.f32 %v5289_v45  ;;  %v2763_v22 = vrot.slane %v2731_v62, 4 }
 0x171   : > { %v2764_v6 = vrot.slane %v2732_v23, 4  ;;  %v2765_v29 = vrot.slane %v2733_v50, 4  ;;  %3632 = vrcp.f32 %v5291_v18  ;;  %v2766_v12 = vrot.slane %v2734_v31, 4 }
 0x172   : > { %v2767_v51 = vrot.slane %v2735_v37, 4  ;;  %v2768_v28 = vrot.slane %v2736_v58, 4  ;;  %v2769_v7 = vrot.slane %v2737_v10, 4  ;;  %v2794_v5 = vsub.f32 %v2714_v39, %v2762_v38  ;;  %v3619_v0 = vpop.eup %3618 }
 0x173   : > { %v2795_v52 = vsub.f32 %v2715_v14, %v2763_v22  ;;  %v2796_v57 = vsub.f32 %v2716_v1, %v2764_v6  ;;  %v2797_v34 = vsub.f32 %v2717_v17, %v2765_v29  ;;  %v2798_v25 = vsub.f32 %v2718_v11, %v2766_v12  ;;  %v3621_v55 = vpop.eup %3620  ;;  %v1937_v12 = vld [vmem:[%s4056_s18 + $0x78] sm:$0x30] }
 0x174   : > { %v2799_v59 = vsub.f32 %v2719_v30, %v2767_v51  ;;  %v2800_v24 = vsub.f32 %v2720_v15, %v2768_v28  ;;  %v2801_v9 = vsub.f32 %v2721_v49, %v2769_v7  ;;  %v2826_v41 = vrot.slane %v2794_v5, 1  ;;  %v1914_v7 = vld [vmem:[%s4056_s18 + $0x40] sm:$0xc]  ;;  %v1936_v28 = vld [vmem:[%s4056_s18 + $0x70] sm:$0x30] }
 0x175   : > { %v2827_v43 = vrot.slane %v2795_v52, 1  ;;  %v2828_v62 = vrot.slane %v2796_v57, 1  ;;  %v5340_v32 = vor.u32 %v3434_v60, %v3433_v61  ;;  %v2829_v23 = vrot.slane %v2797_v34, 1  ;;  %v3623_v50 = vpop.eup %3622  ;;  %v1933_v60 = vld [vmem:[%s4056_s18 + $0x58] sm:$0x30] }
 0x176   : > { %v2830_v13 = vrot.slane %v2798_v25, 1  ;;  %v2831_v26 = vrot.slane %v2799_v59, 1  ;;  %v5343_v39 = vmul.f32 %v3619_v0, %v5218_v63  ;;  %v2832_v14 = vrot.slane %v2800_v24, 1  ;;  %v1918_v0 = vld [vmem:[%s4056_s18 + $0x60] sm:$0xc] }
 0x177   : > { %v2833_v1 = vrot.slane %v2801_v9, 1  ;;  %v2858_v17 = vmul.f32 %v2826_v41, %v2794_v5  ;;  %v3625_v11 = vpop.eup %3624  ;;  %v5346_v30 = vmul.f32 %v3621_v55, %v5220_v54  ;;  %v2859_v15 = vmul.f32 %v2827_v43, %v2795_v52  ;;  %v1915_v5 = vld [vmem:[%s4056_s18 + $0x48] sm:$0xc]  ;;  %v6136_v43 = vld [vmem:[#allocation8_spill] sm:$0xff]  ;;  %v6137_v55 = vld [vmem:[#allocation9_spill] sm:$0xff] }
 0x178   : > { %v2860_v49 = vmul.f32 %v2828_v62, %v2796_v57  ;;  %v2861_v4 = vmul.f32 %v2829_v23, %v2797_v34  ;;  %v3627_v16 = vpop.eup %3626  ;;  %v5349_v31 = vmul.f32 %v3623_v50, %v5222_v8  ;;  %v2862_v35 = vmul.f32 %v2830_v13, %v2798_v25  ;;  %v6134_v34 = vld [vmem:[#allocation6_spill] sm:$0xff]  ;;  %v1898_v13 = vld [vmem:[%s4056_s18 + $0x40] sm:$0x3]  ;;  %v1900_v50 = vld [vmem:[%s4056_s18 + $0x50] sm:$0x3] }
 0x179   : > { %v2863_v33 = vmul.f32 %v2831_v26, %v2799_v59  ;;  %v2864_v37 = vmul.f32 %v2832_v14, %v2800_v24  ;;  %v3629_v47 = vpop.eup %3628  ;;  %v5352_v63 = vmul.f32 %v3625_v11, %v5224_v53  ;;  %v5355_v46 = vmul.f32 %v3627_v16, %v5226_v48  ;;  %v1916_v59 = vld [vmem:[%s4056_s18 + $0x50] sm:$0xc]  ;;  %v1917_v24 = vld [vmem:[%s4056_s18 + $0x58] sm:$0xc]  ;;  %v1899_v26 = vld [vmem:[%s4056_s18 + $0x48] sm:$0x3] }
 0x17a   : > { %v2865_v58 = vmul.f32 %v2833_v1, %v2801_v9  ;;  %v5357_v54 = vadd.f32 1e-09, %v2858_v17  ;;  %v3631_v27 = vpop.eup %3630  ;;  %v5360_v2 = vmul.f32 %v3629_v47, %v5228_v21  ;;  %v5362_v10 = vadd.f32 1e-09, %v2859_v15  ;;  %v6135_v9 = vld [vmem:[#allocation7_spill] sm:$0xff]  ;;  %v6138_v14 = vld [vmem:[#allocation10_spill] sm:$0xff] }
 0x17b   : > { %v5364_v8 = vadd.f32 1e-09, %v2860_v49  ;;  %v5366_v38 = vadd.f32 1e-09, %v2861_v4  ;;  %v3633_v53 = vpop.eup %3632  ;;  %v5369_v22 = vmul.f32 %v3631_v27, %v5230_v20  ;;  %v5371_v48 = vadd.f32 1e-09, %v2862_v35 }
 0x17c   : > { %v5373_v6 = vadd.f32 1e-09, %v2863_v33  ;;  %v5375_v29 = vadd.f32 1e-09, %v2864_v37  ;;  %v5378_v21 = vmul.f32 %v3633_v53, %v5232_v42  ;;  %v5380_v61 = vadd.f32 1e-09, %v2865_v58 }
 0x17d   : > { %3634 = vrcp.f32 %v5357_v54  ;;  %v6139_v17 = vld [vmem:[#allocation11_spill] sm:$0xff]  ;;  %v6140_v15 = vld [vmem:[#allocation12_spill] sm:$0xff]  ;;  %v1919_v16 = vld [vmem:[%s4056_s18 + $0x68] sm:$0xc]  ;;  %v2002_v53 = vrot.slane %v1914_v7, 2  ;;  %v2003_v1 = vrot.slane %v1915_v5, 2 }
 0x17e   : > { %3636 = vrcp.f32 %v5362_v10  ;;  %v1901_v4 = vld [vmem:[%s4056_s18 + $0x58] sm:$0x3]  ;;  %v1920_v35 = vld [vmem:[%s4056_s18 + $0x70] sm:$0xc]  ;;  %v1921_v33 = vld [vmem:[%s4056_s18 + $0x78] sm:$0xc] }
 0x17f   : > { %3638 = vrcp.f32 %v5364_v8  ;;  %v6141_v37 = vld [vmem:[#allocation13_spill] sm:$0xff]  ;;  %v1903_v27 = vld [vmem:[%s4056_s18 + $0x68] sm:$0x3]  ;;  %v1904_v11 = vld [vmem:[%s4056_s18 + $0x70] sm:$0x3]  ;;  %v2004_v49 = vrot.slane %v1916_v59, 2  ;;  %v5439_v52 = vsub.f32 %v1898_v13, %v2002_v53  ;;  %v5441_v59 = vsub.f32 %v1899_v26, %v2003_v1 }
 0x180   : > { %3640 = vrcp.f32 %v5366_v38  ;;  %v1902_v58 = vld [vmem:[%s4056_s18 + $0x60] sm:$0x3]  ;;  %v2005_v23 = vrot.slane %v1917_v24, 2  ;;  %v2006_v62 = vrot.slane %v1918_v0, 2  ;;  %v1905_v41 = vld [vmem:[%s4056_s18 + $0x78] sm:$0x3] }
 0x181   : > { %3642 = vrcp.f32 %v5371_v48  ;;  %v2007_v25 = vrot.slane %v1919_v16, 2  ;;  %v2008_v47 = vrot.slane %v1920_v35, 2  ;;  %v2009_v57 = vrot.slane %v1921_v33, 2  ;;  %v1930_v7 = vld [vmem:[%s4056_s18 + $0x40] sm:$0x30]  ;;  %6142 = vst [vmem:[#allocation38_spill] sm:$0xff] %v5439_v52 }
 0x182   : > { %3644 = vrcp.f32 %v5373_v6  ;;  %v1931_v5 = vld [vmem:[%s4056_s18 + $0x48] sm:$0x30]  ;;  %6143 = vst [vmem:[#allocation40_spill] sm:$0xff] %v5441_v59  ;;  %v5443_v24 = vsub.f32 %v1900_v50, %v2004_v49  ;;  %v1932_v0 = vld [vmem:[%s4056_s18 + $0x50] sm:$0x30]  ;;  %v5449_v35 = vsub.f32 %v1901_v4, %v2005_v23  ;;  %v5451_v33 = vsub.f32 %v1902_v58, %v2006_v62 }
 0x183   : > { %3646 = vrcp.f32 %v5375_v29  ;;  %v1934_v16 = vld [vmem:[%s4056_s18 + $0x60] sm:$0x30]  ;;  %v5453_v42 = vsub.f32 %v1903_v27, %v2007_v25  ;;  %v1935_v53 = vld [vmem:[%s4056_s18 + $0x68] sm:$0x30]  ;;  %v5457_v51 = vsub.f32 %v1904_v11, %v2008_v47  ;;  %v5459_v1 = vsub.f32 %v1905_v41, %v2009_v57  ;;  %v5463_v62 = vld [vmem:[%s4056_s18 + $0xc0] sm:$0x3] }
 0x184   : > { %6144 = vst [vmem:[#allocation39_spill] sm:$0xff] %v5443_v24  ;;  %3648 = vrcp.f32 %v5380_v61  ;;  %6145 = vst [vmem:[#allocation41_spill] sm:$0xff] %v5449_v35  ;;  %v2066_v49 = vrot.slane %v1898_v13, 4  ;;  %v2067_v20 = vrot.slane %v1899_v26, 4  ;;  %v2068_v24 = vrot.slane %v1900_v50, 4 }
 0x185   : > { %6146 = vst [vmem:[#allocation42_spill] sm:$0xff] %v5451_v33  ;;  %6147 = vst [vmem:[#allocation30_spill] sm:$0xff] %v5453_v42  ;;  %v2069_v59 = vrot.slane %v1901_v4, 4  ;;  %v2070_v23 = vrot.slane %v1902_v58, 4  ;;  %v2071_v35 = vrot.slane %v1903_v27, 4  ;;  %v2072_v42 = vrot.slane %v1904_v11, 4 }
 0x186   : > { %6148 = vst [vmem:[#allocation43_spill] sm:$0xff] %v5457_v51  ;;  %6149 = vst [vmem:[#allocation31_spill] sm:$0xff] %v5459_v1  ;;  %v5466_v25 = vld [vmem:[%s4056_s18 + $0xc8] sm:$0x3]  ;;  %v2073_v47 = vrot.slane %v1905_v41, 4  ;;  %v5468_v51 = vadd.f32 %v2066_v49, %v1930_v7  ;;  %v5470_v57 = vadd.f32 %v2067_v20, %v1931_v5  ;;  %v6150_v26 = vsub.f32 %v5357_v54, %v5274_v36 }
 0x187   : > { %v3635_v52 = vpop.eup %3634  ;;  %v5476_v4 = vld [vmem:[%s4056_s18 + $0xd0] sm:$0x3]  ;;  %v5479_v58 = vld [vmem:[%s4056_s18 + $0xd8] sm:$0x3]  ;;  %v5481_v27 = vadd.f32 %v2068_v24, %v1932_v0  ;;  %v5483_v1 = vadd.f32 %v2069_v59, %v1933_v60  ;;  %v5485_v11 = vadd.f32 %v2070_v23, %v1934_v16  ;;  %v6152_v20 = vsub.f32 %v5362_v10, %v5276_v19  ;;  %v5491_v5 = vld [vmem:[%s4056_s18 + $0xe0] sm:$0x3] }
 0x188   : > { %v3637_v13 = vpop.eup %3636  ;;  %v2907_v50 = vmul.f32 %v3635_v52, %v6150_v26  ;;  %6153 = vst [vmem:[#allocation32_spill] sm:$0xff] %v5491_v5  ;;  %v5493_v36 = vadd.f32 %v2071_v35, %v1935_v53  ;;  %v5495_v54 = vadd.f32 %v2072_v42, %v1936_v28  ;;  %v5497_v52 = vadd.f32 %v2073_v47, %v1937_v12  ;;  %v5504_v0 = vld [vmem:[%s4056_s18 + $0xe8] sm:$0x3] }
 0x189   : > { %6151 = vst [vmem:[#allocation44_spill] sm:$0xff] %v5485_v11  ;;  %v3639_v41 = vpop.eup %3638  ;;  %v2909_v7 = vmul.f32 %v3637_v13, %v6152_v20  ;;  %v6157_v60 = vsub.f32 %v5364_v8, %v5278_v56  ;;  %6158 = vst [vmem:[#allocation34_spill] sm:$0xff] %v5504_v0  ;;  %v5970_v19 = vrot.slane %v5463_v62, 4  ;;  %v5969_v10 = vrot.slane %v5466_v25, 4 }
 0x18a   : > { %6154 = vst [vmem:[#allocation45_spill] sm:$0xff] %v5493_v36  ;;  %6155 = vst [vmem:[#allocation33_spill] sm:$0xff] %v5495_v54  ;;  %v3641_v49 = vpop.eup %3640  ;;  %v2938_v24 = vsub.f32 %v5343_v39, %v2907_v50  ;;  %v6159_v28 = vsub.f32 %v5366_v38, %v5280_v40  ;;  %v5968_v35 = vrot.slane %v5476_v4, 4  ;;  %v5967_v56 = vrot.slane %v5479_v58, 4 }
 0x18b   : > { %6156 = vst [vmem:[#allocation46_spill] sm:$0xff] %v5497_v52  ;;  %v2911_v59 = vmul.f32 %v3639_v41, %v6157_v60  ;;  %v3643_v16 = vpop.eup %3642  ;;  %v2939_v12 = vsub.f32 %v5346_v30, %v2909_v7  ;;  %v6160_v39 = vsub.f32 %v5371_v48, %v5282_v3  ;;  %v5966_v13 = vrot.slane %v5491_v5, 4 }
 0x18c   : > { %v2913_v42 = vmul.f32 %v3641_v49, %v6159_v28  ;;  %v3645_v8 = vpop.eup %3644  ;;  %v2954_v47 = vsub.f32 1.0, %v2938_v24  ;;  %v6161_v40 = vsub.f32 %v5373_v6, %v5284_v44  ;;  %v5965_v41 = vrot.slane %v5504_v0, 4  ;;  %v6163_v49 = vld [vmem:[#allocation14_spill] sm:$0xff]  ;;  %v6165_v24 = vld [vmem:[#allocation15_spill] sm:$0xff] }
 0x18d   : > { %v2915_v53 = vmul.f32 %v3643_v16, %v6160_v39  ;;  %v2940_v23 = vsub.f32 %v5349_v31, %v2911_v59  ;;  %v3647_v26 = vpop.eup %3646  ;;  %v2955_v50 = vsub.f32 1.0, %v2939_v12  ;;  %v6162_v3 = vsub.f32 %v5375_v29, %v5289_v45  ;;  %v5535_v28 = vld [vmem:[%s4056_s18 + $0xf0] sm:$0x3] }
 0x18e   : > { %v2917_v30 = vmul.f32 %v3645_v8, %v6161_v40  ;;  %v2941_v38 = vsub.f32 %v5352_v63, %v2913_v42  ;;  %v3649_v20 = vpop.eup %3648  ;;  %v2972_v60 = vmul.f32 %v2954_v47, %v6163_v49  ;;  %v6164_v44 = vsub.f32 %v5380_v61, %v5291_v18  ;;  %6166 = vst [vmem:[#allocation47_spill] sm:$0xff] %v5535_v28  ;;  %v6167_v42 = vld [vmem:[#allocation16_spill] sm:$0xff]  ;;  %v6169_v61 = vld [vmem:[#allocation17_spill] sm:$0xff] }
 0x18f   : > { %v2919_v48 = vmul.f32 %v3647_v26, %v6162_v3  ;;  %v2942_v31 = vsub.f32 %v5355_v46, %v2915_v53  ;;  %v2956_v7 = vsub.f32 1.0, %v2940_v23  ;;  %v2973_v16 = vmul.f32 %v2955_v50, %v6165_v24  ;;  %v5548_v47 = vld [vmem:[%s4056_s18 + $0xf8] sm:$0x3]  ;;  %v6178_v24 = vld [vmem:[#allocation21_spill] sm:$0xff] }
 0x190   : > { %v2921_v6 = vmul.f32 %v3649_v20, %v6164_v44  ;;  %v2943_v63 = vsub.f32 %v5360_v2, %v2917_v30  ;;  %v2957_v59 = vsub.f32 1.0, %v2941_v38  ;;  %v6168_v12 = vrot.slane %v5340_v32, %v6134_v34  ;;  %6171 = vst [vmem:[#allocation35_spill] sm:$0xff] %v5548_v47  ;;  %v6174_v20 = vld [vmem:[#allocation19_spill] sm:$0xff]  ;;  %v6176_v49 = vld [vmem:[#allocation20_spill] sm:$0xff] }
 0x191   : > { %v2944_v45 = vsub.f32 %v5369_v22, %v2919_v48  ;;  %v2958_v29 = vsub.f32 1.0, %v2942_v31  ;;  %v2974_v46 = vmul.f32 %v2956_v7, %v6167_v42  ;;  %v6170_v2 = vrot.slane %v5340_v32, %v6135_v9  ;;  %v6172_v22 = vld [vmem:[#allocation18_spill] sm:$0xff] }
 0x192   : > { %v3070_v8 = vmul.f32 %v6168_v12, %v2972_v60  ;;  %v2945_v39 = vsub.f32 %v5378_v21, %v2921_v6  ;;  %v2959_v18 = vsub.f32 1.0, %v2943_v63  ;;  %v2975_v53 = vmul.f32 %v2957_v59, %v6169_v61  ;;  %v1947_v61 = vld [vmem:[%s4056_s18 + $0x48] sm:$0xc0] }
 0x193   : > { %v3071_v23 = vmul.f32 %v6170_v2, %v2973_v16  ;;  %v2960_v26 = vsub.f32 1.0, %v2944_v45  ;;  %v2976_v40 = vmul.f32 %v2958_v29, %v6172_v22  ;;  %v6173_v30 = vrot.slane %v5340_v32, %v6136_v43 }
 0x194   : > { %v5963_v21 = vrot.slane %v5535_v28, 4  ;;  %v2961_v50 = vsub.f32 1.0, %v2945_v39  ;;  %v2977_v3 = vmul.f32 %v2959_v18, %v6174_v20  ;;  %v6175_v48 = vrot.slane %v5340_v32, %v6137_v55  ;;  %v1950_v20 = vld [vmem:[%s4056_s18 + $0x60] sm:$0xc0] }
 0x195   : > { %v3072_v38 = vmul.f32 %v6173_v30, %v2974_v46  ;;  %v3102_v7 = vcombine.high %v3070_v8, %v3071_v23  ;;  %v2978_v60 = vmul.f32 %v2960_v26, %v6176_v49  ;;  %v6177_v44 = vrot.slane %v5340_v32, %v6138_v14  ;;  %v6180_v46 = vld [vmem:[#allocation5_spill] sm:$0xff] }
 0x196   : > { %v3073_v31 = vmul.f32 %v6175_v48, %v2975_v53  ;;  %v5964_v63 = vrot.slane %v5548_v47, 4  ;;  %v5567_v59 = vmin.f32 %v5468_v51, %v5970_v19  ;;  %v2979_v16 = vmul.f32 %v2961_v50, %v6178_v24  ;;  %v1946_v8 = vld [vmem:[%s4056_s18 + $0x40] sm:$0xc0]  ;;  %v1948_v53 = vld [vmem:[%s4056_s18 + $0x50] sm:$0xc0] }
 0x197   : > { %v3074_v6 = vmul.f32 %v6177_v44, %v2976_v40  ;;  %v6179_v45 = vrot.slane %v5340_v32, %v6139_v17  ;;  %v3112_v12 = vrot.slane %v3102_v7, %v6180_v46  ;;  %v6181_v39 = vrot.slane %v5340_v32, %v6140_v15  ;;  %v1949_v50 = vld [vmem:[%s4056_s18 + $0x58] sm:$0xc0] }
 0x198   : > { %v3103_v42 = vcombine.high %v3072_v38, %v3073_v31  ;;  %v2163_v2 = vmin.f32 %v5470_v57, %v5969_v10  ;;  %v2164_v23 = vmin.f32 %v5481_v27, %v5968_v35  ;;  %v2165_v26 = vmin.f32 %v5483_v1, %v5967_v56  ;;  %v1952_v31 = vld [vmem:[%s4056_s18 + $0x70] sm:$0xc0]  ;;  %v1953_v7 = vld [vmem:[%s4056_s18 + $0x78] sm:$0xc0] }
 0x199   : > { %v3075_v29 = vmul.f32 %v6179_v45, %v2977_v3  ;;  %v3076_v18 = vmul.f32 %v6181_v39, %v2978_v60  ;;  %v6182_v22 = vrot.slane %v5340_v32, %v6141_v37  ;;  %v1951_v3 = vld [vmem:[%s4056_s18 + $0x68] sm:$0xc0]  ;;  %v2166_v48 = vmin.f32 %v5485_v11, %v5966_v13  ;;  %v6195_v13 = vld [vmem:[#allocation31_spill] sm:$0xff] }
 0x19a   : > { %v3119_v38 = vrot.slane %v3103_v42, %v6180_v46  ;;  %v2167_v49 = vmin.f32 %v5493_v36, %v5965_v41  ;;  %v2168_v32 = vmin.f32 %v5495_v54, %v5963_v21  ;;  %v2169_v60 = vmin.f32 %v5497_v52, %v5964_v63 }
 0x19b   : > { %v3077_v40 = vmul.f32 %v6182_v22, %v2979_v16  ;;  %v3104_v30 = vcombine.high %v3074_v6, %v3075_v29  ;;  %v5610_v44 = vrot.slane %v1946_v8, 6  ;;  %v5613_v45 = vrot.slane %v1947_v61, 6 }
 0x19c   : > { %v3134_v16 = vcombine.low %v3112_v12, %v3119_v38  ;;  %v5615_v29 = vrot.slane %v1948_v53, 6  ;;  %v5617_v42 = vrot.slane %v1949_v50, 6  ;;  %v5619_v39 = vrot.slane %v1950_v20, 6  ;;  %v6189_v12 = vld [vmem:[#allocation38_spill] sm:$0xff]  ;;  %v6190_v53 = vld [vmem:[#allocation40_spill] sm:$0xff]  ;;  %v6192_v50 = vld [vmem:[#allocation41_spill] sm:$0xff] }
 0x19d   : > { %v3105_v6 = vcombine.high %v3076_v18, %v3077_v40  ;;  %v3126_v24 = vrot.slane %v3104_v30, %v6180_v46  ;;  %v5621_v22 = vrot.slane %v1951_v3, 6  ;;  %v5625_v8 = vrot.slane %v1952_v31, 6  ;;  %v6191_v30 = vld [vmem:[#allocation39_spill] sm:$0xff]  ;;  %v6193_v31 = vld [vmem:[#allocation30_spill] sm:$0xff] }
 0x19e   : > { %6183 = vst [vmem:[#allocation48_spill] sm:$0xff] %v5615_v29  ;;  %6184 = vst [vmem:[#allocation36_spill] sm:$0xff] %v5617_v42  ;;  %v3142_v63 = vrot.slane %v3134_v16, %v6180_v46  ;;  %v5627_v18 = vrot.slane %v1953_v7, 6  ;;  %v2226_v61 = vmax.f32 %v6189_v12, %v5610_v44  ;;  %v2227_v40 = vmax.f32 %v6190_v53, %v5613_v45  ;;  %v6194_v16 = vld [vmem:[#allocation43_spill] sm:$0xff] }
 0x19f   : > { %6185 = vst [vmem:[#allocation49_spill] sm:$0xff] %v5619_v39  ;;  %6186 = vst [vmem:[#allocation37_spill] sm:$0xff] %v5621_v22  ;;  %v3133_v21 = vrot.slane %v3105_v6, %v6180_v46  ;;  %v2228_v38 = vmax.f32 %v6191_v30, %v5615_v29  ;;  %v2229_v20 = vmax.f32 %v6192_v50, %v5617_v42 }
 0x1a0   : > { %6187 = vst [vmem:[#allocation14_spill] sm:$0xff] %v5625_v8  ;;  %6188 = vst [vmem:[#allocation15_spill] sm:$0xff] %v5627_v18  ;;  %v2230_v6 = vmax.f32 %v5451_v33, %v5619_v39  ;;  %v2231_v7 = vmax.f32 %v6193_v31, %v5621_v22  ;;  %v2232_v41 = vmax.f32 %v6194_v16, %v5625_v8  ;;  %v2258_v35 = vrot.slane %v2226_v61, 4 }
 0x1a1   : > { %v3135_v3 = vcombine.low %v3126_v24, %v3133_v21  ;;  %v2233_v56 = vmax.f32 %v6195_v13, %v5627_v18  ;;  %v2259_v10 = vrot.slane %v2227_v40, 4  ;;  %v2260_v19 = vrot.slane %v2228_v38, 4 }
 0x1a2   : > { %v2261_v15 = vrot.slane %v2229_v20, 4  ;;  %v2262_v21 = vrot.slane %v2230_v6, 4  ;;  %v2263_v24 = vrot.slane %v2231_v7, 4  ;;  %v2264_v17 = vrot.slane %v2232_v41, 4 }
 0x1a3   : > { %v3149_v37 = vrot.slane %v3135_v3, %v6180_v46  ;;  %v2265_v14 = vrot.slane %v2233_v56, 4  ;;  %v2290_v55 = vsub.f32 %v5567_v59, %v2258_v35  ;;  %v2291_v43 = vsub.f32 %v2163_v2, %v2259_v10 }
 0x1a4   : > { %v2292_v34 = vsub.f32 %v2164_v23, %v2260_v19  ;;  %v2293_v47 = vsub.f32 %v2165_v26, %v2261_v15  ;;  %v2294_v28 = vsub.f32 %v2166_v48, %v2262_v21  ;;  %v2295_v61 = vsub.f32 %v2167_v49, %v2263_v24 }
 0x1a5   : > { %v3150_v9 = vcombine.low %v3142_v63, %v3149_v37  ;;  %v2296_v40 = vsub.f32 %v2168_v32, %v2264_v17  ;;  %v2297_v38 = vsub.f32 %v2169_v60, %v2265_v14  ;;  %v2306_v20 = vmax.f32 %v2290_v55, 0.0 }
 0x1a6   : > { %v2307_v41 = vmax.f32 %v2291_v43, 0.0  ;;  %v5654_v56 = vmax.f32 %v2292_v34, 0.0  ;;  %v5656_v35 = vmax.f32 %v2293_v47, 0.0  ;;  %v5658_v37 = vmax.f32 %v2294_v28, 0.0 }
 0x1a7   : > { %v5660_v15 = vmax.f32 %v2295_v61, 0.0  ;;  %v5662_v19 = vmax.f32 %v2296_v40, 0.0  ;;  %v5664_v10 = vmax.f32 %v2297_v38, 0.0  ;;  %3204 = vst [vmem:[%s5652_s28] sm:$0xff] %v3150_v9  ;;  %v2338_v63 = vrot.slane %v2306_v20, 1 }
 0x1a8   : > { %v2339_v59 = vrot.slane %v2307_v41, 1  ;;  %v2402_v9 = vrot.slane %v6189_v12, 4  ;;  %v2403_v23 = vrot.slane %v6190_v53, 4  ;;  %v2404_v26 = vrot.slane %v6191_v30, 4 }
 0x1a9   : > { %v5673_v47 = vmul.f32 %v2338_v63, %v2306_v20  ;;  %v2405_v48 = vrot.slane %v6192_v50, 4  ;;  %v2406_v49 = vrot.slane %v5451_v33, 4  ;;  %v2407_v32 = vrot.slane %v6193_v31, 4 }
 0x1aa   : > { %v5675_v2 = vmul.f32 %v2339_v59, %v2307_v41  ;;  %v2408_v60 = vrot.slane %v6194_v16, 4  ;;  %v2409_v3 = vrot.slane %v6195_v13, 4  ;;  %v2434_v6 = vsub.f32 %v5468_v51, %v2402_v9 }
 0x1ab   : > { %v2435_v7 = vsub.f32 %v5470_v57, %v2403_v23  ;;  %v2436_v21 = vsub.f32 %v5481_v27, %v2404_v26  ;;  %v2437_v24 = vsub.f32 %v5483_v1, %v2405_v48  ;;  %v2438_v61 = vsub.f32 %v5485_v11, %v2406_v49  ;;  %v6196_v48 = vld [vmem:[#allocation47_spill] sm:$0xff] }
 0x1ac   : > { %v2439_v40 = vsub.f32 %v5493_v36, %v2407_v32  ;;  %v2440_v38 = vsub.f32 %v5495_v54, %v2408_v60  ;;  %v2441_v20 = vsub.f32 %v5497_v52, %v2409_v3  ;;  %v2450_v41 = vsub.f32 %v5463_v62, %v5610_v44  ;;  %v6197_v32 = vld [vmem:[#allocation35_spill] sm:$0xff] }
 0x1ad   : > { %v2451_v63 = vsub.f32 %v5466_v25, %v5613_v45  ;;  %v2452_v59 = vsub.f32 %v5476_v4, %v5615_v29  ;;  %v2453_v9 = vsub.f32 %v5479_v58, %v5617_v42  ;;  %v2454_v23 = vsub.f32 %v5491_v5, %v5619_v39 }
 0x1ae   : > { %v2455_v26 = vsub.f32 %v5504_v0, %v5621_v22  ;;  %v2456_v49 = vsub.f32 %v6196_v48, %v5625_v8  ;;  %v2457_v60 = vsub.f32 %v6197_v32, %v5627_v18  ;;  %v2482_v3 = vrot.slane %v2434_v6, 1 }
 0x1af   : > { %v2483_v28 = vrot.slane %v2435_v7, 1  ;;  %v2484_v14 = vrot.slane %v2436_v21, 1  ;;  %v2485_v43 = vrot.slane %v2437_v24, 1  ;;  %v2486_v34 = vrot.slane %v2438_v61, 1 }
 0x1b0   : > { %v2487_v55 = vrot.slane %v2439_v40, 1  ;;  %v2488_v17 = vrot.slane %v2440_v38, 1  ;;  %v2489_v46 = vrot.slane %v2441_v20, 1  ;;  %v2514_v52 = vmul.f32 %v2482_v3, %v2434_v6 }
 0x1b1   : > { %v2515_v54 = vmul.f32 %v2483_v28, %v2435_v7  ;;  %v2516_v13 = vmul.f32 %v2484_v14, %v2436_v21  ;;  %v2517_v36 = vmul.f32 %v2485_v43, %v2437_v24  ;;  %v2518_v16 = vmul.f32 %v2486_v34, %v2438_v61 }
 0x1b2   : > { %v2519_v0 = vmul.f32 %v2487_v55, %v2439_v40  ;;  %v2520_v31 = vmul.f32 %v2488_v17, %v2440_v38  ;;  %v2521_v22 = vmul.f32 %v2489_v46, %v2441_v20  ;;  %v2546_v48 = vrot.slane %v2450_v41, 1 }
 0x1b3   : > { %v2547_v8 = vrot.slane %v2451_v63, 1  ;;  %v2548_v33 = vrot.slane %v2452_v59, 1  ;;  %v2549_v32 = vrot.slane %v2453_v9, 1  ;;  %v2550_v18 = vrot.slane %v2454_v23, 1 }
 0x1b4   : > { %v2551_v39 = vrot.slane %v2455_v26, 1  ;;  %v2552_v11 = vrot.slane %v2456_v49, 1  ;;  %v2553_v5 = vrot.slane %v2457_v60, 1  ;;  %v2578_v50 = vmul.f32 %v2546_v48, %v2450_v41 }
 0x1b5   : > { %v2579_v42 = vmul.f32 %v2547_v8, %v2451_v63  ;;  %v2580_v30 = vmul.f32 %v2548_v33, %v2452_v59  ;;  %v2581_v29 = vmul.f32 %v2549_v32, %v2453_v9  ;;  %v2582_v6 = vmul.f32 %v2550_v18, %v2454_v23 }
 0x1b6   : > { %v2583_v28 = vmul.f32 %v2551_v39, %v2455_v26  ;;  %v2584_v14 = vmul.f32 %v2552_v11, %v2456_v49  ;;  %v2585_v43 = vmul.f32 %v2553_v5, %v2457_v60  ;;  %v2610_v34 = vrot.slane %v2578_v50, 4 }
 0x1b7   : > { %v2611_v55 = vrot.slane %v2579_v42, 4  ;;  %v2612_v17 = vrot.slane %v2580_v30, 4  ;;  %v2613_v46 = vrot.slane %v2581_v29, 4  ;;  %v2614_v7 = vrot.slane %v2582_v6, 4 }
 0x1b8   : > { %v2615_v21 = vrot.slane %v2583_v28, 4  ;;  %v2616_v24 = vrot.slane %v2584_v14, 4  ;;  %v2617_v61 = vrot.slane %v2585_v43, 4  ;;  %v6198_v40 = vrot.slane %v5654_v56, 1  ;;  %v6208_v28 = vld [vmem:[#allocation48_spill] sm:$0xff]  ;;  %v6211_v43 = vld [vmem:[#allocation41_spill] sm:$0xff] }
 0x1b9   : > { %v6199_v33 = vrot.slane %v5656_v35, 1  ;;  %v2642_v11 = vadd.f32 %v2610_v34, %v2514_v52  ;;  %v2643_v5 = vadd.f32 %v2611_v55, %v2515_v54  ;;  %v6200_v42 = vrot.slane %v5658_v37, 1  ;;  %v6212_v34 = vld [vmem:[#allocation32_spill] sm:$0xff] }
 0x1ba   : > { %v5712_v38 = vmul.f32 %v6198_v40, %v5654_v56  ;;  %v6201_v39 = vrot.slane %v5660_v15, 1  ;;  %v6202_v30 = vrot.slane %v5662_v19, 1  ;;  %v6203_v56 = vrot.slane %v5664_v10, 1  ;;  %v6214_v55 = vld [vmem:[#allocation44_spill] sm:$0xff] }
 0x1bb   : > { %v5717_v8 = vmul.f32 %v6199_v33, %v5656_v35  ;;  %v5722_v29 = vmul.f32 %v6200_v42, %v5658_v37  ;;  %v2644_v54 = vadd.f32 %v2612_v17, %v2516_v13  ;;  %v2645_v35 = vadd.f32 %v2613_v46, %v2517_v36  ;;  %v6215_v17 = vld [vmem:[#allocation49_spill] sm:$0xff]  ;;  %v6216_v46 = vld [vmem:[#allocation42_spill] sm:$0xff]  ;;  %v6224_v33 = vld [vmem:[#allocation15_spill] sm:$0xff] }
 0x1bc   : > { %v5727_v18 = vmul.f32 %v6201_v39, %v5660_v15  ;;  %v5732_v50 = vmul.f32 %v6202_v30, %v5662_v19  ;;  %v5737_v52 = vmul.f32 %v6203_v56, %v5664_v10  ;;  %v2646_v20 = vadd.f32 %v2614_v7, %v2518_v16  ;;  %v6226_v30 = vld [vmem:[#allocation47_spill] sm:$0xff] }
 0x1bd   : > { %v2647_v37 = vadd.f32 %v2615_v21, %v2519_v0  ;;  %v2648_v41 = vadd.f32 %v2616_v24, %v2520_v31  ;;  %v2649_v63 = vadd.f32 %v2617_v61, %v2521_v22  ;;  %v2658_v59 = vsub.f32 %v2642_v11, %v5673_v47  ;;  %v6220_v21 = vld [vmem:[#allocation43_spill] sm:$0xff]  ;;  %v6223_v61 = vld [vmem:[#allocation45_spill] sm:$0xff] }
 0x1be   : > { %v2659_v15 = vsub.f32 %v2643_v5, %v5675_v2  ;;  %v2660_v9 = vsub.f32 %v2644_v54, %v5712_v38  ;;  %v2661_v19 = vsub.f32 %v2645_v35, %v5717_v8  ;;  %v2662_v23 = vsub.f32 %v2646_v20, %v5722_v29  ;;  %v6225_v11 = vld [vmem:[#allocation31_spill] sm:$0xff]  ;;  %v6228_v54 = vld [vmem:[#allocation33_spill] sm:$0xff] }
 0x1bf   : > { %v2663_v26 = vsub.f32 %v2647_v37, %v5727_v18  ;;  %v2664_v10 = vsub.f32 %v2648_v41, %v5732_v50  ;;  %v2665_v36 = vsub.f32 %v2649_v63, %v5737_v52  ;;  %v5747_v13 = vadd.f32 1e-09, %v2658_v59  ;;  %v6229_v63 = vld [vmem:[#allocation35_spill] sm:$0xff] }
 0x1c0   : > { %v5749_v0 = vadd.f32 1e-09, %v2659_v15  ;;  %v6204_v22 = vrot.slane %v5463_v62, 4  ;;  %v6205_v16 = vrot.slane %v5466_v25, 4  ;;  %v6206_v49 = vrot.slane %v5476_v4, 4  ;;  %v6210_v25 = vld [vmem:[#allocation36_spill] sm:$0xff] }
 0x1c1   : > { %v2738_v60 = vmin.f32 %v6189_v12, %v5610_v44  ;;  %v6207_v3 = vrot.slane %v5479_v58, 4  ;;  %v2739_v62 = vmin.f32 %v6190_v53, %v5613_v45  ;;  %v6213_v4 = vrot.slane %v6212_v34, 4  ;;  %v6217_v12 = vld [vmem:[#allocation37_spill] sm:$0xff]  ;;  %v6218_v58 = vld [vmem:[#allocation30_spill] sm:$0xff] }
 0x1c2   : > { %v2722_v31 = vmax.f32 %v5468_v51, %v6204_v22  ;;  %v2723_v48 = vmax.f32 %v5470_v57, %v6205_v16  ;;  %v2724_v32 = vmax.f32 %v5481_v27, %v6206_v49  ;;  %v6209_v51 = vld [vmem:[#allocation39_spill] sm:$0xff]  ;;  %v2741_v57 = vmin.f32 %v6211_v43, %v6210_v25  ;;  %v6221_v45 = vld [vmem:[#allocation34_spill] sm:$0xff] }
 0x1c3   : > { %v2725_v6 = vmax.f32 %v5483_v1, %v6207_v3  ;;  %v2740_v14 = vmin.f32 %v6209_v51, %v6208_v28  ;;  %v2726_v27 = vmax.f32 %v6214_v55, %v6213_v4  ;;  %v2742_v44 = vmin.f32 %v6216_v46, %v6215_v17  ;;  %v6219_v1 = vld [vmem:[#allocation14_spill] sm:$0xff] }
 0x1c4   : > { %v2743_v7 = vmin.f32 %v6218_v58, %v6217_v12  ;;  %v2744_v24 = vmin.f32 %v6220_v21, %v6219_v1  ;;  %v6222_v53 = vrot.slane %v6221_v45, 4  ;;  %v2745_v5 = vmin.f32 %v6225_v11, %v6224_v33  ;;  %v6231_v15 = vld [vmem:[#allocation46_spill] sm:$0xff] }
 0x1c5   : > { %v2770_v42 = vrot.slane %v2738_v60, 4  ;;  %v2771_v39 = vrot.slane %v2739_v62, 4  ;;  %v6227_v56 = vrot.slane %v6226_v30, 4  ;;  %v2772_v20 = vrot.slane %v2740_v14, 4 }
 0x1c6   : > { %v2727_v40 = vmax.f32 %v6223_v61, %v6222_v53  ;;  %v2773_v37 = vrot.slane %v2741_v57, 4  ;;  %v2774_v41 = vrot.slane %v2742_v44, 4  ;;  %v6230_v59 = vrot.slane %v6229_v63, 4 }
 0x1c7   : > { %v2728_v35 = vmax.f32 %v6228_v54, %v6227_v56  ;;  %v2775_v16 = vrot.slane %v2743_v7, 4  ;;  %v2776_v49 = vrot.slane %v2744_v24, 4  ;;  %v2777_v3 = vrot.slane %v2745_v5, 4 }
 0x1c8   : > { %v2729_v22 = vmax.f32 %v6231_v15, %v6230_v59  ;;  %v2802_v28 = vsub.f32 %v2722_v31, %v2770_v42  ;;  %v2803_v51 = vsub.f32 %v2723_v48, %v2771_v39  ;;  %v2804_v25 = vsub.f32 %v2724_v32, %v2772_v20  ;;  %v3436_v20 = vld [vmem:[%s4056_s18 + $0xc2] ss:$8 sm:$0xf0] }
 0x1c9   : > { %v2805_v43 = vsub.f32 %v2725_v6, %v2773_v37  ;;  %v5791_v60 = vadd.f32 1e-09, %v2660_v9  ;;  %v5793_v62 = vadd.f32 1e-09, %v2661_v19  ;;  %v2806_v34 = vsub.f32 %v2726_v27, %v2774_v41 }
 0x1ca   : > { %v2807_v4 = vsub.f32 %v2727_v40, %v2775_v16  ;;  %v2808_v14 = vsub.f32 %v2728_v35, %v2776_v49  ;;  %v2834_v57 = vrot.slane %v2802_v28, 1  ;;  %v2835_v55 = vrot.slane %v2803_v51, 1  ;;  %v3435_v35 = vld [vmem:[%s4056_s18 + $0xc2] ss:$8 sm:$0xf] }
 0x1cb   : > { %v2836_v17 = vrot.slane %v2804_v25, 1  ;;  %v5795_v46 = vadd.f32 1e-09, %v2662_v23  ;;  %3650 = vrcp.f32 %v5747_v13  ;;  %v2809_v44 = vsub.f32 %v2729_v22, %v2777_v3 }
 0x1cc   : > { %v2837_v12 = vrot.slane %v2805_v43, 1  ;;  %v5798_v31 = vadd.f32 1e-09, %v2663_v26  ;;  %3652 = vrcp.f32 %v5749_v0  ;;  %v2838_v9 = vrot.slane %v2806_v34, 1 }
 0x1cd   : > { %v2866_v48 = vmul.f32 %v2834_v57, %v2802_v28  ;;  %v5801_v19 = vadd.f32 1e-09, %v2664_v10  ;;  %3654 = vrcp.f32 %v5791_v60  ;;  %v2839_v32 = vrot.slane %v2807_v4, 1 }
 0x1ce   : > { %v2867_v6 = vmul.f32 %v2835_v55, %v2803_v51  ;;  %v5804_v27 = vadd.f32 1e-09, %v2665_v36  ;;  %3656 = vrcp.f32 %v5793_v62  ;;  %v2840_v23 = vrot.slane %v2808_v14, 1  ;;  %v6232_v55 = vld [vmem:[#allocation6_spill] sm:$0xff] }
 0x1cf   : > { %v2868_v58 = vmul.f32 %v2836_v17, %v2804_v25  ;;  %3658 = vrcp.f32 %v5795_v46  ;;  %v2841_v26 = vrot.slane %v2809_v44, 1  ;;  %v2869_v7 = vmul.f32 %v2837_v12, %v2805_v43  ;;  %v6234_v12 = vld [vmem:[#allocation8_spill] sm:$0xff] }
 0x1d0   : > { %3660 = vrcp.f32 %v5798_v31  ;;  %v2870_v1 = vmul.f32 %v2838_v9, %v2806_v34  ;;  %v2882_v21 = vadd.f32 1e-09, %v2866_v48  ;;  %v2871_v10 = vmul.f32 %v2839_v32, %v2807_v4  ;;  %v6235_v32 = vld [vmem:[#allocation9_spill] sm:$0xff] }
 0x1d1   : > { %3662 = vrcp.f32 %v5801_v19  ;;  %v2883_v24 = vadd.f32 1e-09, %v2867_v6  ;;  %v2872_v36 = vmul.f32 %v2840_v23, %v2808_v14  ;;  %v2884_v45 = vadd.f32 1e-09, %v2868_v58  ;;  %v6236_v6 = vld [vmem:[#allocation10_spill] sm:$0xff] }
 0x1d2   : > { %3664 = vrcp.f32 %v5804_v27  ;;  %v2873_v53 = vmul.f32 %v2841_v26, %v2809_v44  ;;  %v2885_v61 = vadd.f32 1e-09, %v2869_v7  ;;  %v2886_v40 = vadd.f32 1e-09, %v2870_v1  ;;  %v6233_v44 = vld [vmem:[#allocation7_spill] sm:$0xff] }
 0x1d3   : > { %3666 = vrcp.f32 %v2882_v21  ;;  %v2887_v11 = vadd.f32 1e-09, %v2871_v10  ;;  %v2888_v42 = vadd.f32 1e-09, %v2872_v36  ;;  %v2898_v63 = vsub.f32 %v2882_v21, %v5747_v13  ;;  %v6237_v1 = vld [vmem:[#allocation11_spill] sm:$0xff] }
 0x1d4   : > { %3668 = vrcp.f32 %v2883_v24  ;;  %v2889_v30 = vadd.f32 1e-09, %v2873_v53  ;;  %v5814_v15 = vor.u32 %v3436_v20, %v3435_v35  ;;  %v2899_v16 = vsub.f32 %v2883_v24, %v5749_v0  ;;  %v6238_v53 = vld [vmem:[#allocation12_spill] sm:$0xff]  ;;  %v6240_v35 = vld [vmem:[#allocation23_spill] sm:$0xff] }
 0x1d5   : > { %v3651_v33 = vpop.eup %3650  ;;  %3670 = vrcp.f32 %v2884_v45  ;;  %v2900_v51 = vsub.f32 %v2884_v45, %v5791_v60  ;;  %v2901_v4 = vsub.f32 %v2885_v61, %v5793_v62  ;;  %v2904_v60 = vsub.f32 %v2888_v42, %v5801_v19 }
 0x1d6   : > { %v3653_v5 = vpop.eup %3652  ;;  %3672 = vrcp.f32 %v2885_v61  ;;  %v2699_v22 = vmul.f32 %v3651_v33, %v5673_v47  ;;  %v2905_v57 = vsub.f32 %v2889_v30, %v5804_v27  ;;  %v3037_v19 = vrot.slane %v5814_v15, %v6235_v32 }
 0x1d7   : > { %v3655_v39 = vpop.eup %3654  ;;  %3674 = vrcp.f32 %v2886_v40  ;;  %v2701_v49 = vmul.f32 %v3653_v5, %v5675_v2  ;;  %v2902_v2 = vsub.f32 %v2886_v40, %v5795_v46  ;;  %v3033_v46 = vrot.slane %v5814_v15, %v6234_v12 }
 0x1d8   : > { %v3657_v56 = vpop.eup %3656  ;;  %3676 = vrcp.f32 %v2887_v11  ;;  %v2703_v3 = vmul.f32 %v3655_v39, %v5712_v38  ;;  %v2903_v38 = vsub.f32 %v2887_v11, %v5798_v31  ;;  %v3041_v27 = vrot.slane %v5814_v15, %v6236_v6 }
 0x1d9   : > { %v3659_v54 = vpop.eup %3658  ;;  %3678 = vrcp.f32 %v2888_v42  ;;  %v2705_v28 = vmul.f32 %v3657_v56, %v5717_v8  ;;  %v3045_v21 = vrot.slane %v5814_v15, %v6237_v1  ;;  %v3049_v61 = vrot.slane %v5814_v15, %v6238_v53  ;;  %v6239_v42 = vld [vmem:[#allocation22_spill] sm:$0xff] }
 0x1da   : > { %v3661_v37 = vpop.eup %3660  ;;  %3680 = vrcp.f32 %v2889_v30  ;;  %v2707_v43 = vmul.f32 %v3659_v54, %v5722_v29 }
 0x1db   : > { %v3663_v41 = vpop.eup %3662  ;;  %v2709_v13 = vmul.f32 %v3661_v37, %v5727_v18  ;;  %v3025_v18 = vrot.slane %v5814_v15, %v6232_v55 }
 0x1dc   : > { %v3665_v59 = vpop.eup %3664  ;;  %v2711_v34 = vmul.f32 %v3663_v41, %v5732_v50 }
 0x1dd   : > { %v3667_v25 = vpop.eup %3666  ;;  %v2713_v0 = vmul.f32 %v3665_v59, %v5737_v52  ;;  %v3029_v52 = vrot.slane %v5814_v15, %v6233_v44 }
 0x1de   : > { %v3669_v47 = vpop.eup %3668  ;;  %v2923_v14 = vmul.f32 %v3667_v25, %v2898_v63  ;;  %v6241_v63 = vld [vmem:[#allocation24_spill] sm:$0xff] }
 0x1df   : > { %v3671_v8 = vpop.eup %3670  ;;  %v2925_v29 = vmul.f32 %v3669_v47, %v2899_v16  ;;  %v6244_v47 = vld [vmem:[#allocation13_spill] sm:$0xff] }
 0x1e0   : > { %v3673_v50 = vpop.eup %3672  ;;  %v2927_v17 = vmul.f32 %v3671_v8, %v2900_v51  ;;  %v2946_v62 = vsub.f32 %v2699_v22, %v2923_v14  ;;  %v6245_v14 = vld [vmem:[#allocation27_spill] sm:$0xff] }
 0x1e1   : > { %v3675_v31 = vpop.eup %3674  ;;  %v2929_v9 = vmul.f32 %v3673_v50, %v2901_v4  ;;  %v2947_v48 = vsub.f32 %v2701_v49, %v2925_v29 }
 0x1e2   : > { %v3677_v23 = vpop.eup %3676  ;;  %v2931_v58 = vmul.f32 %v3675_v31, %v2902_v2  ;;  %v2948_v26 = vsub.f32 %v2703_v3, %v2927_v17  ;;  %v2962_v7 = vsub.f32 1.0, %v2946_v62  ;;  %v6242_v3 = vld [vmem:[#allocation25_spill] sm:$0xff]  ;;  %v3053_v2 = vrot.slane %v5814_v15, %v6244_v47 }
 0x1e3   : > { %v3679_v10 = vpop.eup %3678  ;;  %v2933_v24 = vmul.f32 %v3677_v23, %v2903_v38  ;;  %v2949_v36 = vsub.f32 %v2705_v28, %v2929_v9  ;;  %v2963_v45 = vsub.f32 1.0, %v2947_v48  ;;  %v6248_v62 = vld [vmem:[#allocation5_spill] sm:$0xff] }
 0x1e4   : > { %v3681_v40 = vpop.eup %3680  ;;  %v2935_v33 = vmul.f32 %v3679_v10, %v2904_v60  ;;  %v2950_v11 = vsub.f32 %v2707_v43, %v2931_v58  ;;  %v2964_v5 = vsub.f32 1.0, %v2948_v26  ;;  %v2980_v39 = vmul.f32 %v2962_v7, %v6239_v42  ;;  %v6243_v43 = vld [vmem:[#allocation26_spill] sm:$0xff] }
 0x1e5   : > { %v2937_v30 = vmul.f32 %v3681_v40, %v2905_v57  ;;  %v2951_v56 = vsub.f32 %v2709_v13, %v2933_v24  ;;  %v2965_v54 = vsub.f32 1.0, %v2949_v36  ;;  %v2981_v20 = vmul.f32 %v2963_v45, %v6240_v35  ;;  %v6246_v57 = vld [vmem:[#allocation28_spill] sm:$0xff] }
 0x1e6   : > { %v2952_v37 = vsub.f32 %v2711_v34, %v2935_v33  ;;  %v2966_v41 = vsub.f32 1.0, %v2950_v11  ;;  %v2982_v59 = vmul.f32 %v2964_v5, %v6241_v63  ;;  %v3078_v22 = vmul.f32 %v3025_v18, %v2980_v39 }
 0x1e7   : > { %v2953_v16 = vsub.f32 %v2713_v0, %v2937_v30  ;;  %v2967_v49 = vsub.f32 1.0, %v2951_v56  ;;  %v2983_v28 = vmul.f32 %v2965_v54, %v6242_v3  ;;  %v3079_v51 = vmul.f32 %v3029_v52, %v2981_v20  ;;  %v6247_v0 = vld [vmem:[#allocation29_spill] sm:$0xff] }
 0x1e8   : > { %v2968_v25 = vsub.f32 1.0, %v2952_v37  ;;  %v2984_v4 = vmul.f32 %v2966_v41, %v6243_v43  ;;  %v3080_v13 = vmul.f32 %v3033_v46, %v2982_v59 }
 0x1e9   : > { %v2969_v38 = vsub.f32 1.0, %v2953_v16  ;;  %v2985_v8 = vmul.f32 %v2967_v49, %v6245_v14  ;;  %v3081_v34 = vmul.f32 %v3037_v19, %v2983_v28  ;;  %v3151_v60 = vcombine.high %v3078_v22, %v3079_v51 }
 0x1ea   : > { %v2986_v29 = vmul.f32 %v2968_v25, %v6246_v57  ;;  %v3082_v55 = vmul.f32 %v3041_v27, %v2984_v4 }
 0x1eb   : > { %v2987_v18 = vmul.f32 %v2969_v38, %v6247_v0  ;;  %v3083_v50 = vmul.f32 %v3045_v21, %v2985_v8  ;;  %v3152_v17 = vcombine.high %v3080_v13, %v3081_v34  ;;  %v3161_v44 = vrot.slane %v3151_v60, %v6248_v62 }
 0x1ec   : > { %v3084_v52 = vmul.f32 %v3049_v61, %v2986_v29 }
 0x1ed   : > { %v3085_v12 = vmul.f32 %v3053_v2, %v2987_v18  ;;  %v3153_v31 = vcombine.high %v3082_v55, %v3083_v50  ;;  %v3168_v15 = vrot.slane %v3152_v17, %v6248_v62 }
 0x1ef   : > { %v3154_v46 = vcombine.high %v3084_v52, %v3085_v12  ;;  %v3175_v9 = vrot.slane %v3153_v31, %v6248_v62  ;;  %v3183_v48 = vcombine.low %v3161_v44, %v3168_v15 }
 0x1f1   : > { %v3182_v32 = vrot.slane %v3154_v46, %v6248_v62  ;;  %v3191_v6 = vrot.slane %v3183_v48, %v6248_v62 }
 0x1f3   : > { %v3184_v19 = vcombine.low %v3175_v9, %v3182_v32 }
 0x1f5   : > { %v3198_v27 = vrot.slane %v3184_v19, %v6248_v62 }
 0x1f7   : > { %v3199_v23 = vcombine.low %v3191_v6, %v3198_v27 }
 0x1f9   : > { %3205 = vst [vmem:[%s5652_s28 + $0x8] sm:$0xff] %v3199_v23 }
 0x1fa PF: > { %s16_s22 = sadd.s32 1, %s3728_s22   ;;  %s6249_s18 = smov %s3716_s19 }
 0x1fb   : > { %p13_p10 = scmp.ge.s32.totalorder %s16_s22, 4   ;;  %s6250_s19 = smov %s3802_s27 }
 0x1fc   : > { %s6251_s20 = smov %s3724_s21  ;;  %s6252_s21 = smov %s6254_s23 }
 0x1fd   :  { %15 = sbr.rel (!%p13_p10) target bundleno = 3 (0x3), region = 184 }

</bundles_post_ra>
